<compile_context>
chip_gen: v7x
topology: tpu7x:2x2x1
jax: 0.10.0
libtpu: 0.0.40
codegen_flags: <defaults>
</compile_context>

<pallas_src>
import jax
import jax.numpy as jnp
from jax.experimental import pallas as pl
from jax.experimental.pallas import tpu as pltpu

EPS = 1e-5
LANE = 128


def _round_up(x, m):
    return (x + m - 1) // m * m


# ----------------------------- Pallas kernel ------------------------------ #
def _basic_block_kernel(x_ref, w1_ref, w2_ref, b1_ref, b2_ref, o_ref,
                        cat_ref, acc_ref):
    """Fused BasicBlock for one image.

    x_ref  : (H+2, W+2, Cp) bf16  spatially zero-padded input
    w*_ref : (3, 3*Cp, Cp)  bf16  per-dy weights; K stacks dx=0,1,2 (BN scale folded)
    b*_ref : (1, Cp)        f32   folded BatchNorm bias
    o_ref  : (H, W, Cp)     bf16  output
    cat_ref: (H+2, W, 3*Cp) bf16  dx-packed activation slab (reused by both convs)
    acc_ref: (H*W, Cp)      f32   matmul accumulator
    """
    hh, ww, cp = o_ref.shape
    m = hh * ww
    f32 = jnp.float32

    # Build the dx-packed input slab: cat[r, j, dx*cp:(dx+1)*cp] = x_pad[r, j+dx, :].
    # x_pad's zero halo lands in the slab, so no explicit zero-fill is needed.
    for dx in range(3):
        cat_ref[:, :, dx * cp:(dx + 1) * cp] = x_ref[:, dx:dx + ww, :]

    # ---- conv1: 3 K-packed matmuls (K = 3*Cp), f32 accumulation in VMEM ----
    acc_ref[...] = jnp.dot(cat_ref[0:hh].reshape(m, 3 * cp), w1_ref[0],
                           preferred_element_type=f32)
    for dy in range(1, 3):
        acc_ref[...] += jnp.dot(cat_ref[dy:dy + hh].reshape(m, 3 * cp), w1_ref[dy],
                                preferred_element_type=f32)

    # bn1 (scale already folded into w1) + relu.
    h1 = jnp.maximum(acc_ref[...] + b1_ref[...], 0.0)
    h1 = h1.astype(cat_ref.dtype).reshape(hh, ww, cp)

    # Identity residual = x interior = the dx=1 block of the slab, read BEFORE it
    # is overwritten with h1; pre-load it plus bn2's bias into the accumulator.
    acc_ref[...] = (cat_ref[1:hh + 1, :, cp:2 * cp].astype(f32).reshape(m, cp)
                    + b2_ref[...])

    # Overwrite the slab with the dx-packed, zero-haloed h1.  Every position that
    # must stay zero still holds a halo zero from the x_pad build above.
    cat_ref[1:hh + 1, 1:ww, 0:cp] = h1[:, 0:ww - 1, :]
    cat_ref[1:hh + 1, :, cp:2 * cp] = h1
    cat_ref[1:hh + 1, 0:ww - 1, 2 * cp:3 * cp] = h1[:, 1:ww, :]

    # ---- conv2 accumulated on top of (residual + bias2), then relu ----
    for dy in range(3):
        acc_ref[...] += jnp.dot(cat_ref[dy:dy + hh].reshape(m, 3 * cp), w2_ref[dy],
                                preferred_element_type=f32)
    o_ref[...] = jnp.maximum(acc_ref[...], 0.0).astype(o_ref.dtype).reshape(hh, ww, cp)


# ------------------------------ glue / prep -------------------------------- #
def _fold_bn(gamma, beta, mean, var):
    scale = gamma / jnp.sqrt(var + EPS)
    bias = beta - mean * scale
    return scale, bias


def _prep_weight(w_oihw, scale, cp):
    """torch OIHW -> (3, 3*Cp, Cp) bf16; BN scale folded; K stacks dx=0,1,2."""
    cout, cin, kh, kw = w_oihw.shape
    w = w_oihw.astype(jnp.float32) * scale[:, None, None, None]   # fold BN scale (f32)
    w = jnp.transpose(w, (2, 3, 1, 0))                            # (dy, dx, cin, cout)
    w = jnp.pad(w, ((0, 0), (0, 0), (0, cp - cin), (0, cp - cout)))
    return w.reshape(kh, kw * cp, cp).astype(jnp.bfloat16)


def _prep_bias(b, cp):
    return jnp.pad(b.astype(jnp.float32), (0, cp - b.shape[0])).reshape(1, cp)


def basic_block_forward(x_nchw, params):
    """BasicBlock.forward (stride=1, downsample=None). Input/output NCHW f32.

    TODO(synk): in a full network, keep activations NHWC / channel-padded / bf16
                across blocks instead of transposing + padding + casting per call.
    """
    n, cin, h, w = x_nchw.shape
    cout = params["conv1_w"].shape[0]
    assert cout == cin, "identity shortcut requires inplanes == planes"
    cp = _round_up(max(cin, cout), LANE)

    # NCHW -> NHWC, spatial zero-pad (3x3 / pad=1 halo), channel pad to lane width, bf16.
    x_nhwc = jnp.transpose(x_nchw, (0, 2, 3, 1))
    x_pad = jnp.pad(x_nhwc, ((0, 0), (1, 1), (1, 1), (0, cp - cin))).astype(jnp.bfloat16)

    s1, b1 = _fold_bn(*params["bn1"])
    s2, b2 = _fold_bn(*params["bn2"])
    w1 = _prep_weight(params["conv1_w"], s1, cp)
    w2 = _prep_weight(params["conv2_w"], s2, cp)
    b1, b2 = _prep_bias(b1, cp), _prep_bias(b2, cp)

    # TODO(synk): for 256/512-channel stages, mark the weight/bias specs
    #             pipeline_mode=pl.Buffered(1) (constant index_map => no need to
    #             double-buffer the resident operands).
    out = pl.pallas_call(
        _basic_block_kernel,
        out_shape=jax.ShapeDtypeStruct((n, h, w, cp), jnp.bfloat16),
        grid=(n,),
        in_specs=[
            pl.BlockSpec((None, h + 2, w + 2, cp), lambda i: (i, 0, 0, 0)),
            pl.BlockSpec((3, 3 * cp, cp), lambda i: (0, 0, 0)),   # weights stay resident
            pl.BlockSpec((3, 3 * cp, cp), lambda i: (0, 0, 0)),
            pl.BlockSpec((1, cp), lambda i: (0, 0)),
            pl.BlockSpec((1, cp), lambda i: (0, 0)),
        ],
        out_specs=pl.BlockSpec((None, h, w, cp), lambda i: (i, 0, 0, 0)),
        scratch_shapes=[
            pltpu.VMEM((h + 2, w, 3 * cp), jnp.bfloat16),   # dx-packed activation slab
            pltpu.VMEM((h * w, cp), jnp.float32),           # f32 accumulator
        ],
        compiler_params=pltpu.CompilerParams(
            dimension_semantics=("parallel",),
            vmem_limit_bytes=64 * 1024 * 1024),
    )(x_pad, w1, w2, b1, b2)

    out = out[..., :cout].astype(jnp.float32)     # strip channel padding, back to f32
    return jnp.transpose(out, (0, 3, 1, 2))       # NHWC -> NCHW


# ------------------------- pure-JAX reference ------------------------------ #
def _reference(x, params):
    def conv(x, w):
        return jax.lax.conv_general_dilated(
            x, w, window_strides=(1, 1), padding=((1, 1), (1, 1)),
            dimension_numbers=("NCHW", "OIHW", "NCHW"))

    def bn(x, g, b, m, v):
        g, b, m, v = (a[None, :, None, None] for a in (g, b, m, v))
        return (x - m) / jnp.sqrt(v + EPS) * g + b

    out = jax.nn.relu(bn(conv(x, params["conv1_w"]), *params["bn1"]))
    out = bn(conv(out, params["conv2_w"]), *params["bn2"])
    return jax.nn.relu(out + x)


# --------------------------------- main ------------------------------------ #
if __name__ == "__main__":
    key = jax.random.PRNGKey(0)
    N, C, H, W = 2, 4, 16, 16          # inplanes = planes = 4, stride = 1
    planes = C

    keys = jax.random.split(key, 12)
    x = jax.random.normal(keys[0], (N, C, H, W), jnp.float32)

    fan_in = 9 * C
    params = {
        "conv1_w": jax.random.normal(keys[1], (planes, C, 3, 3), jnp.float32)
                   * (2.0 / fan_in) ** 0.5,
        "conv2_w": jax.random.normal(keys[2], (planes, planes, 3, 3), jnp.float32)
                   * (2.0 / (9 * planes)) ** 0.5,
        "bn1": (1.0 + 0.1 * jax.random.normal(keys[3], (planes,), jnp.float32),   # gamma
                0.1 * jax.random.normal(keys[4], (planes,), jnp.float32),          # beta
                0.1 * jax.random.normal(keys[5], (planes,), jnp.float32),          # running_mean
                0.5 + jax.random.uniform(keys[6], (planes,), jnp.float32)),        # running_var
        "bn2": (1.0 + 0.1 * jax.random.normal(keys[7], (planes,), jnp.float32),
                0.1 * jax.random.normal(keys[8], (planes,), jnp.float32),
                0.1 * jax.random.normal(keys[9], (planes,), jnp.float32),
                0.5 + jax.random.uniform(keys[10], (planes,), jnp.float32)),
    }

    out = basic_block_forward(x, params)
    out = jax.block_until_ready(out)

    ref = _reference(x, params)
    assert out.shape == (N, planes, H, W), out.shape
    # bf16 matmul inputs / bf16 output (f32 accumulation) => looser tolerance vs f32 ref.
    max_err = float(jnp.max(jnp.abs(out - ref)))
    assert jnp.allclose(out, ref, rtol=5e-2, atol=1e-1), max_err

    print("KERNEL_OK")
</pallas_src>

<mosaic_0001>
module attributes {stable_mosaic.version = 11 : i64} {
  func.func @_basic_block_kernel(%arg0: i32, %arg1: memref<1x18x18x128xbf16, #tpu.memory_space<vmem>>, %arg2: memref<3x384x128xbf16, #tpu.memory_space<vmem>>, %arg3: memref<3x384x128xbf16, #tpu.memory_space<vmem>>, %arg4: memref<1x128xf32, #tpu.memory_space<vmem>>, %arg5: memref<1x128xf32, #tpu.memory_space<vmem>>, %arg6: memref<1x16x16x128xbf16, #tpu.memory_space<vmem>>, %arg7: memref<18x16x384xbf16, #tpu.memory_space<vmem>>, %arg8: memref<256x128xf32, #tpu.memory_space<vmem>>) attributes {dimension_semantics = [#tpu.dimension_semantics<parallel>], iteration_bounds = array<i64: 2>, scalar_prefetch = 0 : i64, scratch_operands = 2 : i64, tpu.core_type = #tpu.core_type<tc>, window_params = [{transform_indices = @transform_0, window_bounds = array<i64: 1, 18, 18, 128>}, {pipeline_mode = #tpu.pipeline_mode<synchronous>, transform_indices = @transform_1, window_bounds = array<i64: 3, 384, 128>}, {pipeline_mode = #tpu.pipeline_mode<synchronous>, transform_indices = @transform_2, window_bounds = array<i64: 3, 384, 128>}, {pipeline_mode = #tpu.pipeline_mode<synchronous>, transform_indices = @transform_3, window_bounds = array<i64: 1, 128>}, {pipeline_mode = #tpu.pipeline_mode<synchronous>, transform_indices = @transform_4, window_bounds = array<i64: 1, 128>}, {transform_indices = @transform_5, window_bounds = array<i64: 1, 16, 16, 128>}]} {
    %c0 = arith.constant 0 : index
    %c0_0 = arith.constant 0 : index
    %c0_1 = arith.constant 0 : index
    %c0_2 = arith.constant 0 : index
    %0 = vector.load %arg1[%c0, %c0_0, %c0_1, %c0_2] : memref<1x18x18x128xbf16, #tpu.memory_space<vmem>>, vector<1x18x16x128xbf16>
    %1 = vector.shape_cast %0 : vector<1x18x16x128xbf16> to vector<18x16x128xbf16>
    %c0_3 = arith.constant 0 : index
    %c0_4 = arith.constant 0 : index
    %c0_5 = arith.constant 0 : index
    %2 = vector.load %arg7[%c0_3, %c0_4, %c0_5] : memref<18x16x384xbf16, #tpu.memory_space<vmem>>, vector<18x16x128xbf16>
    tpu.vector_store %arg7[%c0_3, %c0_4, %c0_5], %1 {strides = array<i32>} : memref<18x16x384xbf16, #tpu.memory_space<vmem>>, vector<18x16x128xbf16>,
    %c0_6 = arith.constant 0 : index
    %c0_7 = arith.constant 0 : index
    %c1 = arith.constant 1 : index
    %c0_8 = arith.constant 0 : index
    %3 = vector.load %arg1[%c0_6, %c0_7, %c1, %c0_8] : memref<1x18x18x128xbf16, #tpu.memory_space<vmem>>, vector<1x18x16x128xbf16>
    %4 = vector.shape_cast %3 : vector<1x18x16x128xbf16> to vector<18x16x128xbf16>
    %c0_9 = arith.constant 0 : index
    %c0_10 = arith.constant 0 : index
    %c128 = arith.constant 128 : index
    %5 = vector.load %arg7[%c0_9, %c0_10, %c128] : memref<18x16x384xbf16, #tpu.memory_space<vmem>>, vector<18x16x128xbf16>
    tpu.vector_store %arg7[%c0_9, %c0_10, %c128], %4 {strides = array<i32>} : memref<18x16x384xbf16, #tpu.memory_space<vmem>>, vector<18x16x128xbf16>,
    %c0_11 = arith.constant 0 : index
    %c0_12 = arith.constant 0 : index
    %c2 = arith.constant 2 : index
    %c0_13 = arith.constant 0 : index
    %6 = vector.load %arg1[%c0_11, %c0_12, %c2, %c0_13] : memref<1x18x18x128xbf16, #tpu.memory_space<vmem>>, vector<1x18x16x128xbf16>
    %7 = vector.shape_cast %6 : vector<1x18x16x128xbf16> to vector<18x16x128xbf16>
    %c0_14 = arith.constant 0 : index
    %c0_15 = arith.constant 0 : index
    %c256 = arith.constant 256 : index
    %8 = vector.load %arg7[%c0_14, %c0_15, %c256] : memref<18x16x384xbf16, #tpu.memory_space<vmem>>, vector<18x16x128xbf16>
    tpu.vector_store %arg7[%c0_14, %c0_15, %c256], %7 {strides = array<i32>} : memref<18x16x384xbf16, #tpu.memory_space<vmem>>, vector<18x16x128xbf16>,
    %c0_16 = arith.constant 0 : index
    %c0_17 = arith.constant 0 : index
    %c0_18 = arith.constant 0 : index
    %9 = vector.load %arg7[%c0_16, %c0_17, %c0_18] : memref<18x16x384xbf16, #tpu.memory_space<vmem>>, vector<16x16x384xbf16>
    %10 = vector.shape_cast %9 : vector<16x16x384xbf16> to vector<256x384xbf16>
    %c0_19 = arith.constant 0 : index
    %c0_20 = arith.constant 0 : index
    %c0_21 = arith.constant 0 : index
    %11 = vector.load %arg2[%c0_19, %c0_20, %c0_21] : memref<3x384x128xbf16, #tpu.memory_space<vmem>>, vector<1x384x128xbf16>
    %12 = vector.shape_cast %11 : vector<1x384x128xbf16> to vector<384x128xbf16>
    %cst = arith.constant dense<0.000000e+00> : vector<256x128xf32>
    %13 = tpu.matmul %10, %12, %cst {dimension_numbers = #tpu.dot_dimension_numbers<[1], [0], [0], [1], [0, 0, 1, 1], [], []>} : vector<256x384xbf16>, vector<384x128xbf16>, vector<256x128xf32> -> vector<256x128xf32>
    %c0_22 = arith.constant 0 : index
    %c0_23 = arith.constant 0 : index
    %14 = vector.load %arg8[%c0_22, %c0_23] : memref<256x128xf32, #tpu.memory_space<vmem>>, vector<256x128xf32>
    tpu.vector_store %arg8[%c0_22, %c0_23], %13 {strides = array<i32>} : memref<256x128xf32, #tpu.memory_space<vmem>>, vector<256x128xf32>,
    %c0_24 = arith.constant 0 : index
    %c0_25 = arith.constant 0 : index
    %15 = vector.load %arg8[%c0_24, %c0_25] : memref<256x128xf32, #tpu.memory_space<vmem>>, vector<256x128xf32>
    %c1_26 = arith.constant 1 : index
    %c0_27 = arith.constant 0 : index
    %c0_28 = arith.constant 0 : index
    %16 = vector.load %arg7[%c1_26, %c0_27, %c0_28] : memref<18x16x384xbf16, #tpu.memory_space<vmem>>, vector<16x16x384xbf16>
    %17 = vector.shape_cast %16 : vector<16x16x384xbf16> to vector<256x384xbf16>
    %c1_29 = arith.constant 1 : index
    %c0_30 = arith.constant 0 : index
    %c0_31 = arith.constant 0 : index
    %18 = vector.load %arg2[%c1_29, %c0_30, %c0_31] : memref<3x384x128xbf16, #tpu.memory_space<vmem>>, vector<1x384x128xbf16>
    %19 = vector.shape_cast %18 : vector<1x384x128xbf16> to vector<384x128xbf16>
    %cst_32 = arith.constant dense<0.000000e+00> : vector<256x128xf32>
    %20 = tpu.matmul %17, %19, %cst_32 {dimension_numbers = #tpu.dot_dimension_numbers<[1], [0], [0], [1], [0, 0, 1, 1], [], []>} : vector<256x384xbf16>, vector<384x128xbf16>, vector<256x128xf32> -> vector<256x128xf32>
    %21 = arith.addf %15, %20 : vector<256x128xf32>
    %c0_33 = arith.constant 0 : index
    %c0_34 = arith.constant 0 : index
    %22 = vector.load %arg8[%c0_33, %c0_34] : memref<256x128xf32, #tpu.memory_space<vmem>>, vector<256x128xf32>
    tpu.vector_store %arg8[%c0_33, %c0_34], %21 {strides = array<i32>} : memref<256x128xf32, #tpu.memory_space<vmem>>, vector<256x128xf32>,
    %c0_35 = arith.constant 0 : index
    %c0_36 = arith.constant 0 : index
    %23 = vector.load %arg8[%c0_35, %c0_36] : memref<256x128xf32, #tpu.memory_space<vmem>>, vector<256x128xf32>
    %c2_37 = arith.constant 2 : index
    %c0_38 = arith.constant 0 : index
    %c0_39 = arith.constant 0 : index
    %24 = vector.load %arg7[%c2_37, %c0_38, %c0_39] : memref<18x16x384xbf16, #tpu.memory_space<vmem>>, vector<16x16x384xbf16>
    %25 = vector.shape_cast %24 : vector<16x16x384xbf16> to vector<256x384xbf16>
    %c2_40 = arith.constant 2 : index
    %c0_41 = arith.constant 0 : index
    %c0_42 = arith.constant 0 : index
    %26 = vector.load %arg2[%c2_40, %c0_41, %c0_42] : memref<3x384x128xbf16, #tpu.memory_space<vmem>>, vector<1x384x128xbf16>
    %27 = vector.shape_cast %26 : vector<1x384x128xbf16> to vector<384x128xbf16>
    %cst_43 = arith.constant dense<0.000000e+00> : vector<256x128xf32>
    %28 = tpu.matmul %25, %27, %cst_43 {dimension_numbers = #tpu.dot_dimension_numbers<[1], [0], [0], [1], [0, 0, 1, 1], [], []>} : vector<256x384xbf16>, vector<384x128xbf16>, vector<256x128xf32> -> vector<256x128xf32>
    %29 = arith.addf %23, %28 : vector<256x128xf32>
    %c0_44 = arith.constant 0 : index
    %c0_45 = arith.constant 0 : index
    %30 = vector.load %arg8[%c0_44, %c0_45] : memref<256x128xf32, #tpu.memory_space<vmem>>, vector<256x128xf32>
    tpu.vector_store %arg8[%c0_44, %c0_45], %29 {strides = array<i32>} : memref<256x128xf32, #tpu.memory_space<vmem>>, vector<256x128xf32>,
    %c0_46 = arith.constant 0 : index
    %c0_47 = arith.constant 0 : index
    %31 = vector.load %arg8[%c0_46, %c0_47] : memref<256x128xf32, #tpu.memory_space<vmem>>, vector<256x128xf32>
    %c0_48 = arith.constant 0 : index
    %c0_49 = arith.constant 0 : index
    %32 = vector.load %arg4[%c0_48, %c0_49] : memref<1x128xf32, #tpu.memory_space<vmem>>, vector<1x128xf32>
    %33 = vector.broadcast %32 : vector<1x128xf32> to vector<256x128xf32>
    %34 = arith.addf %31, %33 : vector<256x128xf32>
    %cst_50 = arith.constant 0.000000e+00 : f32
    %35 = vector.broadcast %cst_50 : f32 to vector<256x128xf32>
    %36 = arith.maximumf %34, %35 : vector<256x128xf32>
    %37 = arith.truncf %36 : vector<256x128xf32> to vector<256x128xbf16>
    %38 = vector.shape_cast %37 : vector<256x128xbf16> to vector<16x16x128xbf16>
    %c1_51 = arith.constant 1 : index
    %c0_52 = arith.constant 0 : index
    %c128_53 = arith.constant 128 : index
    %39 = vector.load %arg7[%c1_51, %c0_52, %c128_53] : memref<18x16x384xbf16, #tpu.memory_space<vmem>>, vector<16x16x128xbf16>
    %40 = arith.extf %39 : vector<16x16x128xbf16> to vector<16x16x128xf32>
    %41 = vector.shape_cast %40 : vector<16x16x128xf32> to vector<256x128xf32>
    %c0_54 = arith.constant 0 : index
    %c0_55 = arith.constant 0 : index
    %42 = vector.load %arg5[%c0_54, %c0_55] : memref<1x128xf32, #tpu.memory_space<vmem>>, vector<1x128xf32>
    %43 = vector.broadcast %42 : vector<1x128xf32> to vector<256x128xf32>
    %44 = arith.addf %41, %43 : vector<256x128xf32>
    %c0_56 = arith.constant 0 : index
    %c0_57 = arith.constant 0 : index
    %45 = vector.load %arg8[%c0_56, %c0_57] : memref<256x128xf32, #tpu.memory_space<vmem>>, vector<256x128xf32>
    tpu.vector_store %arg8[%c0_56, %c0_57], %44 {strides = array<i32>} : memref<256x128xf32, #tpu.memory_space<vmem>>, vector<256x128xf32>,
    %46 = vector.extract_strided_slice %38 {offsets = [0, 0, 0], sizes = [16, 15, 128], strides = [1, 1, 1]} : vector<16x16x128xbf16> to vector<16x15x128xbf16>
    %c1_58 = arith.constant 1 : index
    %c1_59 = arith.constant 1 : index
    %c0_60 = arith.constant 0 : index
    %47 = vector.load %arg7[%c1_58, %c1_59, %c0_60] : memref<18x16x384xbf16, #tpu.memory_space<vmem>>, vector<16x15x128xbf16>
    tpu.vector_store %arg7[%c1_58, %c1_59, %c0_60], %46 {strides = array<i32>} : memref<18x16x384xbf16, #tpu.memory_space<vmem>>, vector<16x15x128xbf16>,
    %c1_61 = arith.constant 1 : index
    %c0_62 = arith.constant 0 : index
    %c128_63 = arith.constant 128 : index
    %48 = vector.load %arg7[%c1_61, %c0_62, %c128_63] : memref<18x16x384xbf16, #tpu.memory_space<vmem>>, vector<16x16x128xbf16>
    tpu.vector_store %arg7[%c1_61, %c0_62, %c128_63], %38 {strides = array<i32>} : memref<18x16x384xbf16, #tpu.memory_space<vmem>>, vector<16x16x128xbf16>,
    %49 = vector.extract_strided_slice %38 {offsets = [0, 1, 0], sizes = [16, 15, 128], strides = [1, 1, 1]} : vector<16x16x128xbf16> to vector<16x15x128xbf16>
    %c1_64 = arith.constant 1 : index
    %c0_65 = arith.constant 0 : index
    %c256_66 = arith.constant 256 : index
    %50 = vector.load %arg7[%c1_64, %c0_65, %c256_66] : memref<18x16x384xbf16, #tpu.memory_space<vmem>>, vector<16x15x128xbf16>
    tpu.vector_store %arg7[%c1_64, %c0_65, %c256_66], %49 {strides = array<i32>} : memref<18x16x384xbf16, #tpu.memory_space<vmem>>, vector<16x15x128xbf16>,
    %c0_67 = arith.constant 0 : index
    %c0_68 = arith.constant 0 : index
    %51 = vector.load %arg8[%c0_67, %c0_68] : memref<256x128xf32, #tpu.memory_space<vmem>>, vector<256x128xf32>
    %c0_69 = arith.constant 0 : index
    %c0_70 = arith.constant 0 : index
    %c0_71 = arith.constant 0 : index
    %52 = vector.load %arg7[%c0_69, %c0_70, %c0_71] : memref<18x16x384xbf16, #tpu.memory_space<vmem>>, vector<16x16x384xbf16>
    %53 = vector.shape_cast %52 : vector<16x16x384xbf16> to vector<256x384xbf16>
    %c0_72 = arith.constant 0 : index
    %c0_73 = arith.constant 0 : index
    %c0_74 = arith.constant 0 : index
    %54 = vector.load %arg3[%c0_72, %c0_73, %c0_74] : memref<3x384x128xbf16, #tpu.memory_space<vmem>>, vector<1x384x128xbf16>
    %55 = vector.shape_cast %54 : vector<1x384x128xbf16> to vector<384x128xbf16>
    %cst_75 = arith.constant dense<0.000000e+00> : vector<256x128xf32>
    %56 = tpu.matmul %53, %55, %cst_75 {dimension_numbers = #tpu.dot_dimension_numbers<[1], [0], [0], [1], [0, 0, 1, 1], [], []>} : vector<256x384xbf16>, vector<384x128xbf16>, vector<256x128xf32> -> vector<256x128xf32>
    %57 = arith.addf %51, %56 : vector<256x128xf32>
    %c0_76 = arith.constant 0 : index
    %c0_77 = arith.constant 0 : index
    %58 = vector.load %arg8[%c0_76, %c0_77] : memref<256x128xf32, #tpu.memory_space<vmem>>, vector<256x128xf32>
    tpu.vector_store %arg8[%c0_76, %c0_77], %57 {strides = array<i32>} : memref<256x128xf32, #tpu.memory_space<vmem>>, vector<256x128xf32>,
    %c0_78 = arith.constant 0 : index
    %c0_79 = arith.constant 0 : index
    %59 = vector.load %arg8[%c0_78, %c0_79] : memref<256x128xf32, #tpu.memory_space<vmem>>, vector<256x128xf32>
    %c1_80 = arith.constant 1 : index
    %c0_81 = arith.constant 0 : index
    %c0_82 = arith.constant 0 : index
    %60 = vector.load %arg7[%c1_80, %c0_81, %c0_82] : memref<18x16x384xbf16, #tpu.memory_space<vmem>>, vector<16x16x384xbf16>
    %61 = vector.shape_cast %60 : vector<16x16x384xbf16> to vector<256x384xbf16>
    %c1_83 = arith.constant 1 : index
    %c0_84 = arith.constant 0 : index
    %c0_85 = arith.constant 0 : index
    %62 = vector.load %arg3[%c1_83, %c0_84, %c0_85] : memref<3x384x128xbf16, #tpu.memory_space<vmem>>, vector<1x384x128xbf16>
    %63 = vector.shape_cast %62 : vector<1x384x128xbf16> to vector<384x128xbf16>
    %cst_86 = arith.constant dense<0.000000e+00> : vector<256x128xf32>
    %64 = tpu.matmul %61, %63, %cst_86 {dimension_numbers = #tpu.dot_dimension_numbers<[1], [0], [0], [1], [0, 0, 1, 1], [], []>} : vector<256x384xbf16>, vector<384x128xbf16>, vector<256x128xf32> -> vector<256x128xf32>
    %65 = arith.addf %59, %64 : vector<256x128xf32>
    %c0_87 = arith.constant 0 : index
    %c0_88 = arith.constant 0 : index
    %66 = vector.load %arg8[%c0_87, %c0_88] : memref<256x128xf32, #tpu.memory_space<vmem>>, vector<256x128xf32>
    tpu.vector_store %arg8[%c0_87, %c0_88], %65 {strides = array<i32>} : memref<256x128xf32, #tpu.memory_space<vmem>>, vector<256x128xf32>,
    %c0_89 = arith.constant 0 : index
    %c0_90 = arith.constant 0 : index
    %67 = vector.load %arg8[%c0_89, %c0_90] : memref<256x128xf32, #tpu.memory_space<vmem>>, vector<256x128xf32>
    %c2_91 = arith.constant 2 : index
    %c0_92 = arith.constant 0 : index
    %c0_93 = arith.constant 0 : index
    %68 = vector.load %arg7[%c2_91, %c0_92, %c0_93] : memref<18x16x384xbf16, #tpu.memory_space<vmem>>, vector<16x16x384xbf16>
    %69 = vector.shape_cast %68 : vector<16x16x384xbf16> to vector<256x384xbf16>
    %c2_94 = arith.constant 2 : index
    %c0_95 = arith.constant 0 : index
    %c0_96 = arith.constant 0 : index
    %70 = vector.load %arg3[%c2_94, %c0_95, %c0_96] : memref<3x384x128xbf16, #tpu.memory_space<vmem>>, vector<1x384x128xbf16>
    %71 = vector.shape_cast %70 : vector<1x384x128xbf16> to vector<384x128xbf16>
    %cst_97 = arith.constant dense<0.000000e+00> : vector<256x128xf32>
    %72 = tpu.matmul %69, %71, %cst_97 {dimension_numbers = #tpu.dot_dimension_numbers<[1], [0], [0], [1], [0, 0, 1, 1], [], []>} : vector<256x384xbf16>, vector<384x128xbf16>, vector<256x128xf32> -> vector<256x128xf32>
    %73 = arith.addf %67, %72 : vector<256x128xf32>
    %c0_98 = arith.constant 0 : index
    %c0_99 = arith.constant 0 : index
    %74 = vector.load %arg8[%c0_98, %c0_99] : memref<256x128xf32, #tpu.memory_space<vmem>>, vector<256x128xf32>
    tpu.vector_store %arg8[%c0_98, %c0_99], %73 {strides = array<i32>} : memref<256x128xf32, #tpu.memory_space<vmem>>, vector<256x128xf32>,
    %c0_100 = arith.constant 0 : index
    %c0_101 = arith.constant 0 : index
    %75 = vector.load %arg8[%c0_100, %c0_101] : memref<256x128xf32, #tpu.memory_space<vmem>>, vector<256x128xf32>
    %cst_102 = arith.constant 0.000000e+00 : f32
    %76 = vector.broadcast %cst_102 : f32 to vector<256x128xf32>
    %77 = arith.maximumf %75, %76 : vector<256x128xf32>
    %78 = arith.truncf %77 : vector<256x128xf32> to vector<256x128xbf16>
    %79 = vector.shape_cast %78 : vector<256x128xbf16> to vector<16x16x128xbf16>
    %c0_103 = arith.constant 0 : index
    %c0_104 = arith.constant 0 : index
    %c0_105 = arith.constant 0 : index
    %c0_106 = arith.constant 0 : index
    %80 = vector.load %arg6[%c0_103, %c0_104, %c0_105, %c0_106] : memref<1x16x16x128xbf16, #tpu.memory_space<vmem>>, vector<1x16x16x128xbf16>
    %81 = vector.shape_cast %80 : vector<1x16x16x128xbf16> to vector<16x16x128xbf16>
    %82 = vector.shape_cast %79 : vector<16x16x128xbf16> to vector<1x16x16x128xbf16>
    tpu.vector_store %arg6[%c0_103, %c0_104, %c0_105, %c0_106], %82 {strides = array<i32>} : memref<1x16x16x128xbf16, #tpu.memory_space<vmem>>, vector<1x16x16x128xbf16>,
    return
  }
  func.func @transform_0(%arg0: i32) -> (i32, i32, i32, i32) {
    %c0_i32 = arith.constant 0 : i32
    %c0_i32_0 = arith.constant 0 : i32
    %c0_i32_1 = arith.constant 0 : i32
    %c0_i32_2 = arith.constant 0 : i32
    return %arg0, %c0_i32, %c0_i32_0, %c0_i32_1 : i32, i32, i32, i32
  }
  func.func @transform_1(%arg0: i32) -> (i32, i32, i32) {
    %c0_i32 = arith.constant 0 : i32
    %c0_i32_0 = arith.constant 0 : i32
    %c0_i32_1 = arith.constant 0 : i32
    %c0_i32_2 = arith.constant 0 : i32
    return %c0_i32, %c0_i32_0, %c0_i32_1 : i32, i32, i32
  }
  func.func @transform_2(%arg0: i32) -> (i32, i32, i32) {
    %c0_i32 = arith.constant 0 : i32
    %c0_i32_0 = arith.constant 0 : i32
    %c0_i32_1 = arith.constant 0 : i32
    %c0_i32_2 = arith.constant 0 : i32
    return %c0_i32, %c0_i32_0, %c0_i32_1 : i32, i32, i32
  }
  func.func @transform_3(%arg0: i32) -> (i32, i32) {
    %c0_i32 = arith.constant 0 : i32
    %c0_i32_0 = arith.constant 0 : i32
    %c0_i32_1 = arith.constant 0 : i32
    return %c0_i32, %c0_i32_0 : i32, i32
  }
  func.func @transform_4(%arg0: i32) -> (i32, i32) {
    %c0_i32 = arith.constant 0 : i32
    %c0_i32_0 = arith.constant 0 : i32
    %c0_i32_1 = arith.constant 0 : i32
    return %c0_i32, %c0_i32_0 : i32, i32
  }
  func.func @transform_5(%arg0: i32) -> (i32, i32, i32, i32) {
    %c0_i32 = arith.constant 0 : i32
    %c0_i32_0 = arith.constant 0 : i32
    %c0_i32_1 = arith.constant 0 : i32
    %c0_i32_2 = arith.constant 0 : i32
    return %arg0, %c0_i32, %c0_i32_0, %c0_i32_1 : i32, i32, i32, i32
  }
}

</mosaic_0001>

<bundles_post_ra>
// kernel: tpu_custom_call.1
= control target key start
LH: loop header
LB: loop body
LE: loop exit
PB: predicated region body
PF: predicated region fallthrough
CT: control target
= control target key end

     0   :  { %10 = vsyncpa [#allocation5], 0  ;;  %s10355_s0 = inlined_call_operand.hbm [shape: bf16[2,18,18,128], index: 0, kind: input, shape index: {}]   ;;  %s10356_s1 = inlined_call_operand.hbm [shape: bf16[3,384,128], index: 1, kind: input, shape index: {}]   ;;  %s10357_s2 = inlined_call_operand.hbm [shape: bf16[3,384,128], index: 2, kind: input, shape index: {}]   ;;  %s10358_s3 = inlined_call_operand.hbm [shape: f32[1,128], index: 3, kind: input, shape index: {}]   ;;  %s10359_s4 = inlined_call_operand.hbm [shape: f32[1,128], index: 4, kind: input, shape index: {}]   ;;  %s10360_s5 = inlined_call_operand.hbm [shape: bf16[2,16,16,128], index: 5, kind: output, shape index: {}]  }
   0x1   :  { %12 = vsyncpa [#allocation5 + $0x1], 0 }
   0x2   :  { %13 = vsyncpa [#allocation8], 0 }
   0x3   :  { %14 = vsyncpa [#allocation11], 0 }
   0x4   :  { %15 = vsyncpa [#allocation6], 0 }
   0x5   :  { %17 = vsyncpa [#allocation6 + $0x1], 0  ;;  %s8459_s18 = smov 0   ;;  %s8461_s19 = smov 0  }
   0x6   :  { %s8463_s20 = smov 0   ;;  %s8465_s21 = smov 0  }
   0x7 LB: > { %s8480_s22 = sadd.s32 4294967295, %s8417_s21   ;;  %s5969_s23 = sadd.s32 4294967294, %s8417_s21   ;;  %s8417_s21 = sphi %s8465_s21, %s10590_s21   ;;  %s8413_s20 = sphi %s8463_s20, %s10589_s20   ;;  %s8409_s19 = sphi %s8461_s19, %s10588_s19   ;;  %s8405_s18 = sphi %s8459_s18, %s10587_s18  }
   0x8   : > { %p43_p0 = scmp.ne.s32.totalorder %s8409_s19, %s8405_s18  ;;  %p10361_p1 = scmp.eq.s32.totalorder %s8480_s22, 0 }
   0x9   : > { %p157_p3 = scmp.eq.s32.totalorder %s5969_s23, 1  ;;  %p5970_p5 = scmp.ge.s32.totalorder %s8417_s21, 1 }
   0xa   : > { %p8489_p4 = por %p10361_p1, %p43_p0  ;;  %p164_p7 = scmp.lt.s32.totalorder %s8417_s21, 3 }
   0xb   : > { %p8494_p6 = por %p157_p3, %p43_p0  ;;  %s8419_s27 = smov [#allocation7]  }
   0xc   : > { %s10439_s24 = scalar_select %p8489_p4, 1, 0 }
   0xd   : > { %s10440_s25 = scalar_select %p8494_p6, 1, 0 }
   0xe   : > { %p8499_p8 = pnand %p5970_p5, %p164_p7  ;;  %s176_s28 = sshll.u32 %s8419_s27, 4  ;;  %s8503_s28 = int_to_ptr.vmem [resolvable:$true] %s176_s28 }
   0xf   : > { %s8420_s30 = smov [#allocation10]   ;;  %s8421_s7 = smov [#allocation9]  }
  0x10   : > { %s10441_s26 = scalar_select %p8499_p8, 1, 0 }
  0x11   : > { %p7863_p9 = pneg %p8499_p8  ;;  %s203_s6 = sshll.u32 %s8420_s30, 4  ;;  %s8514_s6 = int_to_ptr.vmem [resolvable:$true] %s203_s6 }
  0x12   : > { %s8516_s8 = sshll.u32 %s8421_s7, 4  ;;  %s8201_s11 = scalar_lea.hbm %s10356_s1, 9216  ;;  %s190_s8 = int_to_ptr.vmem [resolvable:$true] %s8516_s8 }
  0x13   : > { %p8510_p11 = pnand %p7863_p9, %p10361_p1  ;;  %p8202_p12 = scmp.ne.s32.totalorder %s10356_s1, %s8201_s11 }
  0x14   : > { %p8208_p5 = scmp.lt.u32.totalorder %s8201_s11, %s10356_s1 }
  0x15   : > { %p8526_p13 = pneg %p8510_p11 }
  0x17   : > { %p8204_p0 = pnand %p8526_p13, %p8202_p12 }
  0x19   : > { %p8205_p3 = pneg %p8204_p0 }
  0x1b   : > { %p8210_p7 = pnand %p8208_p5, %p8205_p3 }
  0x1d   : > { %8213 = shalt.err (!%p8210_p7)
}
  0x1e   : > { %s8214_s17 = scalar_lea.vmem %s8503_s28, 9216  ;;  %p8222_p2 = scmp.lt.s32.totalorder %s8503_s28, %s8503_s28 }
  0x1f   : > { %p8215_p9 = scmp.ne.s32.totalorder %s8503_s28, %s8214_s17  ;;  %p8223_p6 = scmp.lt.s32.totalorder %s8214_s17, %s8214_s17 }
  0x21   : > { %p8217_p10 = pnand %p8215_p9, %p8526_p13  ;;  %p8224_p12 = por %p8223_p6, %p8222_p2 }
  0x23   : > { %p8218_p1 = pneg %p8217_p10 }
  0x25   : > { %p8225_p0 = pnand %p8224_p12, %p8218_p1 }
  0x27   : > { %8228 = shalt.err (!%p8225_p0)
}
  0x28   : > { %s10364_s23 = smov 64   ;;  %s8423_s27 = smov 4  }
  0x29   : > { %7866 = dma.hbm_to_vmem [thread:$0]  (!%p8510_p11), %s10356_s1, 9216, %s8503_s28, [#allocation8], %s10364_s23, %s10364_s23, %s8423_s27  }
  0x2a   : > { %s8229_s11 = scalar_lea.hbm %s10358_s3, 16 }
  0x2b   : > { %p8230_p1 = scmp.ne.s32.totalorder %s10358_s3, %s8229_s11  ;;  %p8236_p10 = scmp.lt.u32.totalorder %s8229_s11, %s10358_s3 }
  0x2d   : > { %p8232_p2 = pnand %p8230_p1, %p8526_p13 }
  0x2f   : > { %p8233_p6 = pneg %p8232_p2 }
  0x31   : > { %p8238_p3 = pnand %p8236_p10, %p8233_p6 }
  0x33   : > { %8241 = shalt.err (!%p8238_p3)
}
  0x34   : > { %s8242_s28 = scalar_lea.vmem %s8514_s6, 16  ;;  %s8249_s17 = scalar_lea.vmem %s8514_s6, 32 }
  0x35   : > { %p8243_p5 = scmp.ne.s32.totalorder %s8514_s6, %s8242_s28  ;;  %p8250_p12 = scmp.lt.s32.totalorder %s8514_s6, %s8514_s6 }
  0x36   : > { %p8251_p0 = scmp.lt.s32.totalorder %s8249_s17, %s8242_s28 }
  0x37   : > { %p8245_p7 = pnand %p8243_p5, %p8526_p13 }
  0x38   : > { %p8252_p1 = por %p8251_p0, %p8250_p12 }
  0x39   : > { %p8246_p9 = pneg %p8245_p7 }
  0x3b   : > { %p8253_p2 = pnand %p8252_p1, %p8246_p9 }
  0x3d   : > { %8256 = shalt.err (!%p8253_p2)
}
  0x3e   : > { %7872 = dma.hbm_to_vmem [thread:$0]  (!%p8510_p11), %s10358_s3, 16, %s8514_s6, [#allocation11]  }
  0x3f   : > { %s8257_s11 = scalar_lea.hbm %s10357_s2, 9216 }
  0x40   : > { %p8258_p6 = scmp.ne.s32.totalorder %s10357_s2, %s8257_s11  ;;  %p8264_p5 = scmp.lt.u32.totalorder %s8257_s11, %s10357_s2 }
  0x42   : > { %p8260_p10 = pnand %p8258_p6, %p8526_p13 }
  0x44   : > { %p8261_p3 = pneg %p8260_p10 }
  0x46   : > { %p8266_p7 = pnand %p8264_p5, %p8261_p3 }
  0x48   : > { %8269 = shalt.err (!%p8266_p7)
}
  0x49   : > { %s8270_s28 = scalar_lea.vmem %s190_s8, 9216  ;;  %p8278_p1 = scmp.lt.s32.totalorder %s190_s8, %s190_s8 }
  0x4a   : > { %p8271_p9 = scmp.ne.s32.totalorder %s190_s8, %s8270_s28  ;;  %p8279_p2 = scmp.lt.s32.totalorder %s8270_s28, %s8270_s28 }
  0x4c   : > { %p8273_p12 = pnand %p8271_p9, %p8526_p13  ;;  %p8280_p4 = por %p8279_p2, %p8278_p1 }
  0x4e   : > { %p8274_p0 = pneg %p8273_p12 }
  0x50   : > { %p8281_p8 = pnand %p8280_p4, %p8274_p0 }
  0x52   : > { %8284 = shalt.err (!%p8281_p8)
}
  0x53   : > { %7869 = dma.hbm_to_vmem [thread:$0]  (!%p8510_p11), %s10357_s2, 9216, %s190_s8, [#allocation8], %s10364_s23, %s10364_s23, %s8423_s27  }
  0x54   : > { %s8424_s30 = smov [#allocation12]   ;;  %s8285_s11 = scalar_lea.hbm %s10359_s4, 16 }
  0x55   : > { %s214_s7 = sshll.u32 %s8424_s30, 4  ;;  %p8286_p4 = scmp.ne.s32.totalorder %s10359_s4, %s8285_s11  ;;  %s215_s7 = int_to_ptr.vmem [resolvable:$true] %s214_s7 }
  0x56   : > { %p8292_p10 = scmp.lt.u32.totalorder %s8285_s11, %s10359_s4 }
  0x57   : > { %p8288_p8 = pnand %p8286_p4, %p8526_p13 }
  0x59   : > { %p8289_p6 = pneg %p8288_p8 }
  0x5b   : > { %p8294_p3 = pnand %p8292_p10, %p8289_p6 }
  0x5d   : > { %8297 = shalt.err (!%p8294_p3)
}
  0x5e   : > { %s8298_s8 = scalar_lea.vmem %s215_s7, 16  ;;  %s8305_s28 = scalar_lea.vmem %s215_s7, 32 }
  0x5f   : > { %p8299_p5 = scmp.ne.s32.totalorder %s215_s7, %s8298_s8  ;;  %p8306_p12 = scmp.lt.s32.totalorder %s215_s7, %s215_s7 }
  0x60   : > { %p8307_p0 = scmp.lt.s32.totalorder %s8305_s28, %s8298_s8 }
  0x61   : > { %p8301_p7 = pnand %p8299_p5, %p8526_p13 }
  0x62   : > { %p8308_p1 = por %p8307_p0, %p8306_p12 }
  0x63   : > { %p8302_p9 = pneg %p8301_p7 }
  0x65   : > { %p8309_p2 = pnand %p8308_p1, %p8302_p9 }
  0x67   : > { %8312 = shalt.err (!%p8309_p2)
}
  0x68   : > { %7875 = dma.hbm_to_vmem [thread:$0]  (!%p8510_p11), %s10359_s4, 16, %s215_s7, [#allocation11]  }
  0x69   : > { %s8615_s14 = sadd.s32 1, %s8417_s21   ;;  %s30_s30 = sadd.s32 1, %s8413_s20 }
  0x6a   : > { %s27_s29 = ssub.s32 %s8417_s21, %s8615_s14  ;;  %p37_p13 = scmp.ne.s32.totalorder %s8413_s20, %s8409_s19 }
  0x6b   : > { %p28_p4 = scmp.eq.s32.totalorder %s27_s29, 0  ;;  %p38_p8 = scmp.eq.s32.totalorder %s8417_s21, 0 }
  0x6c   : > { %p10444_p6 = scmp.eq.s32.totalorder %s8480_s22, 1  ;;  %p7888_p3 = scmp.lt.s32.totalorder %s8417_s21, 2 }
  0x6d   : > { %s8631_s10 = scalar_select %p28_p4, %s8413_s20, %s30_s30  }
  0x6e   : > { %p8625_p10 = por %p10444_p6, %p37_p13  ;;  %p39_p5 = por %p38_p8, %p37_p13 }
  0x6f   : > { %s225_s11 = sand.u32 1, %s8413_s20   ;;  %s7841_s7 = smul.u32 3456, %s8417_s21 }
  0x70   : > { %s7840_s12 = smul.u32 216, %s225_s11  ;;  %p8635_p11 = pnand %p7888_p3, %p39_p5 }
  0x71   : > { %s8642_s8 = scalar_lea.hbm %s10355_s0, %s7841_s7  ;;  %s8646_s17 = scalar_lea.sflag [#allocation5], %s225_s11 }
  0x72   : > { %s229_s28 = scalar_lea.vmem [#allocation4], %s7840_s12  ;;  %s8313_s30 = scalar_lea.hbm %s8642_s8, 3456 }
  0x73   : > { %s236_s6 = sshll.u32 %s229_s28, 4  ;;  %p8314_p7 = scmp.ne.s32.totalorder %s8642_s8, %s8313_s30  ;;  %s8644_s6 = int_to_ptr.vmem [resolvable:$true] %s236_s6 }
  0x74   : > { %p8315_p9 = pneg %p8635_p11  ;;  %s8318_s15 = scalar_lea.hbm %s10355_s0, 6912 }
  0x75   : > { %p8319_p1 = scmp.lt.u32.totalorder %s8642_s8, %s10355_s0  ;;  %p8320_p2 = scmp.lt.u32.totalorder %s8318_s15, %s8313_s30 }
  0x76   : > { %p8316_p12 = pnand %p8315_p9, %p8314_p7  ;;  %p8322_p4 = scmp.lt.u32.totalorder %s8313_s30, %s8642_s8 }
  0x77   : > { %p8321_p13 = por %p8320_p2, %p8319_p1 }
  0x78   : > { %p8317_p0 = pneg %p8316_p12 }
  0x79   : > { %p8323_p8 = por %p8322_p4, %p8321_p13 }
  0x7b   : > { %p8324_p6 = pnand %p8323_p8, %p8317_p0 }
  0x7d   : > { %8327 = shalt.err (!%p8324_p6)
}
  0x7e   : > { %s8328_s11 = scalar_lea.vmem %s8644_s6, 3456  ;;  %s8425_s12 = smov [#allocation4]  }
  0x7f   : > { %p8329_p3 = scmp.ne.s32.totalorder %s8644_s6, %s8328_s11  ;;  %s8333_s28 = sshll.u32 %s8425_s12, 4  ;;  %s8334_s28 = int_to_ptr.vmem [resolvable:$false] %s8333_s28 }
  0x80   : > { %s8335_s23 = scalar_lea.vmem %s8334_s28, 6912  ;;  %p8336_p12 = scmp.lt.s32.totalorder %s8644_s6, %s8334_s28 }
  0x81   : > { %p8331_p5 = pnand %p8329_p3, %p8315_p9  ;;  %p8337_p1 = scmp.lt.s32.totalorder %s8335_s23, %s8328_s11 }
  0x83   : > { %p8332_p7 = pneg %p8331_p5  ;;  %p8338_p2 = por %p8337_p1, %p8336_p12 }
  0x85   : > { %p8339_p13 = pnand %p8338_p2, %p8332_p7 }
  0x87   : > { %8342 = shalt.err (!%p8339_p13)
}
  0x88   : > { %s10447_s30 = smov 64   ;;  %p10448_p9 = scmp.ne.s32.totalorder %s10441_s26, 0 }
  0x89   : > { %7879 = dma.hbm_to_vmem [thread:$0]  (!%p8635_p11), %s8642_s8, 3456, %s8644_s6, %s8646_s17, %s10447_s30, %s10447_s30, %s8423_s27  }
  0x8a   : > { %248 = sbr.rel (%p10448_p9) target bundleno = 1221 (0x4c5), region = 40 }
  0x91   : > { %s8680_s29 = sand.u32 1, %s8409_s19   ;;  %p10449_p0 = scmp.ne.s32.totalorder %s10439_s24, 0 }
  0x92   : > { %s7842_s7 = smul.u32 216, %s8680_s29  ;;  %s251_s15 = scalar_lea.sflag [#allocation5], %s8680_s29 }
  0x94   : > { %s8684_s16 = scalar_lea.vmem [#allocation4], %s7842_s7 }
  0x95   : > { %8388 = dma.done.wait (%p10449_p0), %s251_s15, 3456  }
  0x96   : > { %8390 = vsyncadd (%p10449_p0), %s251_s15, 4294963840  ;;  %p10450_p11 = scmp.eq.s32.totalorder %s8480_s22, 0 }
  0x98   : > { %8392 = dma.done.wait (%p10450_p11), [#allocation8], 18432   ;;  %p10451_p4 = pmov %p10450_p11 }
  0x9a   : > { %8394 = vsyncadd (%p10451_p4), [#allocation8], 4294948864  ;;  %p10452_p8 = pmov %p10451_p4 }
  0x9b   : > { %p10453_p6 = pmov %p10451_p4 }
  0x9c   : > { %8396 = dma.done.wait (%p10452_p8), [#allocation11], 32  }
  0x9d   : > { %8398 = vsyncadd (%p10453_p6), [#allocation11], 4294967264  ;;  %v7934_v0 = vld [vmem:[#allocation7 + $0x40] sm:$0xff]   ;;  %v7938_v4 = vld [vmem:[#allocation7 + $0x48] sm:$0xff]   ;;  %vm658_vm0 = vsmask.f32 7424 }
  0x9e   : > { %v7935_v1 = vld [vmem:[#allocation7 + $0x100] sm:$0xff]   ;;  %6384 = vmatprep.subr.bf16.mxu0 %v7934_v0  ;;  %v7939_v5 = vld [vmem:[#allocation7 + $0x108] sm:$0xff]   ;;  %v7942_v8 = vld [vmem:[#allocation7 + $0x50] sm:$0xff]   ;;  %vm1109_vm1 = vcmask 1046528   ;;  %vm3480_vm2 = vcmask 1047552   ;;  %s5982_s24 = sshll.u32 %s8680_s29, 7 }
  0x9f   : > { %v7936_v2 = vld [vmem:[#allocation7] sm:$0xff]   ;;  %6520 = vmatprep.subr.bf16.mxu1 %v7935_v1  ;;  %v7940_v6 = vld [vmem:[#allocation7 + $0x8] sm:$0xff]   ;;  %v7943_v9 = vld [vmem:[#allocation7 + $0x110] sm:$0xff]   ;;  %vm3481_vm3 = vsmask.f32 7938  ;;  %s10258_s26 = scalar_lea.vmem [#allocation13], %s5982_s24 }
  0xa0   : > { %v7937_v3 = vld [vmem:[#allocation7 + $0xc0] sm:$0xff]   ;;  %6385 = vmatpush3.bf16.msra.mxu0 %v7936_v2  ;;  %v7941_v7 = vld [vmem:[#allocation7 + $0xc8] sm:$0xff]   ;;  %v7944_v10 = vld [vmem:[#allocation7 + $0x10] sm:$0xff]   ;;  %s6288_s27 = sshll.u32 %s8480_s22, 11  ;;  %s5858_s13 = sshll.u32 %s10258_s26, 4  ;;  %s10309_s13 = int_to_ptr.vmem [resolvable:$true] %s5858_s13 }
  0xa1   : > { %6521 = vmatpush3.bf16.msra.mxu1 %v7937_v3  ;;  %6386 = vmatprep.subr.bf16.mxu0 %v7938_v4  ;;  %v7945_v11 = vld [vmem:[#allocation7 + $0xd0] sm:$0xff]   ;;  %v7946_v12 = vld [vmem:[#allocation7 + $0x58] sm:$0xff]   ;;  %v7950_v16 = vld [vmem:[#allocation7 + $0x60] sm:$0xff]   ;;  %s10307_s17 = scalar_lea.hbm %s10360_s5, %s6288_s27  ;;  %s5845_s22 = scalar_lea.sflag [#allocation6], %s8680_s29 }
  0xa2   : > { %6522 = vmatprep.subr.bf16.mxu1 %v7939_v5  ;;  %v7947_v13 = vld [vmem:[#allocation7 + $0x118] sm:$0xff]   ;;  %v7951_v17 = vld [vmem:[#allocation7 + $0x120] sm:$0xff]   ;;  %v7954_v20 = vld [vmem:[#allocation7 + $0x68] sm:$0xff]   ;;  %s8343_s11 = scalar_lea.vmem %s10309_s13, 2048  ;;  %s8426_s12 = smov [#allocation13]  }
  0xa3   : > { %v7948_v14 = vld [vmem:[#allocation7 + $0x18] sm:$0xff]   ;;  %v7952_v18 = vld [vmem:[#allocation7 + $0x20] sm:$0xff]   ;;  %v7955_v21 = vld [vmem:[#allocation7 + $0x128] sm:$0xff]   ;;  %p8344_p3 = scmp.ne.s32.totalorder %s10309_s13, %s8343_s11  ;;  %s8347_s28 = sshll.u32 %s8426_s12, 4  ;;  %s8348_s28 = int_to_ptr.vmem [resolvable:$false] %s8347_s28 }
  0xa4   : > { %6387 = vmatpush3.bf16.msra.mxu0 %v7940_v6  ;;  %v7949_v15 = vld [vmem:[#allocation7 + $0xd8] sm:$0xff]   ;;  %v7953_v19 = vld [vmem:[#allocation7 + $0xe0] sm:$0xff]   ;;  %v7956_v22 = vld [vmem:[#allocation7 + $0x28] sm:$0xff]   ;;  %s8349_s23 = scalar_lea.vmem %s8348_s28, 4096  ;;  %p8350_p12 = scmp.lt.s32.totalorder %s10309_s13, %s8348_s28 }
  0xa5   : > { %6523 = vmatpush3.bf16.msra.mxu1 %v7941_v7  ;;  %6388 = vmatprep.subr.bf16.mxu0 %v7942_v8  ;;  %v7957_v23 = vld [vmem:[#allocation7 + $0xe8] sm:$0xff]   ;;  %v7958_v24 = vld [vmem:[#allocation7 + $0x70] sm:$0xff]   ;;  %v7962_v28 = vld [vmem:[#allocation7 + $0x78] sm:$0xff]   ;;  %p8345_p5 = pnand %p8344_p3, %p8625_p10  ;;  %p8351_p1 = scmp.lt.s32.totalorder %s8349_s23, %s8343_s11 }
  0xa6   : > { %6524 = vmatprep.subr.bf16.mxu1 %v7943_v9  ;;  %v7959_v25 = vld [vmem:[#allocation7 + $0x130] sm:$0xff]   ;;  %v7963_v29 = vld [vmem:[#allocation7 + $0x138] sm:$0xff]   ;;  %v7971_v46 = vld [vmem:[#allocation7 + $0x80] sm:$0xff]  }
  0xa7   : > { %v7960_v26 = vld [vmem:[#allocation7 + $0x30] sm:$0xff]   ;;  %v7964_v30 = vld [vmem:[#allocation7 + $0x38] sm:$0xff]   ;;  %v7973_v51 = vld [vmem:[%s8684_s16 + $0x18] sm:$0xff]   ;;  %p8346_p7 = pneg %p8345_p5  ;;  %p8352_p2 = por %p8351_p1, %p8350_p12 }
  0xa8   : > { %6389 = vmatpush3.bf16.msra.mxu0 %v7944_v10  ;;  %v7961_v27 = vld [vmem:[#allocation7 + $0xf0] sm:$0xff]   ;;  %v7965_v31 = vld [vmem:[#allocation7 + $0xf8] sm:$0xff]   ;;  %v684_v55 = vshrl.u32 %v7973_v51, 16  ;;  %v686_v56 = vshll.u32 %v7973_v51, 16  ;;  %v7978_v0 = vld [vmem:[#allocation7 + $0x88] sm:$0xff]  }
  0xa9   : > { %6525 = vmatpush3.bf16.msra.mxu1 %v7945_v11  ;;  %6390 = vmatprep.subr.bf16.mxu0 %v7946_v12  ;;  %v7966_v32 = vld [vmem:[%s8684_s16] sm:$0xff]   ;;  %v7967_v33 = vld [vmem:[%s8684_s16 + $0x8] ss:$0 sps:$4 sm:$0x11]   ;;  %v7968_v34 = vld [vmem:[%s8684_s16 + $0xc] sm:$0xff]   ;;  %p8353_p13 = pnand %p8352_p2, %p8346_p7 }
  0xaa   : > { %6526 = vmatprep.subr.bf16.mxu1 %v7947_v13  ;;  %v660_v35 = vshrl.u32 %v7966_v32, 16  ;;  %v662_v36 = vshll.u32 %v7966_v32, 16  ;;  %v667_v37 = vshll.u32 %v7967_v33, 16  ;;  %v7969_v38 = vld [vmem:[%s8684_s16 + $0x14] ss:$0 sps:$4 sm:$0x11]   ;;  %vm9432_vm4 = vmand %vm3480_vm2, %vm3481_vm3 }
  0xab   : > { %v672_v39 = vshrl.u32 %v7968_v34, 16  ;;  %v674_v40 = vshll.u32 %v7968_v34, 16  ;;  %v679_v43 = vshll.u32 %v7969_v38, 16  ;;  %v7970_v44 = vld [vmem:[%s8684_s16] sm:$0xff]   ;;  %v7972_v49 = vld [vmem:[%s8684_s16 + $0xc] sm:$0xff]   ;;  %v688_v59 = vrot.slane %v686_v56, 1  ;;  %vm9441_vm5 = vmand %vm3480_vm2, %vm658_vm0 }
  0xac   : > { %6391 = vmatpush3.bf16.msra.mxu0 %v7948_v14  ;;  %v664_v41 = vrot.slane %v662_v36, 1  ;;  %v669_v42 = vrot.slane %v667_v37, 1  ;;  %v7974_v53 = vld [vmem:[%s8684_s16 + $0x20] ss:$0 sps:$4 sm:$0x11]   ;;  %v7976_v58 = vld [vmem:[%s8684_s16 + $0x24] sm:$0xff]  }
  0xad   : > { %6527 = vmatpush3.bf16.msra.mxu1 %v7949_v15  ;;  %6392 = vmatprep.subr.bf16.mxu0 %v7950_v16  ;;  %v676_v45 = vrot.slane %v674_v40, 1  ;;  %v681_v48 = vrot.slane %v679_v43, 1  ;;  %v691_v57 = vshll.u32 %v7974_v53, 16  ;;  %v7977_v60 = vld [vmem:[%s8684_s16 + $0x2c] ss:$0 sps:$4 sm:$0x11]   ;;  %v689_v1 = vor.u32 %v688_v59, %v684_v55 }
  0xae   : > { %6528 = vmatprep.subr.bf16.mxu1 %v7951_v17  ;;  %v665_v47 = vor.u32 %v664_v41, %v660_v35  ;;  %v696_v62 = vshrl.u32 %v7976_v58, 16  ;;  %v698_v63 = vshll.u32 %v7976_v58, 16  ;;  %v7975_v2 = vld [vmem:[%s8684_s16 + $0x18] sm:$0xff]   ;;  %v703_v3 = vshll.u32 %v7977_v60, 16  ;;  %v7980_v5 = vld [vmem:[%s8684_s16 + $0x30] sm:$0xff]   ;;  %v7985_v17 = vld [vmem:[#allocation7 + $0x90] sm:$0xff]  }
  0xaf   : > { %v677_v50 = vor.u32 %v676_v45, %v672_v39  ;;  %v693_v61 = vrot.slane %v691_v57, 1  ;;  %v7981_v8 = vld [vmem:[%s8684_s16 + $0x38] ss:$0 sps:$4 sm:$0x11]   ;;  %v710_v10 = vshll.u32 %v7980_v5, 16  ;;  %v708_v11 = vshrl.u32 %v7980_v5, 16 }
  0xb0   : > { %6393 = vmatpush3.bf16.msra.mxu0 %v7952_v18  ;;  %v8706_v52 = vsel %vm658_vm0, %v665_v47, %v669_v42  ;;  %v700_v4 = vrot.slane %v698_v63, 1  ;;  %v705_v7 = vrot.slane %v703_v3, 1  ;;  %v715_v12 = vshll.u32 %v7981_v8, 16  ;;  %v7983_v15 = vld [vmem:[%s8684_s16 + $0x3c] sm:$0xff]   ;;  %v7982_v32 = vld [vmem:[%s8684_s16 + $0x30] sm:$0xff]   ;;  %v7989_v58 = vld [vmem:[%s8684_s16 + $0x48] sm:$0xff]  }
  0xb1   : > { %6529 = vmatpush3.bf16.msra.mxu1 %v7953_v19  ;;  %6394 = vmatprep.subr.bf16.mxu0 %v7954_v20  ;;  %v8711_v54 = vsel %vm658_vm0, %v677_v50, %v681_v48  ;;  %v8720_v6 = vsel %vm658_vm0, %v689_v1, %v693_v61  ;;  %v712_v14 = vrot.slane %v710_v10, 1  ;;  %v7984_v16 = vld [vmem:[%s8684_s16 + $0x44] ss:$0 sps:$4 sm:$0x11]   ;;  %v722_v20 = vshll.u32 %v7983_v15, 16  ;;  %v7990_v36 = vld [vmem:[%s8684_s16 + $0x54] sm:$0xff]  }
  0xb2   : > { %6530 = vmatprep.subr.bf16.mxu1 %v7955_v21  ;;  %1472 = vmatprep.mubr.bf16.mxu0 %v8706_v52  ;;  %10454 = vst [vmem:[#allocation18_spill] sm:$0xff] %v8711_v54  ;;  %10455 = vst [vmem:[#allocation19_spill] sm:$0xff] %v8720_v6  ;;  %v701_v9 = vor.u32 %v700_v4, %v696_v62  ;;  %v717_v19 = vrot.slane %v715_v12, 1  ;;  %v7979_v21 = vld [vmem:[%s8684_s16 + $0x24] sm:$0xff]   ;;  %v7997_v37 = vld [vmem:[#allocation7 + $0x140] sm:$0xff]   ;;  %v746_v43 = vshll.u32 %v7990_v36, 16 }
  0xb3   : > { %2100 = vmatprep.mubr.bf16.mxu1 %v8711_v54  ;;  %v713_v18 = vor.u32 %v712_v14, %v708_v11  ;;  %v8000_v39 = vld [vmem:[#allocation7 + $0xa0] sm:$0xff]   ;;  %v744_v45 = vshrl.u32 %v7990_v36, 16  ;;  %v8005_v50 = vld [vmem:[#allocation7 + $0x148] sm:$0xff]   ;;  %v7995_v51 = vld [vmem:[%s8684_s16 + $0x68] ss:$0 sps:$4 sm:$0x11]  }
  0xb4   : > { %6395 = vmatpush3.bf16.msra.mxu0 %v7956_v22  ;;  %v8725_v13 = vsel %vm658_vm0, %v701_v9, %v705_v7  ;;  %v727_v22 = vshll.u32 %v7984_v16, 16  ;;  %v7991_v40 = vld [vmem:[%s8684_s16 + $0x5c] ss:$0 sps:$4 sm:$0x11]   ;;  %v748_v47 = vrot.slane %v746_v43, 1  ;;  %v7998_v60 = vld [vmem:[%s8684_s16 + $0x6c] sm:$0xff]  }
  0xb5   : > { %6531 = vmatpush3.bf16.msra.mxu1 %v7957_v23  ;;  %6396 = vmatprep.subr.bf16.mxu0 %v7958_v24  ;;  %10456 = vst [vmem:[#allocation20_spill] sm:$0xff] %v8725_v13  ;;  %v7987_v23 = vld [vmem:[%s8684_s16 + $0x48] sm:$0xff]   ;;  %v8734_v24 = vsel %vm658_vm0, %v713_v18, %v717_v19  ;;  %v751_v48 = vshll.u32 %v7991_v40, 16  ;;  %v8008_v53 = vld [vmem:[#allocation7 + $0xa8] sm:$0xff]   ;;  %v763_v63 = vshll.u32 %v7995_v51, 16  ;;  %v768_v8 = vshrl.u32 %v7998_v60, 16 }
  0xb6   : > { %6532 = vmatprep.subr.bf16.mxu1 %v7959_v25  ;;  %10457 = vst [vmem:[#allocation21_spill] sm:$0xff] %v8734_v24  ;;  %v720_v25 = vshrl.u32 %v7983_v15, 16  ;;  %v732_v33 = vshrl.u32 %v7987_v23, 16  ;;  %v749_v55 = vor.u32 %v748_v47, %v744_v45  ;;  %v7999_v1 = vld [vmem:[%s8684_s16 + $0x74] ss:$0 sps:$4 sm:$0x11]  }
  0xb7   : > { %v753_v56 = vrot.slane %v751_v48, 1  ;;  %v765_v4 = vrot.slane %v763_v63, 1  ;;  %v8016_v5 = vld [vmem:[#allocation7 + $0xb0] sm:$0xff]   ;;  %v7993_v7 = vld [vmem:[%s8684_s16 + $0x54] sm:$0xff]   ;;  %v775_v10 = vshll.u32 %v7999_v1, 16 }
  0xb8   : > { %6397 = vmatpush3.bf16.msra.mxu0 %v7960_v26  ;;  %v724_v26 = vrot.slane %v722_v20, 1  ;;  %v8002_v11 = vld [vmem:[%s8684_s16 + $0x78] sm:$0xff]   ;;  %v8021_v14 = vld [vmem:[#allocation7 + $0x158] sm:$0xff]   ;;  %v8003_v16 = vld [vmem:[%s8684_s16 + $0x80] ss:$0 sps:$4 sm:$0x11]  }
  0xb9   : > { %6533 = vmatpush3.bf16.msra.mxu1 %v7961_v27  ;;  %6398 = vmatprep.subr.bf16.mxu0 %v7962_v28  ;;  %v729_v27 = vrot.slane %v727_v22, 1  ;;  %v7992_v28 = vld [vmem:[#allocation7 + $0x98] sm:$0xff]   ;;  %v8758_v61 = vsel %vm658_vm0, %v749_v55, %v753_v56  ;;  %v777_v15 = vrot.slane %v775_v10, 1  ;;  %v782_v18 = vshll.u32 %v8002_v11, 16  ;;  %v7996_v20 = vld [vmem:[%s8684_s16 + $0x60] sm:$0xff]   ;;  %v8004_v48 = vld [vmem:[%s8684_s16 + $0x78] sm:$0xff]  }
  0xba   : > { %6534 = vmatprep.subr.bf16.mxu1 %v7963_v29  ;;  %v7988_v29 = vld [vmem:[%s8684_s16 + $0x50] ss:$0 sps:$4 sm:$0x11]   ;;  %10460 = vst [vmem:[#allocation24_spill] sm:$0xff] %v8758_v61  ;;  %v8006_v22 = vld [vmem:[%s8684_s16 + $0x84] sm:$0xff]  }
  0xbb   : > { %v739_v35 = vshll.u32 %v7988_v29, 16  ;;  %v8024_v19 = vld [vmem:[#allocation7 + $0xb8] sm:$0xff]   ;;  %v792_v36 = vshrl.u32 %v8006_v22, 16  ;;  %v8011_v45 = vld [vmem:[%s8684_s16 + $0x98] ss:$0 sps:$4 sm:$0x11]  }
  0xbc   : > { %6399 = vmatpush3.bf16.msra.mxu0 %v7964_v30  ;;  %v734_v30 = vshll.u32 %v7987_v23, 16  ;;  %v787_v23 = vshll.u32 %v8003_v16, 16  ;;  %v8007_v29 = vld [vmem:[%s8684_s16 + $0x8c] ss:$0 sps:$4 sm:$0x11]   ;;  %v811_v55 = vshll.u32 %v8011_v45, 16 }
  0xbd   : > { %6535 = vmatpush3.bf16.msra.mxu1 %v7965_v31  ;;  %7200 = vmatprep.subr.bf16.mxu0 %v7971_v46  ;;  %v725_v31 = vor.u32 %v724_v26, %v720_v25  ;;  %v741_v42 = vrot.slane %v739_v35, 1  ;;  %v8026_v25 = vld [vmem:[#allocation7 + $0x160] sm:$0xff]   ;;  %v8015_v56 = vld [vmem:[%s8684_s16 + $0xa4] ss:$0 sps:$4 sm:$0x11]  }
  0xbe   : > { %v736_v34 = vrot.slane %v734_v30, 1  ;;  %7248 = vmatprep.subr.bf16.mxu1 %v7997_v37  ;;  %v789_v30 = vrot.slane %v787_v23, 1  ;;  %v8001_v35 = vld [vmem:[%s8684_s16 + $0x6c] sm:$0xff]   ;;  %v8009_v63 = vld [vmem:[%s8684_s16 + $0x84] sm:$0xff]   ;;  %v823_v1 = vshll.u32 %v8015_v56, 16 }
  0xbf   : > { %1473 = vmatmul.mubr.bf16.vlgmr.msra.gmra.mrb[0].mxu0 %v7970_v44  ;;  %v8742_v38 = vsel %vm658_vm0, %v725_v31, %v729_v27  ;;  %v7986_v44 = vld [vmem:[%s8684_s16 + $0x3c] sm:$0xff]   ;;  %v784_v27 = vrot.slane %v782_v18, 1  ;;  %v794_v31 = vshll.u32 %v8006_v22, 16  ;;  %v8012_v18 = vld [vmem:[%s8684_s16 + $0x90] sm:$0xff]  }
  0xc0   : > { %2101 = vmatmul.mubr.bf16.vlgmr.msra.gmra.mrb[0].mxu1 %v7972_v49  ;;  %7201 = vmatpush3.bf16.msra.mxu0 %v7971_v46  ;;  %10458 = vst [vmem:[#allocation22_spill] sm:$0xff] %v8742_v38  ;;  %v737_v41 = vor.u32 %v736_v34, %v732_v33  ;;  %v8039_v34 = vld [vmem:[#allocation7 + $0x1c0] sm:$0xff]   ;;  %v8809_v10 = vld [vmem:[%s8684_s16 + $0xc0] sm:$0xff]  }
  0xc1   : > { %1480 = vmatprep.mubr.bf16.mxu0 %v8711_v54  ;;  %7202 = vmatprep.subr.bf16.mxu0 %v7978_v0  ;;  %v8843_v45 = vld [vmem:[%s8684_s16 + $0x20] ss:$0 sps:$4 sm:$0x11]   ;;  %v8858_v56 = vld [vmem:[%s8684_s16 + $0x38] ss:$0 sps:$4 sm:$0x11]  }
  0xc2   : > { %2108 = vmatprep.mubr.bf16.mxu1 %v8720_v6  ;;  %7249 = vmatpush3.bf16.msra.mxu1 %v7997_v37  ;;  %v8749_v46 = vsel %vm658_vm0, %v737_v41, %v741_v42  ;;  %v799_v37 = vshll.u32 %v8007_v29, 16  ;;  %v796_v41 = vrot.slane %v794_v31, 1  ;;  %v8032_v42 = vld [vmem:[#allocation7 + $0x178] sm:$0xff]   ;;  %v852_v31 = vshrl.u32 %v8809_v10, 16 }
  0xc3   : > { %10459 = vst [vmem:[#allocation23_spill] sm:$0xff] %v8749_v46  ;;  %7250 = vmatprep.subr.bf16.mxu1 %v8005_v50  ;;  %v8105_v54 = vld [vmem:[#allocation9 + $0x18] sm:$0xff]  }
  0xc4   : > { %7203 = vmatpush3.bf16.msra.mxu0 %v7978_v0  ;;  %v8013_v0 = vld [vmem:[#allocation7 + $0x150] sm:$0xff]   ;;  %v801_v43 = vrot.slane %v799_v37, 1 }
  0xc5   : > { %7204 = vmatprep.subr.bf16.mxu0 %v7985_v17 }
  0xc6   : > { %7251 = vmatpush3.bf16.msra.mxu1 %v8005_v50 }
  0xc7   : > { %1481 = vmatmul.mubr.bf16.gmra.mrb[4].mxu0 %v7972_v49  ;;  %v7994_v49 = vld [vmem:[%s8684_s16 + $0x60] sm:$0xff]   ;;  %7252 = vmatprep.subr.bf16.mxu1 %v8013_v0 }
  0xc8   : > { %2109 = vmatmul.mubr.bf16.gmra.mrb[4].mxu1 %v7975_v2  ;;  %1488 = vmatprep.mubr.bf16.mxu0 %v8720_v6  ;;  %v758_v57 = vshll.u32 %v7994_v49, 16  ;;  %v756_v59 = vshrl.u32 %v7994_v49, 16  ;;  %v8014_v49 = vld [vmem:[%s8684_s16 + $0x9c] sm:$0xff]  }
  0xc9   : > { %2116 = vmatprep.mubr.bf16.mxu1 %v8725_v13  ;;  %7205 = vmatpush3.bf16.msra.mxu0 %v7985_v17 }
  0xca   : > { %7206 = vmatprep.subr.bf16.mxu0 %v7992_v28  ;;  %v760_v62 = vrot.slane %v758_v57, 1  ;;  %7253 = vmatpush3.bf16.msra.mxu1 %v8013_v0  ;;  %v818_v57 = vshll.u32 %v8014_v49, 16  ;;  %v816_v0 = vshrl.u32 %v8014_v49, 16  ;;  %v8853_v49 = vld [vmem:[%s8684_s16 + $0x30] sm:$0xfe]  }
  0xcb   : > { %7254 = vmatprep.subr.bf16.mxu1 %v8021_v14 }
  0xcc   : > { %v761_v3 = vor.u32 %v760_v62, %v756_v59  ;;  %v8796_v62 = vld [vmem:[#allocation7 + $0x200] sm:$0xff]  }
  0xcd   : > { %7207 = vmatpush3.bf16.msra.mxu0 %v7992_v28  ;;  %v8027_v28 = vld [vmem:[#allocation7 + $0x168] sm:$0xff]  }
  0xce   : > { %7208 = vmatprep.subr.bf16.mxu0 %v8000_v39  ;;  %v8766_v12 = vsel %vm658_vm0, %v761_v3, %v765_v4  ;;  %7255 = vmatpush3.bf16.msra.mxu1 %v8021_v14  ;;  %v8019_v3 = vld [vmem:[%s8684_s16 + $0xb0] ss:$0 sps:$4 sm:$0x11]   ;;  %v825_v14 = vrot.slane %v823_v1, 1 }
  0xcf   : > { %1489 = vmatmul.mubr.bf16.gmra.mrb[8].mxu0 %v7975_v2  ;;  %v770_v2 = vshll.u32 %v7998_v60, 16  ;;  %10461 = vst [vmem:[#allocation25_spill] sm:$0xff] %v8766_v12  ;;  %7256 = vmatprep.subr.bf16.mxu1 %v8026_v25  ;;  %v813_v60 = vrot.slane %v811_v55, 1 }
  0xd0   : > { %2117 = vmatmul.mubr.bf16.gmra.mrb[8].mxu1 %v7979_v21  ;;  %1496 = vmatprep.mubr.bf16.mxu0 %v8725_v13 }
  0xd1   : > { %2124 = vmatprep.mubr.bf16.mxu1 %v8734_v24  ;;  %7209 = vmatpush3.bf16.msra.mxu0 %v8000_v39  ;;  %v772_v9 = vrot.slane %v770_v2, 1  ;;  %v8010_v39 = vld [vmem:[%s8684_s16 + $0x90] sm:$0xff]   ;;  %v820_v2 = vrot.slane %v818_v57, 1  ;;  %v8861_v57 = vld [vmem:[%s8684_s16 + $0x3c] sm:$0xfe]  }
  0xd2   : > { %7210 = vmatprep.subr.bf16.mxu0 %v8008_v53  ;;  %7257 = vmatpush3.bf16.msra.mxu1 %v8026_v25  ;;  %v806_v47 = vshll.u32 %v8010_v39, 16  ;;  %v804_v51 = vshrl.u32 %v8010_v39, 16  ;;  %v8818_v25 = vld [vmem:[%s8684_s16] sm:$0xfe]   ;;  %v8829_v39 = vld [vmem:[%s8684_s16 + $0xc] sm:$0xfe]  }
  0xd3   : > { %v773_v17 = vor.u32 %v772_v9, %v768_v8  ;;  %7258 = vmatprep.subr.bf16.mxu1 %v8027_v28  ;;  %v8023_v8 = vld [vmem:[%s8684_s16 + $0xbc] ss:$0 sps:$4 sm:$0x11]   ;;  %v8029_v9 = vld [vmem:[%s8684_s16 + $0xc8] ss:$0 sps:$4 sm:$0x11]  }
  0xd4   : > { %v859_v22 = vshll.u32 %v8029_v9, 16  ;;  %v1110_v37 = vrot.slane %v8818_v25, 1  ;;  %v1113_v55 = vrot.slane %v8829_v39, 1  ;;  %v8882_v9 = vld [vmem:[%s8684_s16 + $0x50] ss:$0 sps:$4 sm:$0x11]  }
  0xd5   : > { %7211 = vmatpush3.bf16.msra.mxu0 %v8008_v53  ;;  %v8774_v26 = vsel %vm658_vm0, %v773_v17, %v777_v15  ;;  %v808_v53 = vrot.slane %v806_v47, 1  ;;  %v835_v17 = vshll.u32 %v8019_v3, 16  ;;  %v8847_v47 = vld [vmem:[%s8684_s16 + $0x24] sm:$0xfe]   ;;  %v1122_v3 = vrot.slane %v8853_v49, 1  ;;  %v8063_v49 = vld [vmem:[#allocation7 + $0x1e0] sm:$0xff]  }
  0xd6   : > { %7212 = vmatprep.subr.bf16.mxu0 %v8016_v5  ;;  %10462 = vst [vmem:[#allocation26_spill] sm:$0xff] %v8774_v26  ;;  %7259 = vmatpush3.bf16.msra.mxu1 %v8027_v28  ;;  %v1119_v1 = vrot.slane %v8847_v47, 1  ;;  %v8030_v39 = vld [vmem:[%s8684_s16 + $0xc0] sm:$0xff]  }
  0xd7   : > { %1497 = vmatmul.mubr.bf16.gmra.mrb[12].mxu0 %v7979_v21  ;;  %v780_v21 = vshrl.u32 %v8002_v11, 16  ;;  %v809_v59 = vor.u32 %v808_v53, %v804_v51  ;;  %v821_v11 = vor.u32 %v820_v2, %v816_v0  ;;  %v8020_v51 = vld [vmem:[%s8684_s16 + $0xa8] sm:$0xff]   ;;  %v1117_v0 = vrot.slane %v8843_v45, 1  ;;  %v8936_v45 = vld [vmem:[%s8684_s16 + $0xa4] ss:$0 sps:$4 sm:$0x11]  }
  0xd8   : > { %2125 = vmatmul.mubr.bf16.gmra.mrb[12].mxu1 %v7982_v32  ;;  %1504 = vmatprep.mubr.bf16.mxu0 %v8734_v24  ;;  %v8939_v47 = vld [vmem:[%s8684_s16 + $0x9c] sm:$0xfe]  }
  0xd9   : > { %2132 = vmatprep.mubr.bf16.mxu1 %v8742_v38  ;;  %7213 = vmatpush3.bf16.msra.mxu0 %v8016_v5  ;;  %v785_v33 = vor.u32 %v784_v27, %v780_v21  ;;  %v8802_v5 = vsel %vm658_vm0, %v809_v59, %v813_v60  ;;  %v854_v21 = vshll.u32 %v8809_v10, 16  ;;  %v8815_v23 = vsel %vm658_vm0, %v821_v11, %v825_v14  ;;  %v8887_v14 = vld [vmem:[%s8684_s16 + $0x54] sm:$0xfe]  }
  0xda   : > { %7214 = vmatprep.subr.bf16.mxu0 %v8024_v19  ;;  %10465 = vst [vmem:[#allocation29_spill] sm:$0xff] %v8802_v5  ;;  %10466 = vst [vmem:[#allocation30_spill] sm:$0xff] %v8815_v23  ;;  %v837_v27 = vrot.slane %v835_v17, 1  ;;  %v8894_v17 = vld [vmem:[%s8684_s16 + $0x60] sm:$0xfe]  }
  0xdb   : > { %v8782_v40 = vsel %vm658_vm0, %v785_v33, %v789_v30 }
  0xdc   : > { %10463 = vst [vmem:[#allocation27_spill] sm:$0xff] %v8782_v40 }
  0xdd   : > { %7215 = vmatpush3.bf16.msra.mxu0 %v8024_v19 }
  0xde   : > { %6656 = vmatprep.subr.bf16.mxu0 %v8039_v34  ;;  %v856_v34 = vrot.slane %v854_v21, 1  ;;  %v1129_v21 = vrot.slane %v8882_v9, 1  ;;  %v8088_v9 = vld [vmem:[#allocation7 + $0x230] sm:$0xff]  }
  0xdf   : > { %1505 = vmatmul.mubr.bf16.gmra.mrb[16].mxu0 %v7982_v32  ;;  %v8031_v32 = vld [vmem:[#allocation7 + $0x170] sm:$0xff]  }
  0xe0   : > { %2133 = vmatmul.mubr.bf16.gmra.mrb[16].mxu1 %v7986_v44  ;;  %1512 = vmatprep.mubr.bf16.mxu0 %v8742_v38  ;;  %v857_v10 = vor.u32 %v856_v34, %v852_v31  ;;  %v8915_v31 = vld [vmem:[%s8684_s16 + $0x78] sm:$0xfe]   ;;  %v8924_v34 = vld [vmem:[%s8684_s16 + $0x8c] ss:$0 sps:$4 sm:$0x11]  }
  0xe1   : > { %2140 = vmatprep.mubr.bf16.mxu1 %v8749_v46  ;;  %7260 = vmatprep.subr.bf16.mxu1 %v8031_v32 }
  0xe2   : > { %7261 = vmatpush3.bf16.msra.mxu1 %v8031_v32  ;;  %v8017_v32 = vld [vmem:[%s8684_s16 + $0x9c] sm:$0xff]  }
  0xe3   : > { %7262 = vmatprep.subr.bf16.mxu1 %v8032_v42 }
  0xe6   : > { %7263 = vmatpush3.bf16.msra.mxu1 %v8032_v42 }
  0xe7   : > { %1513 = vmatmul.mubr.bf16.gmra.mrb[20].mxu0 %v7986_v44  ;;  %v797_v44 = vor.u32 %v796_v41, %v792_v36  ;;  %7296 = vmatprep.subr.bf16.mxu1 %v8796_v62  ;;  %v8825_v36 = vld [vmem:[%s8684_s16 + $0x8] ss:$0 sps:$4 sm:$0x11]  }
  0xe8   : > { %2141 = vmatmul.mubr.bf16.gmra.mrb[20].mxu1 %v7989_v58  ;;  %1520 = vmatprep.mubr.bf16.mxu0 %v8749_v46  ;;  %v1111_v42 = vrot.slane %v8825_v36, 1  ;;  %v8929_v36 = vld [vmem:[%s8684_s16 + $0x98] ss:$0 sps:$4 sm:$0x11]  }
  0xe9   : > { %2148 = vmatprep.mubr.bf16.mxu1 %v8758_v61  ;;  %v8790_v50 = vsel %vm658_vm0, %v797_v44, %v801_v43  ;;  %v8836_v43 = vld [vmem:[%s8684_s16 + $0x14] ss:$0 sps:$4 sm:$0x11]   ;;  %v8839_v44 = vld [vmem:[%s8684_s16 + $0x18] sm:$0xfe]  }
  0xea   : > { %10464 = vst [vmem:[#allocation28_spill] sm:$0xff] %v8790_v50  ;;  %v1114_v59 = vrot.slane %v8836_v43, 1  ;;  %v1116_v60 = vrot.slane %v8839_v44, 1  ;;  %v8933_v43 = vld [vmem:[%s8684_s16 + $0x90] sm:$0xfe]   ;;  %v8052_v44 = vld [vmem:[#allocation7 + $0x190] sm:$0xff]  }
  0xef   : > { %1521 = vmatmul.mubr.bf16.gmra.mrb[24].mxu0 %v7989_v58  ;;  %v8018_v58 = vld [vmem:[%s8684_s16 + $0xa8] sm:$0xff]  }
  0xf0   : > { %2149 = vmatmul.mubr.bf16.gmra.mrb[24].mxu1 %v7993_v7  ;;  %1528 = vmatprep.mubr.bf16.mxu0 %v8758_v61  ;;  %v830_v4 = vshll.u32 %v8018_v58, 16  ;;  %v828_v15 = vshrl.u32 %v8018_v58, 16  ;;  %v8864_v58 = vld [vmem:[%s8684_s16 + $0x44] ss:$0 sps:$4 sm:$0x11]  }
  0xf1   : > { %2156 = vmatprep.mubr.bf16.mxu1 %v8766_v12  ;;  %v1126_v11 = vrot.slane %v8864_v58, 1  ;;  %v8071_v58 = vld [vmem:[#allocation7 + $0x1e8] sm:$0xff]  }
  0xf2   : > { %v832_v16 = vrot.slane %v830_v4, 1  ;;  %v1123_v4 = vrot.slane %v8858_v56, 1  ;;  %v8080_v56 = vld [vmem:[#allocation7 + $0x220] sm:$0xff]  }
  0xf4   : > { %v833_v33 = vor.u32 %v832_v16, %v828_v15  ;;  %v8890_v15 = vld [vmem:[%s8684_s16 + $0x5c] ss:$0 sps:$4 sm:$0x11]   ;;  %v8025_v16 = vld [vmem:[%s8684_s16 + $0xb4] sm:$0xff]  }
  0xf6   : > { %v8832_v41 = vsel %vm658_vm0, %v833_v33, %v837_v27  ;;  %v8921_v33 = vld [vmem:[%s8684_s16 + $0x84] sm:$0xfe]   ;;  %v1144_v27 = vrot.slane %v8924_v34, 1  ;;  %v8084_v34 = vld [vmem:[%s8684_s16 + $0xbc] ss:$0 sps:$4 sm:$0x11]  }
  0xf7   : > { %1529 = vmatmul.mubr.bf16.gmra.mrb[28].mxu0 %v7993_v7  ;;  %v8022_v7 = vld [vmem:[%s8684_s16 + $0xb4] sm:$0xff]   ;;  %10467 = vst [vmem:[#allocation31_spill] sm:$0xff] %v8832_v41 }
  0xf8   : > { %2157 = vmatmul.mubr.bf16.gmra.mrb[28].mxu1 %v7996_v20  ;;  %1536 = vmatprep.mubr.bf16.mxu0 %v8766_v12  ;;  %v842_v19 = vshll.u32 %v8022_v7, 16  ;;  %v840_v28 = vshrl.u32 %v8022_v7, 16  ;;  %v1125_v7 = vrot.slane %v8861_v57, 1  ;;  %v8065_v57 = vld [vmem:[#allocation7 + $0x1a0] sm:$0xff]  }
  0xf9   : > { %2164 = vmatprep.mubr.bf16.mxu1 %v8774_v26 }
  0xfa   : > { %v844_v29 = vrot.slane %v842_v19, 1 }
  0xfc   : > { %v845_v53 = vor.u32 %v844_v29, %v840_v28  ;;  %v8907_v28 = vld [vmem:[%s8684_s16 + $0x6c] sm:$0xfe]   ;;  %v8910_v29 = vld [vmem:[%s8684_s16 + $0x74] ss:$0 sps:$4 sm:$0x11]  }
  0xff   : > { %1537 = vmatmul.mubr.bf16.gmra.mrb[32].mxu0 %v7996_v20  ;;  %v847_v20 = vshll.u32 %v8023_v8, 16  ;;  %v8879_v8 = vld [vmem:[%s8684_s16 + $0x48] sm:$0xfe]  }
 0x100   : > { %2165 = vmatmul.mubr.bf16.gmra.mrb[32].mxu1 %v8001_v35  ;;  %1544 = vmatprep.mubr.bf16.mxu0 %v8774_v26 }
 0x101   : > { %2172 = vmatprep.mubr.bf16.mxu1 %v8782_v40  ;;  %v849_v30 = vrot.slane %v847_v20, 1  ;;  %v1128_v20 = vrot.slane %v8879_v8, 1  ;;  %v8079_v8 = vld [vmem:[#allocation7 + $0x1f0] sm:$0xff]  }
 0x107   : > { %1545 = vmatmul.mubr.bf16.gmra.mrb[36].mxu0 %v8001_v35  ;;  %v861_v35 = vrot.slane %v859_v22, 1  ;;  %v8964_v22 = vsel %vm1109_vm1, %v1116_v60, %v1117_v0  ;;  %v8057_v60 = vld [vmem:[#allocation7 + $0x1d8] sm:$0xff]   ;;  %v8979_v0 = vsel %vm1109_vm1, %v1122_v3, %v1123_v4  ;;  %v8997_v3 = vsel %vm1109_vm1, %v1128_v20, %v1129_v21  ;;  %v8082_v4 = vld [vmem:[#allocation7 + $0x228] sm:$0xff]  }
 0x108   : > { %2173 = vmatmul.mubr.bf16.gmra.mrb[36].mxu1 %v8004_v48  ;;  %1552 = vmatprep.mubr.bf16.mxu0 %v8782_v40  ;;  %10471 = vst [vmem:[#allocation35_spill] sm:$0xff] %v8964_v22  ;;  %10473 = vst [vmem:[#allocation37_spill] sm:$0xff] %v8979_v0  ;;  %v10480_v21 = vrot.slane %v8894_v17, 1  ;;  %v10483_v17 = vrot.slane %v8915_v31, 1  ;;  %v8077_v31 = vld [vmem:[%s8684_s16 + $0xa8] sm:$0xfe]  }
 0x109   : > { %2180 = vmatprep.mubr.bf16.mxu1 %v8790_v50  ;;  %v8900_v19 = vsel %vm658_vm0, %v857_v10, %v861_v35  ;;  %v1138_v10 = vrot.slane %v8910_v29, 1  ;;  %10475 = vst [vmem:[#allocation39_spill] sm:$0xff] %v8997_v3  ;;  %v10485_v29 = vrot.slane %v8921_v33, 1  ;;  %v10487_v33 = vrot.slane %v8929_v36, 1 }
 0x10a   : > { %10469 = vst [vmem:[#allocation33_spill] sm:$0xff] %v8900_v19  ;;  %v1152_v36 = vrot.slane %v8077_v31, 1 }
 0x10f   : > { %1553 = vmatmul.mubr.bf16.gmra.mrb[40].mxu0 %v8004_v48  ;;  %v8850_v48 = vld [vmem:[%s8684_s16 + $0x2c] ss:$0 sps:$4 sm:$0x11]  }
 0x110   : > { %2181 = vmatmul.mubr.bf16.gmra.mrb[40].mxu1 %v8009_v63  ;;  %1560 = vmatprep.mubr.bf16.mxu0 %v8790_v50  ;;  %v1120_v2 = vrot.slane %v8850_v48, 1  ;;  %v8944_v48 = vsel %vm1109_vm1, %v1110_v37, %v1111_v42  ;;  %v8051_v37 = vld [vmem:[#allocation7 + $0x1d0] sm:$0xff]  }
 0x111   : > { %2188 = vmatprep.mubr.bf16.mxu1 %v8802_v5  ;;  %v8072_v42 = vld [vmem:[#allocation7 + $0x210] sm:$0xff]  }
 0x112   : > { %v8967_v25 = vsel %vm1109_vm1, %v1119_v1, %v1120_v2  ;;  %v8074_v1 = vld [vmem:[#allocation7 + $0x218] sm:$0xff]   ;;  %v8986_v2 = vsel %vm1109_vm1, %v1125_v7, %v1126_v11  ;;  %v10476_v7 = vrot.slane %v8890_v15, 1  ;;  %v10477_v11 = vrot.slane %v8887_v14, 1  ;;  %v8081_v14 = vld [vmem:[#allocation7 + $0x1b0] sm:$0xff]  }
 0x113   : > { %10472 = vst [vmem:[#allocation36_spill] sm:$0xff] %v8967_v25  ;;  %10474 = vst [vmem:[#allocation38_spill] sm:$0xff] %v8986_v2  ;;  %v8087_v15 = vld [vmem:[#allocation7 + $0x1f8] sm:$0xff]  }
 0x117   : > { %1561 = vmatmul.mubr.bf16.gmra.mrb[44].mxu0 %v8009_v63  ;;  %v8869_v63 = vsel %vm658_vm0, %v845_v53, %v849_v30  ;;  %v1137_v53 = vrot.slane %v8907_v28, 1  ;;  %v8045_v30 = vld [vmem:[#allocation7 + $0x1c8] sm:$0xff]  }
 0x118   : > { %2189 = vmatmul.mubr.bf16.gmra.mrb[44].mxu1 %v8012_v18  ;;  %1568 = vmatprep.mubr.bf16.mxu0 %v8802_v5  ;;  %10468 = vst [vmem:[#allocation32_spill] sm:$0xff] %v8869_v63 }
 0x119   : > { %2196 = vmatprep.mubr.bf16.mxu1 %v8815_v23 }
 0x11f   : > { %1569 = vmatmul.mubr.bf16.gmra.mrb[48].mxu0 %v8012_v18  ;;  %v8897_v18 = vld [vmem:[%s8684_s16 + $0x68] ss:$0 sps:$4 sm:$0x11]  }
 0x120   : > { %2197 = vmatmul.mubr.bf16.gmra.mrb[48].mxu1 %v8017_v32  ;;  %1576 = vmatprep.mubr.bf16.mxu0 %v8815_v23  ;;  %v10479_v20 = vrot.slane %v8897_v18, 1  ;;  %v8089_v18 = vld [vmem:[#allocation7 + $0x1b8] sm:$0xff]  }
 0x121   : > { %2204 = vmatprep.mubr.bf16.mxu1 %v8832_v41 }
 0x127   : > { %1577 = vmatmul.mubr.bf16.gmra.mrb[52].mxu0 %v8017_v32  ;;  %v8918_v32 = vld [vmem:[%s8684_s16 + $0x80] ss:$0 sps:$4 sm:$0x11]  }
 0x128   : > { %2205 = vmatmul.mubr.bf16.gmra.mrb[52].mxu1 %v8020_v51  ;;  %1584 = vmatprep.mubr.bf16.mxu0 %v8832_v41  ;;  %v1141_v35 = vrot.slane %v8918_v32, 1  ;;  %v8078_v32 = vld [vmem:[%s8684_s16 + $0xb0] ss:$0 sps:$4 sm:$0x11]  }
 0x129   : > { %2212 = vmatprep.mubr.bf16.mxu1 %v8869_v63 }
 0x12a   : > { %v9033_v28 = vsel %vm1109_vm1, %v10483_v17, %v1141_v35  ;;  %v8083_v35 = vld [vmem:[%s8684_s16 + $0xb4] sm:$0xfe]  }
 0x12b   : > { %10484 = vst [vmem:[#allocation43_spill] sm:$0xff] %v9033_v28 }
 0x12f   : > { %1585 = vmatmul.mubr.bf16.gmra.mrb[56].mxu0 %v8020_v51  ;;  %v8947_v51 = vsel %vm1109_vm1, %v1113_v55, %v1114_v59  ;;  %v1150_v55 = vrot.slane %v8936_v45, 1  ;;  %v8040_v59 = vld [vmem:[#allocation7 + $0x180] sm:$0xff]  }
 0x130   : > { %2213 = vmatmul.mubr.bf16.gmra.mrb[56].mxu1 %v8025_v16  ;;  %1592 = vmatprep.mubr.bf16.mxu0 %v8869_v63  ;;  %10470 = vst [vmem:[#allocation34_spill] sm:$0xff] %v8947_v51 }
 0x131   : > { %2220 = vmatprep.mubr.bf16.mxu1 %v8900_v19 }
 0x137   : > { %1593 = vmatmul.mubr.bf16.gmra.mrb[60].mxu0 %v8025_v16  ;;  %v8066_v16 = vld [vmem:[#allocation7 + $0x208] sm:$0xff]  }
 0x138   : > { %2221 = vmatmul.mubr.bf16.gmra.mrb[60].mxu1 %v8030_v39  ;;  %7216 = vmatprep.mubr.bf16.mxu0 %v8944_v48  ;;  %v8046_v39 = vld [vmem:[#allocation7 + $0x188] sm:$0xff]  }
 0x139   : > { %7264 = vmatprep.mubr.bf16.mxu1 %v8947_v51 }
 0x13f   : > { %7217 = vmatmul.mubr.bf16.vlgmr.msra.gmra.mrb[64].mxu0 %v8947_v51 }
 0x140   : > { %7265 = vmatmul.mubr.bf16.vlgmr.msra.gmra.mrb[64].mxu1 %v8964_v22  ;;  %6657 = vmatpush3.bf16.msra.mxu0 %v8040_v59  ;;  %v8090_v59 = vld [vmem:[#allocation7 + $0x238] sm:$0xff]  }
 0x141   : > { %7220 = vmatprep.mubr.bf16.mxu0 %v8964_v22  ;;  %7268 = vmatprep.mubr.bf16.mxu1 %v8967_v25 }
 0x142   : > { %6658 = vmatprep.subr.bf16.mxu0 %v8045_v30  ;;  %7297 = vmatpush3.bf16.msra.mxu1 %v8796_v62  ;;  %v8058_v62 = vld [vmem:[#allocation7 + $0x198] sm:$0xff]   ;;  %v9004_v30 = vsel %vm1109_vm1, %v10477_v11, %v10476_v7 }
 0x143   : > { %7298 = vmatprep.subr.bf16.mxu1 %v8066_v16  ;;  %10478 = vst [vmem:[#allocation40_spill] sm:$0xff] %v9004_v30  ;;  %v8170_v7 = vld [vmem:[%s8684_s16 + $0x30] sm:$0xff]  }
 0x144   : > { %6659 = vmatpush3.bf16.msra.mxu0 %v8046_v39  ;;  %v10490_v39 = vrot.slane %v8939_v47, 1  ;;  %v8085_v47 = vld [vmem:[%s8684_s16 + $0xc0] sm:$0xfe]  }
 0x145   : > { %6660 = vmatprep.subr.bf16.mxu0 %v8051_v37  ;;  %v8073_v37 = vld [vmem:[#allocation7 + $0x1a8] sm:$0xff]  }
 0x146   : > { %7299 = vmatpush3.bf16.msra.mxu1 %v8066_v16  ;;  %v9022_v16 = vsel %vm1109_vm1, %v1137_v53, %v1138_v10  ;;  %v9040_v53 = vsel %vm1109_vm1, %v10485_v29, %v1144_v27  ;;  %v10488_v27 = vrot.slane %v8933_v43, 1  ;;  %v1153_v43 = vrot.slane %v8078_v32, 1  ;;  %v8171_v29 = vld [vmem:[%s8684_s16 + $0x3c] sm:$0xff]  }
 0x147   : > { %7221 = vmatmul.mubr.bf16.gmra.mrb[68].mxu0 %v8967_v25  ;;  %7300 = vmatprep.subr.bf16.mxu1 %v8072_v42  ;;  %10482 = vst [vmem:[#allocation42_spill] sm:$0xff] %v9022_v16  ;;  %10486 = vst [vmem:[#allocation44_spill] sm:$0xff] %v9040_v53 }
 0x148   : > { %7269 = vmatmul.mubr.bf16.gmra.mrb[68].mxu1 %v8979_v0  ;;  %7224 = vmatprep.mubr.bf16.mxu0 %v8979_v0  ;;  %v9055_v10 = vsel %vm1109_vm1, %v10488_v27, %v10487_v33  ;;  %v9069_v45 = vsel %vm1109_vm1, %v1152_v36, %v1153_v43 }
 0x149   : > { %7272 = vmatprep.mubr.bf16.mxu1 %v8986_v2  ;;  %6661 = vmatpush3.bf16.msra.mxu0 %v8052_v44  ;;  %10489 = vst [vmem:[#allocation45_spill] sm:$0xff] %v9055_v10  ;;  %v9062_v44 = vsel %vm1109_vm1, %v10490_v39, %v1150_v55  ;;  %10492 = vst [vmem:[#allocation47_spill] sm:$0xff] %v9069_v45 }
 0x14a   : > { %6662 = vmatprep.subr.bf16.mxu0 %v8057_v60  ;;  %7301 = vmatpush3.bf16.msra.mxu1 %v8072_v42  ;;  %v9015_v42 = vsel %vm1109_vm1, %v10480_v21, %v10479_v20  ;;  %10491 = vst [vmem:[#allocation46_spill] sm:$0xff] %v9062_v44  ;;  %v1155_v60 = vrot.slane %v8083_v35, 1 }
 0x14b   : > { %7302 = vmatprep.subr.bf16.mxu1 %v8074_v1  ;;  %10481 = vst [vmem:[#allocation41_spill] sm:$0xff] %v9015_v42 }
 0x14d   : > { %6663 = vmatpush3.bf16.msra.mxu0 %v8058_v62  ;;  %v8086_v62 = vld [vmem:[%s8684_s16 + $0xc8] ss:$0 sps:$4 sm:$0x11]  }
 0x14e   : > { %6664 = vmatprep.subr.bf16.mxu0 %v8063_v49  ;;  %7303 = vmatpush3.bf16.msra.mxu1 %v8074_v1  ;;  %v1156_v1 = vrot.slane %v8084_v34, 1  ;;  %v1158_v49 = vrot.slane %v8085_v47, 1 }
 0x14f   : > { %7225 = vmatmul.mubr.bf16.gmra.mrb[72].mxu0 %v8986_v2  ;;  %7304 = vmatprep.subr.bf16.mxu1 %v8080_v56 }
 0x150   : > { %7273 = vmatmul.mubr.bf16.gmra.mrb[72].mxu1 %v8997_v3  ;;  %7228 = vmatprep.mubr.bf16.mxu0 %v8997_v3  ;;  %v9074_v55 = vsel %vm1109_vm1, %v1155_v60, %v1156_v1 }
 0x151   : > { %7276 = vmatprep.mubr.bf16.mxu1 %v9004_v30  ;;  %6665 = vmatpush3.bf16.msra.mxu0 %v8065_v57  ;;  %10493 = vst [vmem:[#allocation48_spill] sm:$0xff] %v9074_v55 }
 0x152   : > { %6666 = vmatprep.subr.bf16.mxu0 %v8071_v58  ;;  %7305 = vmatpush3.bf16.msra.mxu1 %v8080_v56  ;;  %v1159_v56 = vrot.slane %v8086_v62, 1  ;;  %v8168_v58 = vld [vmem:[%s8684_s16 + $0x18] sm:$0xff]   ;;  %v8172_v62 = vld [vmem:[%s8684_s16 + $0x48] sm:$0xff]  }
 0x153   : > { %7306 = vmatprep.subr.bf16.mxu1 %v8082_v4 }
 0x154   : > { %v9081_v57 = vsel %vm1109_vm1, %v1158_v49, %v1159_v56 }
 0x155   : > { %6667 = vmatpush3.bf16.msra.mxu0 %v8073_v37  ;;  %10494 = vst [vmem:[#allocation49_spill] sm:$0xff] %v9081_v57 }
 0x156   : > { %6668 = vmatprep.subr.bf16.mxu0 %v8079_v8  ;;  %7307 = vmatpush3.bf16.msra.mxu1 %v8082_v4  ;;  %v8169_v4 = vld [vmem:[%s8684_s16 + $0x24] sm:$0xff]  }
 0x157   : > { %7229 = vmatmul.mubr.bf16.gmra.mrb[76].mxu0 %v9004_v30  ;;  %7308 = vmatprep.subr.bf16.mxu1 %v8088_v9 }
 0x158   : > { %7277 = vmatmul.mubr.bf16.gmra.mrb[76].mxu1 %v9015_v42  ;;  %7232 = vmatprep.mubr.bf16.mxu0 %v9015_v42 }
 0x159   : > { %7280 = vmatprep.mubr.bf16.mxu1 %v9022_v16  ;;  %6669 = vmatpush3.bf16.msra.mxu0 %v8081_v14 }
 0x15a   : > { %6670 = vmatprep.subr.bf16.mxu0 %v8087_v15  ;;  %7309 = vmatpush3.bf16.msra.mxu1 %v8088_v9 }
 0x15b   : > { %7310 = vmatprep.subr.bf16.mxu1 %v8090_v59 }
 0x15d   : > { %6671 = vmatpush3.bf16.msra.mxu0 %v8089_v18 }
 0x15e   : > { %7311 = vmatpush3.bf16.msra.mxu1 %v8090_v59 }
 0x15f   : > { %7233 = vmatmul.mubr.bf16.gmra.mrb[80].mxu0 %v9022_v16 }
 0x160   : > { %7281 = vmatmul.mubr.bf16.gmra.mrb[80].mxu1 %v9033_v28  ;;  %7236 = vmatprep.mubr.bf16.mxu0 %v9033_v28 }
 0x161   : > { %7284 = vmatprep.mubr.bf16.mxu1 %v9040_v53 }
 0x167   : > { %7237 = vmatmul.mubr.bf16.gmra.mrb[84].mxu0 %v9040_v53 }
 0x168   : > { %7285 = vmatmul.mubr.bf16.gmra.mrb[84].mxu1 %v9055_v10  ;;  %7240 = vmatprep.mubr.bf16.mxu0 %v9055_v10 }
 0x169   : > { %7288 = vmatprep.mubr.bf16.mxu1 %v9062_v44 }
 0x16f   : > { %7241 = vmatmul.mubr.bf16.gmra.mrb[88].mxu0 %v9062_v44 }
 0x170   : > { %7289 = vmatmul.mubr.bf16.gmra.mrb[88].mxu1 %v9069_v45  ;;  %7244 = vmatprep.mubr.bf16.mxu0 %v9069_v45 }
 0x171   : > { %7292 = vmatprep.mubr.bf16.mxu1 %v9074_v55 }
 0x177   : > { %7245 = vmatmul.mubr.bf16.gmra.mrb[92].mxu0 %v9074_v55 }
 0x178   : > { %7293 = vmatmul.mubr.bf16.gmra.mrb[92].mxu1 %v9081_v57  ;;  %2760 = vmatprep.mubr.bf16.mxu0 %v8720_v6 }
 0x179   : > { %7312 = vmatprep.mubr.bf16.mxu1 %v8964_v22 }
 0x17f   : > { %2761 = vmatmul.mubr.bf16.vlgmr.msra.gmra.mrb[96].mxu0 %v8168_v58 }
 0x180   : > { %7313 = vmatmul.mubr.bf16.vlgmr.msra.gmra.mrb[64].mxu1 %v8967_v25  ;;  %2768 = vmatprep.mubr.bf16.mxu0 %v8725_v13  ;;  %v8177_v13 = vld [vmem:[%s8684_s16 + $0x84] sm:$0xff]   ;;  %v8181_v25 = vld [vmem:[%s8684_s16 + $0xb4] sm:$0xff]  }
 0x181   : > { %7316 = vmatprep.mubr.bf16.mxu1 %v8979_v0 }
 0x187   : > { %2769 = vmatmul.mubr.bf16.gmra.mrb[100].mxu0 %v8169_v4 }
 0x188   : > { %7317 = vmatmul.mubr.bf16.gmra.mrb[68].mxu1 %v8986_v2  ;;  %2776 = vmatprep.mubr.bf16.mxu0 %v8734_v24 }
 0x189   : > { %7320 = vmatprep.mubr.bf16.mxu1 %v8997_v3 }
 0x18f   : > { %2777 = vmatmul.mubr.bf16.gmra.mrb[104].mxu0 %v8170_v7 }
 0x190   : > { %7321 = vmatmul.mubr.bf16.gmra.mrb[72].mxu1 %v9004_v30  ;;  %2784 = vmatprep.mubr.bf16.mxu0 %v8742_v38 }
 0x191   : > { %7324 = vmatprep.mubr.bf16.mxu1 %v9015_v42 }
 0x192   : > { %v6400_v11 = vpop.f32.mrb[0].mxu0 }
 0x193   : > { %v6401_v37 = vpop.f32.mrb[1].mxu0  ;;  %v6536_v8 = vpop.f32.mrb[0].mxu1 }
 0x194   : > { %v6403_v9 = vpop.f32.mrb[2].mxu0  ;;  %v6537_v14 = vpop.f32.mrb[1].mxu1  ;;  %v9099_v15 = vadd.f32 %v6401_v37, %v6400_v11 }
 0x195   : > { %v6404_v20 = vpop.f32.mrb[3].mxu0  ;;  %v9101_v21 = vadd.f32 %v6537_v14, %v6536_v8  ;;  %v6539_v59 = vpop.f32.mrb[2].mxu1 }
 0x196   : > { %v6540_v18 = vpop.f32.mrb[3].mxu1  ;;  %v9103_v17 = vadd.f32 %v6404_v20, %v6403_v9 }
 0x197   : > { %2785 = vmatmul.mubr.bf16.gmra.mrb[108].mxu0 %v8171_v29  ;;  %v9106_v31 = vadd.f32 %v6540_v18, %v6539_v59  ;;  %v8173_v18 = vld [vmem:[%s8684_s16 + $0x54] sm:$0xff]  }
 0x198   : > { %7325 = vmatmul.mubr.bf16.gmra.mrb[76].mxu1 %v9022_v16  ;;  %2792 = vmatprep.mubr.bf16.mxu0 %v8749_v46 }
 0x199   : > { %7328 = vmatprep.mubr.bf16.mxu1 %v9033_v28  ;;  %v8117_v28 = vld [vmem:[#allocation9 + $0x38] sm:$0xff]  }
 0x19a   : > { %v6406_v32 = vpop.f32.mrb[4].mxu0 }
 0x19b   : > { %v6407_v35 = vpop.f32.mrb[5].mxu0  ;;  %v6542_v34 = vpop.f32.mrb[4].mxu1 }
 0x19c   : > { %v6409_v33 = vpop.f32.mrb[6].mxu0  ;;  %v6543_v27 = vpop.f32.mrb[5].mxu1  ;;  %v9111_v39 = vadd.f32 %v6407_v35, %v6406_v32 }
 0x19d   : > { %v6410_v36 = vpop.f32.mrb[7].mxu0  ;;  %v9113_v43 = vadd.f32 %v6543_v27, %v6542_v34  ;;  %v6545_v60 = vpop.f32.mrb[6].mxu1  ;;  %v8091_v27 = vld [vmem:[%s8684_s16 + $0xcc] sm:$0xfe]  }
 0x19e   : > { %v6546_v1 = vpop.f32.mrb[7].mxu1  ;;  %v9115_v47 = vadd.f32 %v6410_v36, %v6409_v33 }
 0x19f   : > { %2793 = vmatmul.mubr.bf16.gmra.mrb[112].mxu0 %v8172_v62  ;;  %v9118_v49 = vadd.f32 %v6546_v1, %v6545_v60  ;;  %v8092_v62 = vld [vmem:[%s8684_s16 + $0xd4] ss:$0 sps:$4 sm:$0x11]  }
 0x1a0   : > { %7329 = vmatmul.mubr.bf16.gmra.mrb[80].mxu1 %v9040_v53  ;;  %2800 = vmatprep.mubr.bf16.mxu0 %v8758_v61  ;;  %v8175_v61 = vld [vmem:[%s8684_s16 + $0x6c] sm:$0xff]  }
 0x1a1   : > { %7332 = vmatprep.mubr.bf16.mxu1 %v9055_v10  ;;  %v8179_v10 = vld [vmem:[%s8684_s16 + $0x9c] sm:$0xff]  }
 0x1a2   : > { %v6412_v56 = vpop.f32.mrb[8].mxu0 }
 0x1a3   : > { %v6413_v58 = vpop.f32.mrb[9].mxu0  ;;  %v6548_v4 = vpop.f32.mrb[8].mxu1 }
 0x1a4   : > { %v6415_v7 = vpop.f32.mrb[10].mxu0  ;;  %v6549_v11 = vpop.f32.mrb[9].mxu1  ;;  %v9123_v37 = vadd.f32 %v6413_v58, %v6412_v56 }
 0x1a5   : > { %v6416_v8 = vpop.f32.mrb[11].mxu0  ;;  %v9125_v9 = vadd.f32 %v6549_v11, %v6548_v4  ;;  %v6551_v14 = vpop.f32.mrb[10].mxu1  ;;  %v8174_v11 = vld [vmem:[%s8684_s16 + $0x60] sm:$0xff]  }
 0x1a6   : > { %v6552_v20 = vpop.f32.mrb[11].mxu1  ;;  %v9127_v59 = vadd.f32 %v6416_v8, %v6415_v7 }
 0x1a7   : > { %2801 = vmatmul.mubr.bf16.gmra.mrb[116].mxu0 %v8173_v18  ;;  %v9130_v29 = vadd.f32 %v6552_v20, %v6551_v14  ;;  %v1161_v14 = vrot.slane %v8091_v27, 1  ;;  %v1162_v20 = vrot.slane %v8092_v62, 1 }
 0x1a8   : > { %7333 = vmatmul.mubr.bf16.gmra.mrb[84].mxu1 %v9062_v44  ;;  %2808 = vmatprep.mubr.bf16.mxu0 %v8766_v12 }
 0x1a9   : > { %7336 = vmatprep.mubr.bf16.mxu1 %v9069_v45 }
 0x1aa   : > { %v6418_v32 = vpop.f32.mrb[12].mxu0 }
 0x1ab   : > { %v6419_v35 = vpop.f32.mrb[13].mxu0  ;;  %v6554_v34 = vpop.f32.mrb[12].mxu1 }
 0x1ac   : > { %v6421_v33 = vpop.f32.mrb[14].mxu0  ;;  %v6555_v36 = vpop.f32.mrb[13].mxu1  ;;  %v9136_v60 = vadd.f32 %v6419_v35, %v6418_v32 }
 0x1ad   : > { %v6422_v1 = vpop.f32.mrb[15].mxu0  ;;  %v9139_v56 = vadd.f32 %v6555_v36, %v6554_v34  ;;  %v6557_v58 = vpop.f32.mrb[14].mxu1 }
 0x1ae   : > { %v6558_v4 = vpop.f32.mrb[15].mxu1  ;;  %v9141_v7 = vadd.f32 %v6422_v1, %v6421_v33 }
 0x1af   : > { %2809 = vmatmul.mubr.bf16.gmra.mrb[120].mxu0 %v8174_v11  ;;  %v9144_v8 = vadd.f32 %v6558_v4, %v6557_v58  ;;  %v9152_v58 = vsel %vm1109_vm1, %v1161_v14, %v1162_v20 }
 0x1b0   : > { %7337 = vmatmul.mubr.bf16.gmra.mrb[88].mxu1 %v9074_v55  ;;  %2816 = vmatprep.mubr.bf16.mxu0 %v8774_v26  ;;  %10495 = vst [vmem:[#allocation50_spill] sm:$0xff] %v9152_v58 }
 0x1b1   : > { %7340 = vmatprep.mubr.bf16.mxu1 %v9081_v57 }
 0x1b2   : > { %v6424_v18 = vpop.f32.mrb[16].mxu0 }
 0x1b3   : > { %v6425_v32 = vpop.f32.mrb[17].mxu0  ;;  %v6560_v35 = vpop.f32.mrb[16].mxu1 }
 0x1b4   : > { %v6427_v34 = vpop.f32.mrb[18].mxu0  ;;  %v6561_v36 = vpop.f32.mrb[17].mxu1  ;;  %v9149_v33 = vadd.f32 %v6425_v32, %v6424_v18 }
 0x1b5   : > { %v6428_v1 = vpop.f32.mrb[19].mxu0  ;;  %v9154_v4 = vadd.f32 %v6561_v36, %v6560_v35  ;;  %v6563_v11 = vpop.f32.mrb[18].mxu1 }
 0x1b6   : > { %v6564_v26 = vpop.f32.mrb[19].mxu1  ;;  %v9156_v12 = vadd.f32 %v6428_v1, %v6427_v34 }
 0x1b7   : > { %2817 = vmatmul.mubr.bf16.gmra.mrb[124].mxu0 %v8175_v61  ;;  %v9159_v27 = vadd.f32 %v6564_v26, %v6563_v11  ;;  %v8176_v11 = vld [vmem:[%s8684_s16 + $0x78] sm:$0xff]  }
 0x1b8   : > { %7341 = vmatmul.mubr.bf16.gmra.mrb[92].mxu1 %v9152_v58  ;;  %2824 = vmatprep.mubr.bf16.mxu0 %v8782_v40  ;;  %v8097_v40 = vld [vmem:[#allocation9] sm:$0xff]  }
 0x1b9   : > { %7360 = vmatprep.mubr.bf16.mxu1 %v8944_v48  ;;  %v8096_v48 = vld [vmem:[#allocation9 + $0x40] sm:$0xff]  }
 0x1ba   : > { %v6430_v62 = vpop.f32.mrb[20].mxu0  ;;  %6792 = vmatprep.subr.bf16.mxu0 %v8096_v48 }
 0x1bb   : > { %v6431_v14 = vpop.f32.mrb[21].mxu0  ;;  %v6566_v20 = vpop.f32.mrb[20].mxu1  ;;  %6793 = vmatpush3.bf16.msra.mxu0 %v8097_v40  ;;  %v8100_v40 = vld [vmem:[#allocation9 + $0x50] sm:$0xff]  }
 0x1bc   : > { %v6433_v18 = vpop.f32.mrb[22].mxu0  ;;  %v6567_v32 = vpop.f32.mrb[21].mxu1  ;;  %v9164_v35 = vadd.f32 %v6431_v14, %v6430_v62 }
 0x1bd   : > { %v6434_v34 = vpop.f32.mrb[23].mxu0  ;;  %v9166_v36 = vadd.f32 %v6567_v32, %v6566_v20  ;;  %v6569_v61 = vpop.f32.mrb[22].mxu1 }
 0x1be   : > { %v6570_v1 = vpop.f32.mrb[23].mxu1  ;;  %v9168_v26 = vadd.f32 %v6434_v34, %v6433_v18  ;;  %v8098_v18 = vld [vmem:[#allocation9 + $0x48] sm:$0xff]  }
 0x1bf   : > { %2825 = vmatmul.mubr.bf16.gmra.mrb[128].mxu0 %v8176_v11  ;;  %v9171_v58 = vadd.f32 %v6570_v1, %v6569_v61  ;;  %v8099_v1 = vld [vmem:[#allocation9 + $0x8] sm:$0xff]   ;;  %6794 = vmatprep.subr.bf16.mxu0 %v8098_v18 }
 0x1c0   : > { %2832 = vmatprep.mubr.bf16.mxu0 %v8790_v50  ;;  %6795 = vmatpush3.bf16.msra.mxu0 %v8099_v1 }
 0x1c1   : > { %6796 = vmatprep.subr.bf16.mxu0 %v8100_v40  ;;  %v8178_v40 = vld [vmem:[%s8684_s16 + $0x90] sm:$0xff]  }
 0x1c2   : > { %v6436_v46 = vpop.f32.mrb[24].mxu0 }
 0x1c3   : > { %v6437_v62 = vpop.f32.mrb[25].mxu0  ;;  %v6572_v14 = vpop.f32.mrb[24].mxu1 }
 0x1c4   : > { %v6439_v20 = vpop.f32.mrb[26].mxu0  ;;  %v6573_v32 = vpop.f32.mrb[25].mxu1  ;;  %v9174_v38 = vadd.f32 %v6437_v62, %v6436_v46  ;;  %v8101_v46 = vld [vmem:[#allocation9 + $0x80] sm:$0xff]   ;;  %v8102_v62 = vld [vmem:[#allocation9 + $0x10] sm:$0xff]  }
 0x1c5   : > { %v6440_v34 = vpop.f32.mrb[27].mxu0  ;;  %v9176_v24 = vadd.f32 %v6573_v32, %v6572_v14  ;;  %v6575_v61 = vpop.f32.mrb[26].mxu1  ;;  %7344 = vmatprep.subr.bf16.mxu1 %v8101_v46  ;;  %6797 = vmatpush3.bf16.msra.mxu0 %v8102_v62  ;;  %v8107_v62 = vld [vmem:[#allocation9 + $0x90] sm:$0xff]  }
 0x1c6   : > { %v6576_v11 = vpop.f32.mrb[27].mxu1  ;;  %v9178_v50 = vadd.f32 %v6440_v34, %v6439_v20  ;;  %7345 = vmatpush3.bf16.msra.mxu1 %v8101_v46 }
 0x1c7   : > { %2833 = vmatmul.mubr.bf16.gmra.mrb[132].mxu0 %v8177_v13  ;;  %v9181_v48 = vadd.f32 %v6576_v11, %v6575_v61  ;;  %v8103_v13 = vld [vmem:[#allocation9 + $0x58] sm:$0xff]   ;;  %v8104_v61 = vld [vmem:[#allocation9 + $0x88] sm:$0xff]  }
 0x1c8   : > { %2840 = vmatprep.mubr.bf16.mxu0 %v8802_v5  ;;  %6798 = vmatprep.subr.bf16.mxu0 %v8103_v13 }
 0x1c9   : > { %7346 = vmatprep.subr.bf16.mxu1 %v8104_v61  ;;  %6799 = vmatpush3.bf16.msra.mxu0 %v8105_v54 }
 0x1ca   : > { %v6442_v6 = vpop.f32.mrb[28].mxu0  ;;  %7347 = vmatpush3.bf16.msra.mxu1 %v8104_v61  ;;  %v8110_v61 = vld [vmem:[#allocation9 + $0x98] sm:$0xff]  }
 0x1cb   : > { %v6443_v14 = vpop.f32.mrb[29].mxu0  ;;  %v6578_v32 = vpop.f32.mrb[28].mxu1  ;;  %7348 = vmatprep.subr.bf16.mxu1 %v8107_v62 }
 0x1cc   : > { %v6445_v20 = vpop.f32.mrb[30].mxu0  ;;  %v6579_v34 = vpop.f32.mrb[29].mxu1  ;;  %v9184_v18 = vadd.f32 %v6443_v14, %v6442_v6  ;;  %v8106_v6 = vld [vmem:[#allocation9 + $0x60] sm:$0xff]  }
 0x1cd   : > { %v6446_v11 = vpop.f32.mrb[31].mxu0  ;;  %v9186_v5 = vadd.f32 %v6579_v34, %v6578_v32  ;;  %v6581_v1 = vpop.f32.mrb[30].mxu1  ;;  %v8108_v14 = vld [vmem:[#allocation9 + $0x20] sm:$0xff]   ;;  %6800 = vmatprep.subr.bf16.mxu0 %v8106_v6 }
 0x1ce   : > { %v6582_v57 = vpop.f32.mrb[31].mxu1  ;;  %v9188_v55 = vadd.f32 %v6446_v11, %v6445_v20  ;;  %7349 = vmatpush3.bf16.msra.mxu1 %v8107_v62  ;;  %6801 = vmatpush3.bf16.msra.mxu0 %v8108_v14  ;;  %v8112_v14 = vld [vmem:[#allocation9 + $0x70] sm:$0xff]  }
 0x1cf   : > { %2841 = vmatmul.mubr.bf16.gmra.mrb[136].mxu0 %v8178_v40  ;;  %v9191_v46 = vadd.f32 %v6582_v57, %v6581_v1  ;;  %v8109_v57 = vld [vmem:[#allocation9 + $0x68] sm:$0xff]   ;;  %7350 = vmatprep.subr.bf16.mxu1 %v8110_v61 }
 0x1d0   : > { %2848 = vmatprep.mubr.bf16.mxu0 %v8815_v23  ;;  %v8111_v23 = vld [vmem:[#allocation9 + $0x28] sm:$0xff]   ;;  %6802 = vmatprep.subr.bf16.mxu0 %v8109_v57 }
 0x1d2   : > { %v6448_v32 = vpop.f32.mrb[32].mxu0  ;;  %7351 = vmatpush3.bf16.msra.mxu1 %v8110_v61  ;;  %6803 = vmatpush3.bf16.msra.mxu0 %v8111_v23  ;;  %v8115_v61 = vld [vmem:[#allocation9 + $0x78] sm:$0xff]  }
 0x1d3   : > { %v6449_v34 = vpop.f32.mrb[33].mxu0  ;;  %v6584_v45 = vpop.f32.mrb[32].mxu1  ;;  %6804 = vmatprep.subr.bf16.mxu0 %v8112_v14  ;;  %v8093_v23 = vld [vmem:[%s8684_s16 + $0xcc] sm:$0xff]  }
 0x1d4   : > { %v9194_v20 = vadd.f32 %v6449_v34, %v6448_v32  ;;  %v6451_v13 = vpop.f32.mrb[34].mxu0  ;;  %v6585_v11 = vpop.f32.mrb[33].mxu1  ;;  %v8113_v32 = vld [vmem:[#allocation9 + $0xa0] sm:$0xff]   ;;  %v866_v42 = vshll.u32 %v8093_v23, 16 }
 0x1d5   : > { %v6452_v1 = vpop.f32.mrb[35].mxu0  ;;  %v9196_v40 = vadd.f32 %v6585_v11, %v6584_v45  ;;  %v6587_v54 = vpop.f32.mrb[34].mxu1  ;;  %v8114_v45 = vld [vmem:[#allocation9 + $0x30] sm:$0xff]   ;;  %7352 = vmatprep.subr.bf16.mxu1 %v8113_v32 }
 0x1d6   : > { %v9198_v44 = vadd.f32 %v6452_v1, %v6451_v13  ;;  %v6588_v6 = vpop.f32.mrb[35].mxu1  ;;  %7353 = vmatpush3.bf16.msra.mxu1 %v8113_v32  ;;  %6805 = vmatpush3.bf16.msra.mxu0 %v8114_v45  ;;  %v8180_v32 = vld [vmem:[%s8684_s16 + $0xa8] sm:$0xff]  }
 0x1d7   : > { %2849 = vmatmul.mubr.bf16.gmra.mrb[140].mxu0 %v8179_v10  ;;  %v9201_v62 = vadd.f32 %v6588_v6, %v6587_v54  ;;  %v8116_v54 = vld [vmem:[#allocation9 + $0xa8] sm:$0xff]   ;;  %6806 = vmatprep.subr.bf16.mxu0 %v8115_v61  ;;  %v8118_v45 = vld [vmem:[#allocation9 + $0xb0] sm:$0xff]  }
 0x1d8   : > { %2856 = vmatprep.mubr.bf16.mxu0 %v8832_v41  ;;  %7354 = vmatprep.subr.bf16.mxu1 %v8116_v54 }
 0x1da   : > { %v6454_v34 = vpop.f32.mrb[36].mxu0  ;;  %7355 = vmatpush3.bf16.msra.mxu1 %v8116_v54  ;;  %6807 = vmatpush3.bf16.msra.mxu0 %v8117_v28  ;;  %v868_v54 = vrot.slane %v866_v42, 1 }
 0x1db   : > { %v6455_v13 = vpop.f32.mrb[37].mxu0  ;;  %v6590_v11 = vpop.f32.mrb[36].mxu1  ;;  %7356 = vmatprep.subr.bf16.mxu1 %v8118_v45 }
 0x1dc   : > { %v9204_v57 = vadd.f32 %v6455_v13, %v6454_v34  ;;  %v6457_v10 = vpop.f32.mrb[38].mxu0  ;;  %v6591_v1 = vpop.f32.mrb[37].mxu1  ;;  %v8094_v13 = vld [vmem:[%s8684_s16 + $0xd4] ss:$0 sps:$4 sm:$0x11]  }
 0x1dd   : > { %v6458_v6 = vpop.f32.mrb[39].mxu0  ;;  %v9207_v41 = vadd.f32 %v6591_v1, %v6590_v11  ;;  %v6593_v53 = vpop.f32.mrb[38].mxu1  ;;  %v871_v3 = vshll.u32 %v8094_v13, 16 }
 0x1de   : > { %v9209_v14 = vadd.f32 %v6458_v6, %v6457_v10  ;;  %v6594_v16 = vpop.f32.mrb[39].mxu1  ;;  %7357 = vmatpush3.bf16.msra.mxu1 %v8118_v45 }
 0x1df   : > { %2857 = vmatmul.mubr.bf16.gmra.mrb[144].mxu0 %v8180_v32  ;;  %v9212_v34 = vadd.f32 %v6594_v16, %v6593_v53  ;;  %v8119_v32 = vld [vmem:[#allocation9 + $0xb8] sm:$0xff]   ;;  %v864_v53 = vshrl.u32 %v8093_v23, 16 }
 0x1e0   : > { %2864 = vmatprep.mubr.bf16.mxu0 %v8869_v63  ;;  %7358 = vmatprep.subr.bf16.mxu1 %v8119_v32 }
 0x1e1   : > { %v869_v45 = vor.u32 %v868_v54, %v864_v53  ;;  %v8182_v53 = vld [vmem:[%s8684_s16 + $0xc0] sm:$0xff]  }
 0x1e2   : > { %v6460_v11 = vpop.f32.mrb[40].mxu0  ;;  %7359 = vmatpush3.bf16.msra.mxu1 %v8119_v32 }
 0x1e3   : > { %v6461_v1 = vpop.f32.mrb[41].mxu0  ;;  %v6596_v10 = vpop.f32.mrb[40].mxu1 }
 0x1e4   : > { %v9216_v6 = vadd.f32 %v6461_v1, %v6460_v11  ;;  %v6463_v61 = vpop.f32.mrb[42].mxu0  ;;  %v6597_v30 = vpop.f32.mrb[41].mxu1  ;;  %v873_v11 = vrot.slane %v871_v3, 1 }
 0x1e5   : > { %v6464_v16 = vpop.f32.mrb[43].mxu0  ;;  %v9218_v63 = vadd.f32 %v6597_v30, %v6596_v10  ;;  %v6599_v28 = vpop.f32.mrb[42].mxu1 }
 0x1e6   : > { %v9220_v2 = vadd.f32 %v6464_v16, %v6463_v61  ;;  %v6600_v0 = vpop.f32.mrb[43].mxu1  ;;  %v9229_v16 = vsel %vm658_vm0, %v869_v45, %v873_v11 }
 0x1e7   : > { %2865 = vmatmul.mubr.bf16.gmra.mrb[148].mxu0 %v8181_v25  ;;  %v9223_v22 = vadd.f32 %v6600_v0, %v6599_v28  ;;  %10498 = vst [vmem:[#allocation53_spill] sm:$0xff] %v9229_v16 }
 0x1e8   : > { %10496 = vst [vmem:[#allocation51_spill] sm:$0xff] %v9220_v2  ;;  %2872 = vmatprep.mubr.bf16.mxu0 %v8900_v19 }
 0x1e9   : > { %10497 = vst [vmem:[#allocation52_spill] sm:$0xff] %v9223_v22 }
 0x1ea   : > { %v6466_v23 = vpop.f32.mrb[44].mxu0 }
 0x1eb   : > { %v6467_v42 = vpop.f32.mrb[45].mxu0  ;;  %v6602_v13 = vpop.f32.mrb[44].mxu1 }
 0x1ec   : > { %v9226_v30 = vadd.f32 %v6467_v42, %v6466_v23  ;;  %v6469_v1 = vpop.f32.mrb[46].mxu0  ;;  %v6603_v10 = vpop.f32.mrb[45].mxu1  ;;  %v8095_v42 = vld [vmem:[%s8684_s16 + $0xcc] sm:$0xff]  }
 0x1ed   : > { %v6470_v61 = vpop.f32.mrb[47].mxu0  ;;  %v9231_v25 = vadd.f32 %v6603_v10, %v6602_v13  ;;  %v6605_v0 = vpop.f32.mrb[46].mxu1 }
 0x1ee   : > { %v9233_v32 = vadd.f32 %v6470_v61, %v6469_v1  ;;  %v6606_v28 = vpop.f32.mrb[47].mxu1 }
 0x1ef   : > { %2873 = vmatmul.mubr.bf16.gmra.mrb[152].mxu0 %v8182_v53  ;;  %v9236_v3 = vadd.f32 %v6606_v28, %v6605_v0 }
 0x1f0   : > { %2880 = vmatprep.mubr.bf16.mxu0 %v9229_v16 }
 0x1f1   : > { %10499 = vst [vmem:[#allocation54_spill] sm:$0xff] %v9236_v3 }
 0x1f2   : > { %v6472_v54 = vpop.f32.mrb[48].mxu0 }
 0x1f3   : > { %v6473_v23 = vpop.f32.mrb[49].mxu0  ;;  %v6608_v19 = vpop.f32.mrb[48].mxu1 }
 0x1f4   : > { %v9240_v51 = vadd.f32 %v6473_v23, %v6472_v54  ;;  %v6475_v45 = vpop.f32.mrb[50].mxu0  ;;  %v6609_v11 = vpop.f32.mrb[49].mxu1 }
 0x1f5   : > { %v6476_v13 = vpop.f32.mrb[51].mxu0  ;;  %v9242_v10 = vadd.f32 %v6609_v11, %v6608_v19  ;;  %v6611_v1 = vpop.f32.mrb[50].mxu1 }
 0x1f6   : > { %10500 = vst [vmem:[#allocation55_spill] sm:$0xff] %v9240_v51  ;;  %v9244_v61 = vadd.f32 %v6476_v13, %v6475_v45  ;;  %v6612_v22 = vpop.f32.mrb[51].mxu1 }
 0x1f7   : > { %10501 = vst [vmem:[#allocation56_spill] sm:$0xff] %v9242_v10  ;;  %2881 = vmatmul.mubr.bf16.gmra.mrb[156].mxu0 %v8095_v42  ;;  %v9246_v0 = vadd.f32 %v6612_v22, %v6611_v1  ;;  %v8183_v22 = vld [vmem:[%s8684_s16] sm:$0xff]  }
 0x1f8   : > { %10502 = vst [vmem:[#allocation57_spill] sm:$0xff] %v9244_v61  ;;  %3948 = vmatprep.mubr.bf16.mxu0 %v8706_v52 }
 0x1f9   : > { %10503 = vst [vmem:[#allocation58_spill] sm:$0xff] %v9246_v0 }
 0x1fa   : > { %v6478_v28 = vpop.f32.mrb[52].mxu0 }
 0x1fb   : > { %v6479_v53 = vpop.f32.mrb[53].mxu0  ;;  %v6614_v16 = vpop.f32.mrb[52].mxu1 }
 0x1fc   : > { %v9249_v54 = vadd.f32 %v6479_v53, %v6478_v28  ;;  %v6481_v23 = vpop.f32.mrb[54].mxu0  ;;  %v6615_v51 = vpop.f32.mrb[53].mxu1 }
 0x1fd   : > { %v6482_v3 = vpop.f32.mrb[55].mxu0  ;;  %v9251_v19 = vadd.f32 %v6615_v51, %v6614_v16  ;;  %v6617_v11 = vpop.f32.mrb[54].mxu1 }
 0x1fe   : > { %10504 = vst [vmem:[#allocation59_spill] sm:$0xff] %v9249_v54  ;;  %v9253_v45 = vadd.f32 %v6482_v3, %v6481_v23  ;;  %v6618_v13 = vpop.f32.mrb[55].mxu1 }
 0x1ff   : > { %10505 = vst [vmem:[#allocation60_spill] sm:$0xff] %v9251_v19  ;;  %v9255_v61 = vadd.f32 %v6618_v13, %v6617_v11  ;;  %3949 = vmatmul.mubr.bf16.vlgmr.msra.gmra.mrb[160].mxu0 %v8183_v22 }
 0x200   : > { %10506 = vst [vmem:[#allocation61_spill] sm:$0xff] %v9253_v45 }
 0x201   : > { %10507 = vst [vmem:[#allocation62_spill] sm:$0xff] %v9255_v61 }
 0x202   : > { %v6484_v42 = vpop.f32.mrb[56].mxu0 }
 0x203   : > { %v6485_v52 = vpop.f32.mrb[57].mxu0  ;;  %v6620_v1 = vpop.f32.mrb[56].mxu1 }
 0x204   : > { %v9258_v0 = vadd.f32 %v6485_v52, %v6484_v42  ;;  %v6487_v28 = vpop.f32.mrb[58].mxu0  ;;  %v6621_v53 = vpop.f32.mrb[57].mxu1 }
 0x205   : > { %v6488_v10 = vpop.f32.mrb[59].mxu0  ;;  %v9260_v54 = vadd.f32 %v6621_v53, %v6620_v1  ;;  %v6623_v51 = vpop.f32.mrb[58].mxu1 }
 0x206   : > { %10508 = vst [vmem:[#allocation63_spill] sm:$0xff] %v9258_v0  ;;  %v9262_v16 = vadd.f32 %v6488_v10, %v6487_v28  ;;  %v6624_v3 = vpop.f32.mrb[59].mxu1 }
 0x207   : > { %v9264_v23 = vadd.f32 %v6624_v3, %v6623_v51 }
 0x209   : > { %10509 = vst [vmem:[#allocation64_spill] sm:$0xff] %v9264_v23 }
 0x20a   : > { %v6490_v11 = vpop.f32.mrb[60].mxu0 }
 0x20b   : > { %v6491_v13 = vpop.f32.mrb[61].mxu0  ;;  %v6626_v61 = vpop.f32.mrb[60].mxu1 }
 0x20c   : > { %v9266_v22 = vadd.f32 %v6491_v13, %v6490_v11  ;;  %v6493_v45 = vpop.f32.mrb[62].mxu0  ;;  %v6627_v19 = vpop.f32.mrb[61].mxu1 }
 0x20d   : > { %v6494_v42 = vpop.f32.mrb[63].mxu0  ;;  %v9268_v52 = vadd.f32 %v6627_v19, %v6626_v61  ;;  %v6629_v0 = vpop.f32.mrb[62].mxu1 }
 0x20e   : > { %v9270_v2 = vadd.f32 %v6494_v42, %v6493_v45  ;;  %v6630_v1 = vpop.f32.mrb[63].mxu1 }
 0x20f   : > { %v9272_v53 = vadd.f32 %v6630_v1, %v6629_v0 }
 0x212   : > { %v7218_v10 = vpop.f32.mrb[64].mxu0 }
 0x213   : > { %v1644_v28 = vadd.f32 %v7218_v10, %v9111_v39  ;;  %v1635_v51 = vpop.f32.mrb[65].mxu0 }
 0x214   : > { %v1636_v3 = vadd.f32 %v9099_v15, %v1635_v51  ;;  %v7219_v23 = vpop.f32.mrb[66].mxu0 }
 0x215   : > { %v9277_v11 = vadd.f32 %v9113_v43, %v1644_v28  ;;  %v1647_v13 = vadd.f32 %v7219_v23, %v9115_v47  ;;  %v1638_v61 = vpop.f32.mrb[67].mxu0 }
 0x216   : > { %v9281_v19 = vadd.f32 %v9101_v21, %v1636_v3  ;;  %v1639_v45 = vadd.f32 %v9103_v17, %v1638_v61  ;;  %v9322_v61 = vld [vmem:[#allocation9 + $0x140] sm:$0xff]  }
 0x217   : > { %v9285_v0 = vadd.f32 %v9118_v49, %v1647_v13  ;;  %7392 = vmatprep.subr.bf16.mxu1 %v9322_v61 }
 0x218   : > { %v9288_v39 = vadd.f32 %v9106_v31, %v1639_v45 }
 0x21a   : > { %v7222_v42 = vpop.f32.mrb[68].mxu0 }
 0x21b   : > { %v1660_v15 = vadd.f32 %v7222_v42, %v9136_v60  ;;  %v1651_v1 = vpop.f32.mrb[69].mxu0 }
 0x21c   : > { %v1652_v43 = vadd.f32 %v9123_v37, %v1651_v1  ;;  %v7223_v10 = vpop.f32.mrb[70].mxu0 }
 0x21d   : > { %v9293_v47 = vadd.f32 %v9139_v56, %v1660_v15  ;;  %v1663_v21 = vadd.f32 %v7223_v10, %v9141_v7  ;;  %v1654_v23 = vpop.f32.mrb[71].mxu0 }
 0x21e   : > { %v9297_v17 = vadd.f32 %v9125_v9, %v1652_v43  ;;  %v1655_v49 = vadd.f32 %v9127_v59, %v1654_v23 }
 0x21f   : > { %v9301_v31 = vadd.f32 %v9144_v8, %v1663_v21 }
 0x220   : > { %v9304_v60 = vadd.f32 %v9130_v29, %v1655_v49 }
 0x222   : > { %v7226_v28 = vpop.f32.mrb[72].mxu0 }
 0x223   : > { %v1676_v37 = vadd.f32 %v7226_v28, %v9164_v35  ;;  %v1667_v51 = vpop.f32.mrb[73].mxu0 }
 0x224   : > { %v1668_v56 = vadd.f32 %v9149_v33, %v1667_v51  ;;  %v7227_v3 = vpop.f32.mrb[74].mxu0 }
 0x225   : > { %v9309_v7 = vadd.f32 %v9166_v36, %v1676_v37  ;;  %v1679_v9 = vadd.f32 %v7227_v3, %v9168_v26  ;;  %v1670_v13 = vpop.f32.mrb[75].mxu0 }
 0x226   : > { %v9313_v59 = vadd.f32 %v9154_v4, %v1668_v56  ;;  %v1671_v8 = vadd.f32 %v9156_v12, %v1670_v13  ;;  %v8124_v13 = vld [vmem:[#allocation9 + $0x100] sm:$0xff]  }
 0x227   : > { %v9317_v29 = vadd.f32 %v9171_v58, %v1679_v9  ;;  %v10512_v9 = vld [vmem:[#allocation52_spill] sm:$0xff]  ;;  %6928 = vmatprep.subr.bf16.mxu0 %v8124_v13 }
 0x228   : > { %v9320_v35 = vadd.f32 %v9159_v27, %v1671_v8 }
 0x22a   : > { %v7230_v33 = vpop.f32.mrb[76].mxu0 }
 0x22b   : > { %v1692_v36 = vadd.f32 %v7230_v33, %v9184_v18  ;;  %v1683_v26 = vpop.f32.mrb[77].mxu0 }
 0x22c   : > { %v1684_v45 = vadd.f32 %v9174_v38, %v1683_v26  ;;  %v7231_v4 = vpop.f32.mrb[78].mxu0 }
 0x22d   : > { %v9328_v42 = vadd.f32 %v9186_v5, %v1692_v36  ;;  %v1695_v12 = vadd.f32 %v7231_v4, %v9188_v55  ;;  %v1686_v58 = vpop.f32.mrb[79].mxu0  ;;  %v10515_v4 = vld [vmem:[#allocation60_spill] sm:$0xff] }
 0x22e   : > { %v9332_v27 = vadd.f32 %v9176_v24, %v1684_v45  ;;  %v1687_v15 = vadd.f32 %v9178_v50, %v1686_v58  ;;  %v8127_v45 = vld [vmem:[#allocation9 + $0x108] sm:$0xff]   ;;  %v10516_v58 = vld [vmem:[#allocation61_spill] sm:$0xff] }
 0x22f   : > { %v9336_v1 = vadd.f32 %v9191_v46, %v1695_v12 }
 0x230   : > { %v9339_v18 = vadd.f32 %v9181_v48, %v1687_v15 }
 0x232   : > { %v7234_v43 = vpop.f32.mrb[80].mxu0 }
 0x233   : > { %v1708_v38 = vadd.f32 %v7234_v43, %v9204_v57  ;;  %v1699_v10 = vpop.f32.mrb[81].mxu0 }
 0x234   : > { %v1700_v5 = vadd.f32 %v9194_v20, %v1699_v10  ;;  %v7235_v21 = vpop.f32.mrb[82].mxu0  ;;  %v10517_v10 = vld [vmem:[#allocation56_spill] sm:$0xff] }
 0x235   : > { %v9344_v55 = vadd.f32 %v9207_v41, %v1708_v38  ;;  %v1711_v24 = vadd.f32 %v7235_v21, %v9209_v14  ;;  %v1702_v23 = vpop.f32.mrb[83].mxu0  ;;  %v8128_v38 = vld [vmem:[#allocation9 + $0xc8] sm:$0xff]   ;;  %v10518_v21 = vld [vmem:[#allocation57_spill] sm:$0xff] }
 0x236   : > { %v9348_v50 = vadd.f32 %v9196_v40, %v1700_v5  ;;  %v1703_v46 = vadd.f32 %v9198_v44, %v1702_v23  ;;  %v10519_v23 = vld [vmem:[#allocation62_spill] sm:$0xff] }
 0x237   : > { %v9352_v48 = vadd.f32 %v9212_v34, %v1711_v24  ;;  %v10510_v34 = vld [vmem:[#allocation51_spill] sm:$0xff] }
 0x238   : > { %v9355_v57 = vadd.f32 %v9201_v62, %v1703_v46  ;;  %v10511_v62 = vld [vmem:[#allocation54_spill] sm:$0xff] }
 0x23a   : > { %v7238_v49 = vpop.f32.mrb[84].mxu0 }
 0x23b   : > { %v1724_v20 = vadd.f32 %v7238_v49, %v9226_v30  ;;  %v1715_v28 = vpop.f32.mrb[85].mxu0  ;;  %v10520_v49 = vld [vmem:[#allocation58_spill] sm:$0xff] }
 0x23c   : > { %v1716_v41 = vadd.f32 %v9216_v6, %v1715_v28  ;;  %v7239_v37 = vpop.f32.mrb[86].mxu0  ;;  %v8126_v6 = vld [vmem:[#allocation9 + $0xc0] sm:$0xff]   ;;  %v8129_v28 = vld [vmem:[#allocation9 + $0x110] sm:$0xff]  }
 0x23d   : > { %v9360_v14 = vadd.f32 %v9231_v25, %v1724_v20  ;;  %v1727_v40 = vadd.f32 %v7239_v37, %v9233_v32  ;;  %v1718_v51 = vpop.f32.mrb[87].mxu0  ;;  %v10513_v25 = vld [vmem:[#allocation59_spill] sm:$0xff]  ;;  %6929 = vmatpush3.bf16.msra.mxu0 %v8126_v6 }
 0x23e   : > { %v9364_v44 = vadd.f32 %v9218_v63, %v1716_v41  ;;  %v1719_v56 = vadd.f32 %v10510_v34, %v1718_v51  ;;  %v10514_v32 = vld [vmem:[#allocation55_spill] sm:$0xff]  ;;  %6930 = vmatprep.subr.bf16.mxu0 %v8127_v45 }
 0x23f   : > { %v9368_v3 = vadd.f32 %v10511_v62, %v1727_v40  ;;  %v8131_v41 = vld [vmem:[#allocation9 + $0xd0] sm:$0xff]  }
 0x240   : > { %v9371_v30 = vadd.f32 %v10512_v9, %v1719_v56  ;;  %v10521_v34 = vld [vmem:[#allocation63_spill] sm:$0xff]  ;;  %v8132_v9 = vld [vmem:[#allocation9 + $0x118] sm:$0xff]  }
 0x241   : > { %6931 = vmatpush3.bf16.msra.mxu0 %v8128_v38 }
 0x242   : > { %v7242_v8 = vpop.f32.mrb[88].mxu0  ;;  %6932 = vmatprep.subr.bf16.mxu0 %v8129_v28 }
 0x243   : > { %v1740_v33 = vadd.f32 %v7242_v8, %v10513_v25  ;;  %v1731_v36 = vpop.f32.mrb[89].mxu0  ;;  %v8133_v25 = vld [vmem:[#allocation9 + $0xd8] sm:$0xff]  }
 0x244   : > { %v1732_v26 = vadd.f32 %v10514_v32, %v1731_v36  ;;  %v7243_v63 = vpop.f32.mrb[90].mxu0  ;;  %v10522_v32 = vld [vmem:[#allocation64_spill] sm:$0xff] }
 0x245   : > { %v9376_v12 = vadd.f32 %v10515_v4, %v1740_v33  ;;  %v1743_v15 = vadd.f32 %v7243_v63, %v10516_v58  ;;  %v1734_v43 = vpop.f32.mrb[91].mxu0  ;;  %6933 = vmatpush3.bf16.msra.mxu0 %v8131_v41  ;;  %v8134_v63 = vld [vmem:[#allocation9 + $0x120] sm:$0xff]   ;;  %v8139_v41 = vld [vmem:[#allocation9 + $0x130] sm:$0xff]  }
 0x246   : > { %v9380_v5 = vadd.f32 %v10517_v10, %v1732_v26  ;;  %v1735_v24 = vadd.f32 %v10518_v21, %v1734_v43  ;;  %6934 = vmatprep.subr.bf16.mxu0 %v8132_v9  ;;  %v8137_v43 = vld [vmem:[#allocation9 + $0x128] sm:$0xff]   ;;  %v8143_v9 = vld [vmem:[#allocation9 + $0xf8] sm:$0xff]  }
 0x247   : > { %v9384_v46 = vadd.f32 %v10519_v23, %v1743_v15  ;;  %v8138_v10 = vld [vmem:[#allocation9 + $0xe8] sm:$0xff]   ;;  %v9406_v23 = vld [vmem:[#allocation10] ss:$0 sm:$0xff] }
 0x248   : > { %v9387_v20 = vadd.f32 %v10520_v49, %v1735_v24 }
 0x249   : > { %6935 = vmatpush3.bf16.msra.mxu0 %v8133_v25 }
 0x24a   : > { %v7246_v37 = vpop.f32.mrb[92].mxu0  ;;  %6936 = vmatprep.subr.bf16.mxu0 %v8134_v63 }
 0x24b   : > { %v1756_v40 = vadd.f32 %v7246_v37, %v9266_v22  ;;  %v1747_v51 = vpop.f32.mrb[93].mxu0  ;;  %v8141_v37 = vld [vmem:[#allocation9 + $0xf0] sm:$0xff]  }
 0x24c   : > { %v1748_v56 = vadd.f32 %v10521_v34, %v1747_v51  ;;  %v7247_v62 = vpop.f32.mrb[94].mxu0 }
 0x24d   : > { %v9392_v13 = vadd.f32 %v9268_v52, %v1756_v40  ;;  %v1759_v6 = vadd.f32 %v7247_v62, %v9270_v2  ;;  %v1750_v8 = vpop.f32.mrb[95].mxu0  ;;  %v8136_v52 = vld [vmem:[#allocation9 + $0xe0] sm:$0xff]  }
 0x24e   : > { %v9396_v33 = vadd.f32 %v9260_v54, %v1748_v56  ;;  %v1751_v36 = vadd.f32 %v9262_v16, %v1750_v8  ;;  %6937 = vmatpush3.bf16.msra.mxu0 %v8136_v52  ;;  %v8142_v56 = vld [vmem:[#allocation9 + $0x138] sm:$0xff]  }
 0x24f   : > { %v9400_v22 = vadd.f32 %v9272_v53, %v1759_v6  ;;  %6938 = vmatprep.subr.bf16.mxu0 %v8137_v43 }
 0x250   : > { %v9403_v26 = vadd.f32 %v10522_v32, %v1751_v36 }
 0x252   : > { %v6672_v45 = vpop.f32.mrb[96].mxu0  ;;  %6939 = vmatpush3.bf16.msra.mxu0 %v8138_v10 }
 0x253   : > { %v7314_v2 = vpop.f32.mrb[64].mxu1  ;;  %v6673_v4 = vpop.f32.mrb[97].mxu0  ;;  %6940 = vmatprep.subr.bf16.mxu0 %v8139_v41 }
 0x254   : > { %v6674_v58 = vadd.f32 %v6673_v4, %v6672_v45  ;;  %v2923_v54 = vpop.f32.mrb[65].mxu1  ;;  %v6675_v15 = vpop.f32.mrb[98].mxu0 }
 0x255   : > { %v7315_v16 = vpop.f32.mrb[66].mxu1  ;;  %v6676_v38 = vpop.f32.mrb[99].mxu0 }
 0x256   : > { %v7494_v53 = vadd.f32 %v9281_v19, %v6674_v58  ;;  %v6677_v21 = vadd.f32 %v6676_v38, %v6675_v15  ;;  %v2926_v24 = vpop.f32.mrb[67].mxu1  ;;  %6941 = vmatpush3.bf16.msra.mxu0 %v8141_v37 }
 0x257   : > { %6942 = vmatprep.subr.bf16.mxu0 %v8142_v56 }
 0x258   : > { %v7495_v49 = vadd.f32 %v7494_v53, %v2923_v54  ;;  %v7502_v28 = vadd.f32 %v9288_v39, %v6677_v21 }
 0x25a   : > { %v3153_v40 = vadd.f32 %v7495_v49, %v9406_v23  ;;  %v7503_v51 = vadd.f32 %v7502_v28, %v2926_v24  ;;  %v6678_v34 = vpop.f32.mrb[100].mxu0  ;;  %6943 = vmatpush3.bf16.msra.mxu0 %v8143_v9 }
 0x25b   : > { %v9410_v62 = vpop.f32.mrb[68].mxu1  ;;  %v6679_v19 = vpop.f32.mrb[101].mxu0 }
 0x25c   : > { %v3154_v6 = vadd.f32 %v7503_v51, %v9406_v23  ;;  %v6680_v8 = vadd.f32 %v6679_v19, %v6678_v34  ;;  %v2939_v25 = vpop.f32.mrb[69].mxu1  ;;  %v6681_v36 = vpop.f32.mrb[102].mxu0  ;;  %v3185_v63 = vmax.f32 %v3153_v40, 0.0 }
 0x25d   : > { %v9413_v39 = vpop.f32.mrb[70].mxu1  ;;  %v6682_v32 = vpop.f32.mrb[103].mxu0 }
 0x25e   : > { %v3186_v52 = vmax.f32 %v3154_v6, 0.0  ;;  %v7490_v45 = vadd.f32 %v9277_v11, %v6680_v8  ;;  %v6683_v4 = vadd.f32 %v6682_v32, %v6681_v36  ;;  %v2942_v58 = vpop.f32.mrb[71].mxu1  ;;  %v8162_v32 = vld [vmem:[#allocation9 + $0x210] sm:$0xff]  }
 0x260   : > { %v9416_v54 = vpack.c.bf16 %v3186_v52, %v3185_v63  ;;  %v7491_v15 = vadd.f32 %v7490_v45, %v7314_v2  ;;  %v7498_v43 = vadd.f32 %v9285_v0, %v6683_v4 }
 0x262   : > { %v3155_v38 = vadd.f32 %v7491_v15, %v9406_v23  ;;  %v7499_v10 = vadd.f32 %v7498_v43, %v7315_v16  ;;  %v6684_v53 = vpop.f32.mrb[104].mxu0  ;;  %3956 = vmatprep.mubr.bf16.mxu0 %v9416_v54  ;;  %v3353_v21 = vshrl.u32 %v9416_v54, 16  ;;  %v3356_v11 = vshll.u32 %v9416_v54, 16  ;;  %v8184_v15 = vld [vmem:[%s8684_s16 + $0xc] sm:$0xff]   ;;  %v8121_v43 = vld [vmem:[#allocation9 + $0x148] sm:$0xff]  }
 0x263   : > { %v9423_v24 = vpop.f32.mrb[72].mxu1  ;;  %v6685_v49 = vpop.f32.mrb[105].mxu0 }
 0x264   : > { %v3156_v28 = vadd.f32 %v7499_v10, %v9406_v23  ;;  %v6686_v2 = vadd.f32 %v6685_v49, %v6684_v53  ;;  %v9426_v41 = vpop.f32.mrb[73].mxu1  ;;  %v6687_v0 = vpop.f32.mrb[106].mxu0  ;;  %v3355_v37 = vrot.slane %v3353_v21, 7  ;;  %v3187_v40 = vmax.f32 %v3155_v38, 0.0  ;;  %v10528_v38 = vld [vmem:[#allocation34_spill] sm:$0xff] }
 0x265   : > { %v9428_v16 = vpop.f32.mrb[74].mxu1  ;;  %v6688_v51 = vpop.f32.mrb[107].mxu0  ;;  %v3547_v56 = vrot.slane %v3356_v11, 1 }
 0x266   : > { %v3188_v19 = vmax.f32 %v3156_v28, 0.0  ;;  %v7510_v9 = vadd.f32 %v9297_v17, %v6686_v2  ;;  %v6689_v6 = vadd.f32 %v6688_v51, %v6687_v0  ;;  %v9437_v8 = vpop.f32.mrb[75].mxu1  ;;  %v3358_v36 = vor.u32 %v3356_v11, %v3355_v37  ;;  %v8122_v51 = vld [vmem:[#allocation9 + $0x150] sm:$0xff]  }
 0x267   : > { %v3548_v63 = vor.u32 %v3547_v56, %v3353_v21 }
 0x268   : > { %v9445_v52 = vpack.c.bf16 %v3188_v19, %v3187_v40  ;;  %v7511_v45 = vadd.f32 %v7510_v9, %v2939_v25  ;;  %v7518_v4 = vadd.f32 %v9304_v60, %v6689_v6  ;;  %v9451_v17 = vsel %vm9432_vm4, %v3358_v36, %v8184_v15 }
 0x269   : > { %3957 = vmatmul.mubr.bf16.gmra.mrb[164].mxu0 %v9451_v17  ;;  %v9457_v10 = vsel %vm9441_vm5, %v3548_v63, %v10528_v38 }
 0x26a   : > { %10527 = vst [vmem:[#allocation51_spill] sm:$0xff] %v9445_v52  ;;  %v3157_v53 = vadd.f32 %v7511_v45, %v9406_v23  ;;  %v7519_v21 = vadd.f32 %v7518_v4, %v2942_v58  ;;  %7361 = vmatmul.mubr.bf16.vlgmr.msra.gmra.mrb[96].mxu1 %v9457_v10  ;;  %v6690_v25 = vpop.f32.mrb[108].mxu0  ;;  %3964 = vmatprep.mubr.bf16.mxu0 %v9445_v52  ;;  %v3360_v60 = vshrl.u32 %v9445_v52, 16  ;;  %v3363_v11 = vshll.u32 %v9445_v52, 16 }
 0x26b   : > { %v9464_v49 = vpop.f32.mrb[76].mxu1  ;;  %v6691_v28 = vpop.f32.mrb[109].mxu0  ;;  %7393 = vmatpush3.bf16.msra.mxu1 %v9322_v61 }
 0x26c   : > { %v3158_v2 = vadd.f32 %v7519_v21, %v9406_v23  ;;  %v6692_v0 = vadd.f32 %v6691_v28, %v6690_v25  ;;  %v9468_v37 = vpop.f32.mrb[77].mxu1  ;;  %v6693_v58 = vpop.f32.mrb[110].mxu0  ;;  %v3362_v40 = vrot.slane %v3360_v60, 7  ;;  %7394 = vmatprep.subr.bf16.mxu1 %v8121_v43  ;;  %v3189_v56 = vmax.f32 %v3157_v53, 0.0  ;;  %v8185_v53 = vld [vmem:[%s8684_s16 + $0x18] sm:$0xff]  }
 0x26d   : > { %v9470_v19 = vpop.f32.mrb[78].mxu1  ;;  %v6694_v9 = vpop.f32.mrb[111].mxu0  ;;  %v3549_v6 = vrot.slane %v3363_v11, 1 }
 0x26e   : > { %v3190_v36 = vmax.f32 %v3158_v2, 0.0  ;;  %v7506_v63 = vadd.f32 %v9293_v47, %v6692_v0  ;;  %v6695_v45 = vadd.f32 %v6694_v9, %v6693_v58  ;;  %v9473_v61 = vpop.f32.mrb[79].mxu1  ;;  %v3365_v4 = vor.u32 %v3363_v11, %v3362_v40  ;;  %v8123_v2 = vld [vmem:[#allocation9 + $0x158] sm:$0xff]   ;;  %v10531_v47 = vld [vmem:[#allocation35_spill] sm:$0xff] }
 0x26f   : > { %v3550_v15 = vor.u32 %v3549_v6, %v3360_v60  ;;  %7395 = vmatpush3.bf16.msra.mxu1 %v8121_v43 }
 0x270   : > { %v9475_v38 = vpack.c.bf16 %v3190_v36, %v3189_v56  ;;  %v7507_v21 = vadd.f32 %v7506_v63, %v9410_v62  ;;  %v7514_v25 = vadd.f32 %v9301_v31, %v6695_v45  ;;  %v9482_v28 = vsel %vm9432_vm4, %v3365_v4, %v8185_v53  ;;  %7396 = vmatprep.subr.bf16.mxu1 %v8122_v51  ;;  %v8125_v63 = vld [vmem:[#allocation9 + $0x160] sm:$0xff]  }
 0x271   : > { %10530 = vst [vmem:[#allocation52_spill] sm:$0xff] %v9482_v28  ;;  %3965 = vmatmul.mubr.bf16.gmra.mrb[168].mxu0 %v9482_v28  ;;  %v9488_v60 = vsel %vm9441_vm5, %v3550_v15, %v10531_v47 }
 0x272   : > { %10529 = vst [vmem:[#allocation54_spill] sm:$0xff] %v9475_v38  ;;  %v3159_v43 = vadd.f32 %v7507_v21, %v9406_v23  ;;  %v7515_v62 = vadd.f32 %v7514_v25, %v9413_v39  ;;  %7364 = vmatprep.mubr.bf16.mxu1 %v9488_v60  ;;  %v6696_v31 = vpop.f32.mrb[112].mxu0  ;;  %3972 = vmatprep.mubr.bf16.mxu0 %v9475_v38  ;;  %v3367_v11 = vshrl.u32 %v9475_v38, 16  ;;  %v3370_v0 = vshll.u32 %v9475_v38, 16 }
 0x273   : > { %v9496_v58 = vpop.f32.mrb[80].mxu1  ;;  %v6697_v40 = vpop.f32.mrb[113].mxu0  ;;  %7397 = vmatpush3.bf16.msra.mxu1 %v8122_v51 }
 0x274   : > { %v3160_v56 = vadd.f32 %v7515_v62, %v9406_v23  ;;  %v6698_v9 = vadd.f32 %v6697_v40, %v6696_v31  ;;  %v9499_v6 = vpop.f32.mrb[81].mxu1  ;;  %v6699_v36 = vpop.f32.mrb[114].mxu0  ;;  %v3369_v39 = vrot.slane %v3367_v11, 7  ;;  %7398 = vmatprep.subr.bf16.mxu1 %v8123_v2  ;;  %v3191_v45 = vmax.f32 %v3159_v43, 0.0  ;;  %v8186_v43 = vld [vmem:[%s8684_s16 + $0x24] sm:$0xff]  }
 0x275   : > { %v9501_v4 = vpop.f32.mrb[82].mxu1  ;;  %v6700_v15 = vpop.f32.mrb[115].mxu0  ;;  %v3551_v21 = vrot.slane %v3370_v0, 1 }
 0x276   : > { %v3192_v25 = vmax.f32 %v3160_v56, 0.0  ;;  %v7526_v53 = vadd.f32 %v9313_v59, %v6698_v9  ;;  %v6701_v47 = vadd.f32 %v6700_v15, %v6699_v36  ;;  %v9504_v51 = vpop.f32.mrb[83].mxu1  ;;  %v3372_v62 = vor.u32 %v3370_v0, %v3369_v39  ;;  %v8130_v56 = vld [vmem:[#allocation9 + $0x168] sm:$0xff]   ;;  %v10534_v59 = vld [vmem:[#allocation36_spill] sm:$0xff] }
 0x277   : > { %v3552_v31 = vor.u32 %v3551_v21, %v3367_v11  ;;  %7399 = vmatpush3.bf16.msra.mxu1 %v8123_v2 }
 0x278   : > { %v9506_v40 = vpack.c.bf16 %v3192_v25, %v3191_v45  ;;  %v7527_v38 = vadd.f32 %v7526_v53, %v9426_v41  ;;  %v7534_v28 = vadd.f32 %v9320_v35, %v6701_v47  ;;  %v9513_v52 = vsel %vm9432_vm4, %v3372_v62, %v8186_v43  ;;  %7400 = vmatprep.subr.bf16.mxu1 %v8125_v63 }
 0x279   : > { %10533 = vst [vmem:[#allocation55_spill] sm:$0xff] %v9513_v52  ;;  %3973 = vmatmul.mubr.bf16.gmra.mrb[172].mxu0 %v9513_v52  ;;  %v9519_v11 = vsel %vm9441_vm5, %v3552_v31, %v10534_v59 }
 0x27a   : > { %10532 = vst [vmem:[#allocation59_spill] sm:$0xff] %v9506_v40  ;;  %10535 = vst [vmem:[#allocation60_spill] sm:$0xff] %v9519_v11  ;;  %v3161_v2 = vadd.f32 %v7527_v38, %v9406_v23  ;;  %v7535_v41 = vadd.f32 %v7534_v28, %v9437_v8  ;;  %7365 = vmatmul.mubr.bf16.gmra.mrb[100].mxu1 %v9519_v11  ;;  %v6702_v35 = vpop.f32.mrb[116].mxu0  ;;  %3980 = vmatprep.mubr.bf16.mxu0 %v9506_v40  ;;  %v3374_v0 = vshrl.u32 %v9506_v40, 16  ;;  %v8135_v28 = vld [vmem:[#allocation9 + $0x170] sm:$0xff]  }
 0x27b   : > { %v3377_v9 = vshll.u32 %v9506_v40, 16  ;;  %v9527_v36 = vpop.f32.mrb[84].mxu1  ;;  %v6703_v39 = vpop.f32.mrb[117].mxu0  ;;  %7401 = vmatpush3.bf16.msra.mxu1 %v8125_v63 }
 0x27c   : > { %v3162_v45 = vadd.f32 %v7535_v41, %v9406_v23  ;;  %v6704_v15 = vadd.f32 %v6703_v39, %v6702_v35  ;;  %v9530_v21 = vpop.f32.mrb[85].mxu1  ;;  %v6705_v38 = vpop.f32.mrb[118].mxu0  ;;  %v3376_v8 = vrot.slane %v3374_v0, 7  ;;  %7402 = vmatprep.subr.bf16.mxu1 %v8130_v56  ;;  %v3193_v25 = vmax.f32 %v3161_v2, 0.0  ;;  %v8187_v2 = vld [vmem:[%s8684_s16 + $0x30] sm:$0xff]  }
 0x27d   : > { %v9532_v53 = vpop.f32.mrb[86].mxu1  ;;  %v6706_v47 = vpop.f32.mrb[119].mxu0  ;;  %v3553_v62 = vrot.slane %v3377_v9, 1 }
 0x27e   : > { %v3194_v31 = vmax.f32 %v3162_v45, 0.0  ;;  %v7522_v43 = vadd.f32 %v9309_v7, %v6704_v15  ;;  %v6707_v59 = vadd.f32 %v6706_v47, %v6705_v38  ;;  %v9535_v63 = vpop.f32.mrb[87].mxu1  ;;  %v3379_v41 = vor.u32 %v3377_v9, %v3376_v8  ;;  %v8140_v45 = vld [vmem:[#allocation9 + $0x178] sm:$0xff]  }
 0x27f   : > { %v3554_v35 = vor.u32 %v3553_v62, %v3374_v0  ;;  %7403 = vmatpush3.bf16.msra.mxu1 %v8130_v56  ;;  %v10538_v7 = vld [vmem:[#allocation37_spill] sm:$0xff] }
 0x280   : > { %v9537_v39 = vpack.c.bf16 %v3194_v31, %v3193_v25  ;;  %v7523_v40 = vadd.f32 %v7522_v43, %v9423_v24  ;;  %v7530_v52 = vadd.f32 %v9317_v29, %v6707_v59  ;;  %v9544_v11 = vsel %vm9432_vm4, %v3379_v41, %v8187_v2  ;;  %7404 = vmatprep.subr.bf16.mxu1 %v8135_v28 }
 0x281   : > { %10537 = vst [vmem:[#allocation56_spill] sm:$0xff] %v9544_v11  ;;  %3981 = vmatmul.mubr.bf16.gmra.mrb[176].mxu0 %v9544_v11  ;;  %v9550_v0 = vsel %vm9441_vm5, %v3554_v35, %v10538_v7 }
 0x282   : > { %10536 = vst [vmem:[#allocation61_spill] sm:$0xff] %v9537_v39  ;;  %10539 = vst [vmem:[#allocation57_spill] sm:$0xff] %v9550_v0  ;;  %v3163_v56 = vadd.f32 %v7523_v40, %v9406_v23  ;;  %v7531_v24 = vadd.f32 %v7530_v52, %v9428_v16  ;;  %7368 = vmatprep.mubr.bf16.mxu1 %v9550_v0  ;;  %v6708_v29 = vpop.f32.mrb[120].mxu0  ;;  %3988 = vmatprep.mubr.bf16.mxu0 %v9537_v39  ;;  %v3381_v9 = vshrl.u32 %v9537_v39, 16  ;;  %v8144_v52 = vld [vmem:[#allocation9 + $0x1c0] sm:$0xff]  }
 0x283   : > { %v3384_v15 = vshll.u32 %v9537_v39, 16  ;;  %v9558_v38 = vpop.f32.mrb[88].mxu1  ;;  %v6709_v8 = vpop.f32.mrb[121].mxu0  ;;  %7405 = vmatpush3.bf16.msra.mxu1 %v8135_v28 }
 0x284   : > { %v3164_v25 = vadd.f32 %v7531_v24, %v9406_v23  ;;  %v6710_v47 = vadd.f32 %v6709_v8, %v6708_v29  ;;  %v9561_v62 = vpop.f32.mrb[89].mxu1  ;;  %v6711_v40 = vpop.f32.mrb[122].mxu0  ;;  %v3383_v16 = vrot.slane %v3381_v9, 7  ;;  %7406 = vmatprep.subr.bf16.mxu1 %v8140_v45  ;;  %v3195_v31 = vmax.f32 %v3163_v56, 0.0  ;;  %v8188_v56 = vld [vmem:[%s8684_s16 + $0x3c] sm:$0xff]  }
 0x285   : > { %v9563_v43 = vpop.f32.mrb[90].mxu1  ;;  %v6712_v59 = vpop.f32.mrb[123].mxu0  ;;  %v3555_v41 = vrot.slane %v3384_v15, 1 }
 0x286   : > { %v3196_v35 = vmax.f32 %v3164_v25, 0.0  ;;  %v7542_v2 = vadd.f32 %v9332_v27, %v6710_v47  ;;  %v6713_v7 = vadd.f32 %v6712_v59, %v6711_v40  ;;  %v9566_v28 = vpop.f32.mrb[91].mxu1  ;;  %v3386_v24 = vor.u32 %v3384_v15, %v3383_v16  ;;  %v10541_v27 = vld [vmem:[#allocation38_spill] sm:$0xff] }
 0x287   : > { %v3556_v29 = vor.u32 %v3555_v41, %v3381_v9  ;;  %7407 = vmatpush3.bf16.msra.mxu1 %v8140_v45 }
 0x288   : > { %v9568_v8 = vpack.c.bf16 %v3196_v35, %v3195_v31  ;;  %v7543_v39 = vadd.f32 %v7542_v2, %v9468_v37  ;;  %v7550_v11 = vadd.f32 %v9339_v18, %v6713_v7  ;;  %v9575_v0 = vsel %vm9432_vm4, %v3386_v24, %v8188_v56  ;;  %7064 = vmatprep.subr.bf16.mxu1 %v8144_v52 }
 0x289   : > { %3989 = vmatmul.mubr.bf16.gmra.mrb[180].mxu0 %v9575_v0  ;;  %v9581_v15 = vsel %vm9441_vm5, %v3556_v29, %v10541_v27 }
 0x28a   : > { %10540 = vst [vmem:[#allocation62_spill] sm:$0xff] %v9568_v8  ;;  %v3165_v45 = vadd.f32 %v7543_v39, %v9406_v23  ;;  %v7551_v9 = vadd.f32 %v7550_v11, %v9473_v61  ;;  %7369 = vmatmul.mubr.bf16.gmra.mrb[104].mxu1 %v9581_v15  ;;  %v6714_v18 = vpop.f32.mrb[124].mxu0  ;;  %3996 = vmatprep.mubr.bf16.mxu0 %v9568_v8  ;;  %v3388_v37 = vshrl.u32 %v9568_v8, 16  ;;  %v3391_v25 = vshll.u32 %v9568_v8, 16  ;;  %v8189_v8 = vld [vmem:[%s8684_s16 + $0x48] sm:$0xff]  }
 0x28b   : > { %v9589_v47 = vpop.f32.mrb[92].mxu1  ;;  %v6715_v40 = vpop.f32.mrb[125].mxu0 }
 0x28c   : > { %v3166_v16 = vadd.f32 %v7551_v9, %v9406_v23  ;;  %v6716_v52 = vadd.f32 %v6715_v40, %v6714_v18  ;;  %v9592_v31 = vpop.f32.mrb[93].mxu1  ;;  %v6717_v39 = vpop.f32.mrb[126].mxu0  ;;  %v3390_v61 = vrot.slane %v3388_v37, 7  ;;  %v3197_v11 = vmax.f32 %v3165_v45, 0.0 }
 0x28d   : > { %v9594_v59 = vpop.f32.mrb[94].mxu1  ;;  %v6718_v41 = vpop.f32.mrb[127].mxu0  ;;  %v3557_v35 = vrot.slane %v3391_v25, 1 }
 0x28e   : > { %v3198_v2 = vmax.f32 %v3166_v16, 0.0  ;;  %v7538_v7 = vadd.f32 %v9328_v42, %v6716_v52  ;;  %v6719_v24 = vadd.f32 %v6718_v41, %v6717_v39  ;;  %v9597_v29 = vpop.f32.mrb[95].mxu1  ;;  %v3393_v56 = vor.u32 %v3391_v25, %v3390_v61  ;;  %v10544_v16 = vld [vmem:[#allocation39_spill] sm:$0xff] }
 0x28f   : > { %v3558_v27 = vor.u32 %v3557_v35, %v3388_v37 }
 0x290   : > { %v9599_v9 = vpack.c.bf16 %v3198_v2, %v3197_v11  ;;  %v7539_v18 = vadd.f32 %v7538_v7, %v9464_v49  ;;  %v7546_v40 = vadd.f32 %v9336_v1, %v6719_v24  ;;  %v9606_v45 = vsel %vm9432_vm4, %v3393_v56, %v8189_v8 }
 0x291   : > { %10543 = vst [vmem:[#allocation63_spill] sm:$0xff] %v9606_v45  ;;  %3997 = vmatmul.mubr.bf16.gmra.mrb[184].mxu0 %v9606_v45  ;;  %v9612_v42 = vsel %vm9441_vm5, %v3558_v27, %v10544_v16  ;;  %v8190_v45 = vld [vmem:[%s8684_s16 + $0x54] sm:$0xff]  }
 0x292   : > { %10542 = vst [vmem:[#allocation58_spill] sm:$0xff] %v9599_v9  ;;  %v3167_v37 = vadd.f32 %v7539_v18, %v9406_v23  ;;  %v7547_v25 = vadd.f32 %v7546_v40, %v9470_v19  ;;  %7372 = vmatprep.mubr.bf16.mxu1 %v9612_v42  ;;  %v6720_v49 = vpop.f32.mrb[128].mxu0  ;;  %4004 = vmatprep.mubr.bf16.mxu0 %v9599_v9  ;;  %v3395_v1 = vshrl.u32 %v9599_v9, 16  ;;  %v3398_v8 = vshll.u32 %v9599_v9, 16 }
 0x293   : > { %v6721_v52 = vpop.f32.mrb[129].mxu0 }
 0x294   : > { %v3168_v39 = vadd.f32 %v7547_v25, %v9406_v23  ;;  %v6722_v61 = vadd.f32 %v6721_v52, %v6720_v49  ;;  %v6723_v11 = vpop.f32.mrb[130].mxu0  ;;  %v3397_v41 = vrot.slane %v3395_v1, 7  ;;  %v3199_v35 = vmax.f32 %v3167_v37, 0.0  ;;  %v10545_v37 = vld [vmem:[#allocation40_spill] sm:$0xff] }
 0x295   : > { %v6724_v2 = vpop.f32.mrb[131].mxu0  ;;  %v3559_v7 = vrot.slane %v3398_v8, 1 }
 0x296   : > { %v3200_v19 = vmax.f32 %v3168_v39, 0.0  ;;  %v7558_v24 = vadd.f32 %v9348_v50, %v6722_v61  ;;  %v6725_v56 = vadd.f32 %v6724_v2, %v6723_v11  ;;  %v3400_v27 = vor.u32 %v3398_v8, %v3397_v41 }
 0x297   : > { %v3560_v18 = vor.u32 %v3559_v7, %v3395_v1 }
 0x298   : > { %v9622_v40 = vpack.c.bf16 %v3200_v19, %v3199_v35  ;;  %v7559_v16 = vadd.f32 %v7558_v24, %v9499_v6  ;;  %v7566_v9 = vadd.f32 %v9355_v57, %v6725_v56  ;;  %v9629_v25 = vsel %vm9432_vm4, %v3400_v27, %v8190_v45 }
 0x299   : > { %4005 = vmatmul.mubr.bf16.gmra.mrb[188].mxu0 %v9629_v25  ;;  %v9635_v50 = vsel %vm9441_vm5, %v3560_v18, %v10545_v37 }
 0x29a   : > { %v3169_v49 = vadd.f32 %v7559_v16, %v9406_v23  ;;  %v7567_v1 = vadd.f32 %v7566_v9, %v9504_v51  ;;  %7373 = vmatmul.mubr.bf16.gmra.mrb[108].mxu1 %v9635_v50  ;;  %v6726_v6 = vpop.f32.mrb[132].mxu0  ;;  %4012 = vmatprep.mubr.bf16.mxu0 %v9622_v40  ;;  %v3402_v57 = vshrl.u32 %v9622_v40, 16  ;;  %v3405_v45 = vshll.u32 %v9622_v40, 16  ;;  %v8191_v16 = vld [vmem:[%s8684_s16 + $0x60] sm:$0xff]  }
 0x29b   : > { %v6727_v8 = vpop.f32.mrb[133].mxu0 }
 0x29c   : > { %v3170_v52 = vadd.f32 %v7567_v1, %v9406_v23  ;;  %v6728_v39 = vadd.f32 %v6727_v8, %v6726_v6  ;;  %v6729_v61 = vpop.f32.mrb[134].mxu0  ;;  %v3404_v11 = vrot.slane %v3402_v57, 7  ;;  %v3201_v41 = vmax.f32 %v3169_v49, 0.0  ;;  %v10546_v49 = vld [vmem:[#allocation41_spill] sm:$0xff] }
 0x29d   : > { %v6730_v35 = vpop.f32.mrb[135].mxu0  ;;  %v3561_v2 = vrot.slane %v3405_v45, 1 }
 0x29e   : > { %v3202_v51 = vmax.f32 %v3170_v52, 0.0  ;;  %v7554_v9 = vadd.f32 %v9344_v55, %v6728_v39  ;;  %v6731_v7 = vadd.f32 %v6730_v35, %v6729_v61  ;;  %v3407_v19 = vor.u32 %v3405_v45, %v3404_v11 }
 0x29f   : > { %v3562_v24 = vor.u32 %v3561_v2, %v3402_v57 }
 0x2a0   : > { %v9645_v56 = vpack.c.bf16 %v3202_v51, %v3201_v41  ;;  %v7555_v27 = vadd.f32 %v7554_v9, %v9496_v58  ;;  %v7562_v18 = vadd.f32 %v9352_v48, %v6731_v7  ;;  %v9652_v37 = vsel %vm9432_vm4, %v3407_v19, %v8191_v16 }
 0x2a1   : > { %4013 = vmatmul.mubr.bf16.gmra.mrb[192].mxu0 %v9652_v37  ;;  %v9658_v55 = vsel %vm9441_vm5, %v3562_v24, %v10546_v49  ;;  %v10547_v49 = vld [vmem:[#allocation42_spill] sm:$0xff] }
 0x2a2   : > { %v3171_v1 = vadd.f32 %v7555_v27, %v9406_v23  ;;  %v7563_v6 = vadd.f32 %v7562_v18, %v9501_v4  ;;  %7376 = vmatprep.mubr.bf16.mxu1 %v9658_v55  ;;  %v6732_v58 = vpop.f32.mrb[136].mxu0  ;;  %4020 = vmatprep.mubr.bf16.mxu0 %v9645_v56  ;;  %v3409_v48 = vshrl.u32 %v9645_v56, 16  ;;  %v3412_v57 = vshll.u32 %v9645_v56, 16  ;;  %v8192_v18 = vld [vmem:[%s8684_s16 + $0x6c] sm:$0xff]  }
 0x2a3   : > { %v6733_v45 = vpop.f32.mrb[137].mxu0 }
 0x2a4   : > { %v3172_v8 = vadd.f32 %v7563_v6, %v9406_v23  ;;  %v6734_v52 = vadd.f32 %v6733_v45, %v6732_v58  ;;  %v6735_v39 = vpop.f32.mrb[138].mxu0  ;;  %v3411_v61 = vrot.slane %v3409_v48, 7  ;;  %v3203_v11 = vmax.f32 %v3171_v1, 0.0 }
 0x2a5   : > { %v6736_v41 = vpop.f32.mrb[139].mxu0  ;;  %v3563_v35 = vrot.slane %v3412_v57, 1 }
 0x2a6   : > { %v3204_v4 = vmax.f32 %v3172_v8, 0.0  ;;  %v7574_v2 = vadd.f32 %v9364_v44, %v6734_v52  ;;  %v6737_v51 = vadd.f32 %v6736_v41, %v6735_v39  ;;  %v3414_v9 = vor.u32 %v3412_v57, %v3411_v61 }
 0x2a7   : > { %v3564_v7 = vor.u32 %v3563_v35, %v3409_v48 }
 0x2a8   : > { %v9668_v19 = vpack.c.bf16 %v3204_v4, %v3203_v11  ;;  %v7575_v24 = vadd.f32 %v7574_v2, %v9530_v21  ;;  %v7582_v27 = vadd.f32 %v9371_v30, %v6737_v51  ;;  %v9675_v16 = vsel %vm9432_vm4, %v3414_v9, %v8192_v18  ;;  %v10548_v18 = vld [vmem:[#allocation43_spill] sm:$0xff] }
 0x2a9   : > { %4021 = vmatmul.mubr.bf16.gmra.mrb[196].mxu0 %v9675_v16  ;;  %v9681_v44 = vsel %vm9441_vm5, %v3564_v7, %v10547_v49 }
 0x2aa   : > { %v3173_v1 = vadd.f32 %v7575_v24, %v9406_v23  ;;  %v7583_v6 = vadd.f32 %v7582_v27, %v9535_v63  ;;  %7377 = vmatmul.mubr.bf16.gmra.mrb[112].mxu1 %v9681_v44  ;;  %v6738_v21 = vpop.f32.mrb[140].mxu0  ;;  %4028 = vmatprep.mubr.bf16.mxu0 %v9668_v19  ;;  %v3416_v30 = vshrl.u32 %v9668_v19, 16  ;;  %v3419_v58 = vshll.u32 %v9668_v19, 16  ;;  %v8193_v24 = vld [vmem:[%s8684_s16 + $0x78] sm:$0xff]  }
 0x2ab   : > { %v6739_v48 = vpop.f32.mrb[141].mxu0 }
 0x2ac   : > { %v3174_v57 = vadd.f32 %v7583_v6, %v9406_v23  ;;  %v6740_v45 = vadd.f32 %v6739_v48, %v6738_v21  ;;  %v6741_v8 = vpop.f32.mrb[142].mxu0  ;;  %v3418_v52 = vrot.slane %v3416_v30, 7  ;;  %v3205_v39 = vmax.f32 %v3173_v1, 0.0 }
 0x2ad   : > { %v6742_v61 = vpop.f32.mrb[143].mxu0  ;;  %v3565_v11 = vrot.slane %v3419_v58, 1 }
 0x2ae   : > { %v3206_v63 = vmax.f32 %v3174_v57, 0.0  ;;  %v7570_v41 = vadd.f32 %v9360_v14, %v6740_v45  ;;  %v6743_v35 = vadd.f32 %v6742_v61, %v6741_v8  ;;  %v3421_v4 = vor.u32 %v3419_v58, %v3418_v52 }
 0x2af   : > { %v3566_v2 = vor.u32 %v3565_v11, %v3416_v30 }
 0x2b0   : > { %v9691_v51 = vpack.c.bf16 %v3206_v63, %v3205_v39  ;;  %v7571_v9 = vadd.f32 %v7570_v41, %v9527_v36  ;;  %v7578_v7 = vadd.f32 %v9368_v3, %v6743_v35  ;;  %v9698_v27 = vsel %vm9432_vm4, %v3421_v4, %v8193_v24 }
 0x2b1   : > { %4029 = vmatmul.mubr.bf16.gmra.mrb[200].mxu0 %v9698_v27  ;;  %v9704_v14 = vsel %vm9441_vm5, %v3566_v2, %v10548_v18  ;;  %v8194_v2 = vld [vmem:[%s8684_s16 + $0x84] sm:$0xff]  }
 0x2b2   : > { %v3175_v49 = vadd.f32 %v7571_v9, %v9406_v23  ;;  %v7579_v1 = vadd.f32 %v7578_v7, %v9532_v53  ;;  %7380 = vmatprep.mubr.bf16.mxu1 %v9704_v14  ;;  %v6744_v36 = vpop.f32.mrb[144].mxu0  ;;  %4036 = vmatprep.mubr.bf16.mxu0 %v9691_v51  ;;  %v3423_v3 = vshrl.u32 %v9691_v51, 16  ;;  %v3426_v6 = vshll.u32 %v9691_v51, 16  ;;  %v10549_v7 = vld [vmem:[#allocation44_spill] sm:$0xff] }
 0x2b3   : > { %v6745_v21 = vpop.f32.mrb[145].mxu0 }
 0x2b4   : > { %v3176_v30 = vadd.f32 %v7579_v1, %v9406_v23  ;;  %v6746_v58 = vadd.f32 %v6745_v21, %v6744_v36  ;;  %v6747_v48 = vpop.f32.mrb[146].mxu0  ;;  %v3425_v57 = vrot.slane %v3423_v3, 7  ;;  %v3207_v45 = vmax.f32 %v3175_v49, 0.0 }
 0x2b5   : > { %v6748_v8 = vpop.f32.mrb[147].mxu0  ;;  %v3567_v52 = vrot.slane %v3426_v6, 1 }
 0x2b6   : > { %v3208_v53 = vmax.f32 %v3176_v30, 0.0  ;;  %v7590_v39 = vadd.f32 %v9380_v5, %v6746_v58  ;;  %v6749_v61 = vadd.f32 %v6748_v8, %v6747_v48  ;;  %v3428_v11 = vor.u32 %v3426_v6, %v3425_v57 }
 0x2b7   : > { %v3568_v63 = vor.u32 %v3567_v52, %v3423_v3 }
 0x2b8   : > { %v9714_v41 = vpack.c.bf16 %v3208_v53, %v3207_v45  ;;  %v7591_v35 = vadd.f32 %v7590_v39, %v9561_v62  ;;  %v7598_v4 = vadd.f32 %v9387_v20, %v6749_v61  ;;  %v9721_v9 = vsel %vm9432_vm4, %v3428_v11, %v8194_v2  ;;  %v8195_v11 = vld [vmem:[%s8684_s16 + $0x90] sm:$0xff]  }
 0x2b9   : > { %4037 = vmatmul.mubr.bf16.gmra.mrb[204].mxu0 %v9721_v9  ;;  %v9727_v5 = vsel %vm9441_vm5, %v3568_v63, %v10549_v7 }
 0x2ba   : > { %v3177_v24 = vadd.f32 %v7591_v35, %v9406_v23  ;;  %v7599_v18 = vadd.f32 %v7598_v4, %v9566_v28  ;;  %7381 = vmatmul.mubr.bf16.gmra.mrb[116].mxu1 %v9727_v5  ;;  %v6750_v62 = vpop.f32.mrb[148].mxu0  ;;  %4044 = vmatprep.mubr.bf16.mxu0 %v9714_v41  ;;  %v3430_v20 = vshrl.u32 %v9714_v41, 16  ;;  %v3433_v49 = vshll.u32 %v9714_v41, 16  ;;  %v10550_v35 = vld [vmem:[#allocation45_spill] sm:$0xff] }
 0x2bb   : > { %v6751_v1 = vpop.f32.mrb[149].mxu0 }
 0x2bc   : > { %v3178_v36 = vadd.f32 %v7599_v18, %v9406_v23  ;;  %v6752_v3 = vadd.f32 %v6751_v1, %v6750_v62  ;;  %v6753_v6 = vpop.f32.mrb[150].mxu0  ;;  %v3432_v21 = vrot.slane %v3430_v20, 7  ;;  %v3209_v30 = vmax.f32 %v3177_v24, 0.0 }
 0x2bd   : > { %v6754_v58 = vpop.f32.mrb[151].mxu0  ;;  %v3569_v48 = vrot.slane %v3433_v49, 1 }
 0x2be   : > { %v3210_v28 = vmax.f32 %v3178_v36, 0.0  ;;  %v7586_v57 = vadd.f32 %v9376_v12, %v6752_v3  ;;  %v6755_v45 = vadd.f32 %v6754_v58, %v6753_v6  ;;  %v3435_v8 = vor.u32 %v3433_v49, %v3432_v21 }
 0x2bf   : > { %v3570_v52 = vor.u32 %v3569_v48, %v3430_v20 }
 0x2c0   : > { %v9737_v53 = vpack.c.bf16 %v3210_v28, %v3209_v30  ;;  %v7587_v39 = vadd.f32 %v7586_v57, %v9558_v38  ;;  %v7594_v61 = vadd.f32 %v9384_v46, %v6755_v45  ;;  %v9744_v63 = vsel %vm9432_vm4, %v3435_v8, %v8195_v11  ;;  %v8196_v45 = vld [vmem:[%s8684_s16 + $0x9c] sm:$0xff]  }
 0x2c1   : > { %4045 = vmatmul.mubr.bf16.gmra.mrb[208].mxu0 %v9744_v63  ;;  %v9750_v12 = vsel %vm9441_vm5, %v3570_v52, %v10550_v35  ;;  %v10551_v52 = vld [vmem:[#allocation46_spill] sm:$0xff] }
 0x2c2   : > { %v3179_v4 = vadd.f32 %v7587_v39, %v9406_v23  ;;  %v7595_v2 = vadd.f32 %v7594_v61, %v9563_v43  ;;  %7384 = vmatprep.mubr.bf16.mxu1 %v9750_v12  ;;  %v6756_v38 = vpop.f32.mrb[152].mxu0  ;;  %4052 = vmatprep.mubr.bf16.mxu0 %v9737_v53  ;;  %v3437_v46 = vshrl.u32 %v9737_v53, 16  ;;  %v3440_v7 = vshll.u32 %v9737_v53, 16 }
 0x2c3   : > { %v6757_v24 = vpop.f32.mrb[153].mxu0 }
 0x2c4   : > { %v3180_v18 = vadd.f32 %v7595_v2, %v9406_v23  ;;  %v6758_v62 = vadd.f32 %v6757_v24, %v6756_v38  ;;  %v6759_v20 = vpop.f32.mrb[154].mxu0  ;;  %v3439_v49 = vrot.slane %v3437_v46, 7  ;;  %v3211_v1 = vmax.f32 %v3179_v4, 0.0 }
 0x2c5   : > { %v6760_v36 = vpop.f32.mrb[155].mxu0  ;;  %v3571_v3 = vrot.slane %v3440_v7, 1 }
 0x2c6   : > { %v3212_v43 = vmax.f32 %v3180_v18, 0.0  ;;  %v7606_v6 = vadd.f32 %v9396_v33, %v6758_v62  ;;  %v6761_v21 = vadd.f32 %v6760_v36, %v6759_v20  ;;  %v3442_v30 = vor.u32 %v3440_v7, %v3439_v49 }
 0x2c7   : > { %v3572_v58 = vor.u32 %v3571_v3, %v3437_v46 }
 0x2c8   : > { %v9760_v48 = vpack.c.bf16 %v3212_v43, %v3211_v1  ;;  %v7607_v28 = vadd.f32 %v7606_v6, %v9592_v31  ;;  %v7614_v57 = vadd.f32 %v9403_v26, %v6761_v21  ;;  %v9767_v8 = vsel %vm9432_vm4, %v3442_v30, %v8196_v45  ;;  %v8197_v6 = vld [vmem:[%s8684_s16 + $0xa8] sm:$0xff]  }
 0x2c9   : > { %4053 = vmatmul.mubr.bf16.gmra.mrb[212].mxu0 %v9767_v8  ;;  %v9773_v33 = vsel %vm9441_vm5, %v3572_v58, %v10551_v52  ;;  %v10552_v30 = vld [vmem:[#allocation47_spill] sm:$0xff] }
 0x2ca   : > { %v3181_v39 = vadd.f32 %v7607_v28, %v9406_v23  ;;  %v7615_v61 = vadd.f32 %v7614_v57, %v9597_v29  ;;  %7385 = vmatmul.mubr.bf16.gmra.mrb[120].mxu1 %v9773_v33  ;;  %v6762_v31 = vpop.f32.mrb[156].mxu0  ;;  %4060 = vmatprep.mubr.bf16.mxu0 %v9760_v48  ;;  %v3444_v26 = vshrl.u32 %v9760_v48, 16  ;;  %v3447_v11 = vshll.u32 %v9760_v48, 16 }
 0x2cb   : > { %v6763_v35 = vpop.f32.mrb[157].mxu0 }
 0x2cc   : > { %v3182_v4 = vadd.f32 %v7615_v61, %v9406_v23  ;;  %v6764_v2 = vadd.f32 %v6763_v35, %v6762_v31  ;;  %v6765_v38 = vpop.f32.mrb[158].mxu0  ;;  %v3446_v46 = vrot.slane %v3444_v26, 7  ;;  %v3213_v7 = vmax.f32 %v3181_v39, 0.0 }
 0x2cd   : > { %v6766_v24 = vpop.f32.mrb[159].mxu0  ;;  %v3573_v18 = vrot.slane %v3447_v11, 1 }
 0x2ce   : > { %v3214_v29 = vmax.f32 %v3182_v4, 0.0  ;;  %v7602_v62 = vadd.f32 %v9392_v13, %v6764_v2  ;;  %v6767_v20 = vadd.f32 %v6766_v24, %v6765_v38  ;;  %v3449_v49 = vor.u32 %v3447_v11, %v3446_v46 }
 0x2cf   : > { %v3574_v1 = vor.u32 %v3573_v18, %v3444_v26 }
 0x2d0   : > { %v9783_v36 = vpack.c.bf16 %v3214_v29, %v3213_v7  ;;  %v7603_v3 = vadd.f32 %v7602_v62, %v9589_v47  ;;  %v7610_v43 = vadd.f32 %v9400_v22, %v6767_v20  ;;  %v9790_v21 = vsel %vm9432_vm4, %v3449_v49, %v8197_v6  ;;  %v8198_v7 = vld [vmem:[%s8684_s16 + $0xb4] sm:$0xff]   ;;  %v10554_v20 = vld [vmem:[#allocation51_spill] sm:$0xff]  ;;  %v10555_v49 = vld [vmem:[#allocation60_spill] sm:$0xff] }
 0x2d1   : > { %4061 = vmatmul.mubr.bf16.gmra.mrb[216].mxu0 %v9790_v21  ;;  %v9796_v13 = vsel %vm9441_vm5, %v3574_v1, %v10552_v30  ;;  %v8145_v29 = vld [vmem:[#allocation9 + $0x180] sm:$0xff]   ;;  %v8146_v62 = vld [vmem:[#allocation9 + $0x1c8] sm:$0xff]   ;;  %v10556_v6 = vld [vmem:[#allocation52_spill] sm:$0xff] }
 0x2d2   : > { %v3183_v58 = vadd.f32 %v7603_v3, %v9406_v23  ;;  %v7611_v28 = vadd.f32 %v7610_v43, %v9594_v59  ;;  %7388 = vmatprep.mubr.bf16.mxu1 %v9796_v13  ;;  %4068 = vmatprep.mubr.bf16.mxu0 %v9783_v36  ;;  %v3451_v22 = vshrl.u32 %v9783_v36, 16  ;;  %v3454_v47 = vshll.u32 %v9783_v36, 16  ;;  %v6808_v57 = vpop.f32.mrb[160].mxu0  ;;  %v8147_v1 = vld [vmem:[#allocation9 + $0x188] sm:$0xff]   ;;  %v8148_v3 = vld [vmem:[#allocation9 + $0x1d0] sm:$0xff]  }
 0x2d3   : > { %v6809_v45 = vpop.f32.mrb[161].mxu0  ;;  %v8149_v43 = vld [vmem:[#allocation9 + $0x190] sm:$0xff]   ;;  %v10558_v30 = vld [vmem:[#allocation54_spill] sm:$0xff] }
 0x2d4   : > { %v3184_v52 = vadd.f32 %v7611_v28, %v9406_v23  ;;  %v3453_v39 = vrot.slane %v3451_v22, 7  ;;  %v3575_v61 = vrot.slane %v3454_v47, 1  ;;  %v6811_v31 = vpop.f32.mrb[162].mxu0  ;;  %v3215_v26 = vmax.f32 %v3183_v58, 0.0  ;;  %v10553_v23 = vld [vmem:[#allocation48_spill] sm:$0xff]  ;;  %v8152_v58 = vld [vmem:[#allocation9 + $0x1e0] sm:$0xff]  }
 0x2d5   : > { %v9805_v11 = vadd.f32 %v6809_v45, %v6808_v57  ;;  %v6812_v59 = vpop.f32.mrb[163].mxu0  ;;  %v8153_v28 = vld [vmem:[#allocation9 + $0x1a0] sm:$0xff]   ;;  %v10560_v57 = vld [vmem:[#allocation59_spill] sm:$0xff] }
 0x2d6   : > { %v3216_v35 = vmax.f32 %v3184_v52, 0.0  ;;  %v3456_v4 = vor.u32 %v3454_v47, %v3453_v39  ;;  %v3576_v2 = vor.u32 %v3575_v61, %v3451_v22  ;;  %v9807_v38 = vadd.f32 %v6812_v59, %v6811_v31  ;;  %v8154_v22 = vld [vmem:[#allocation9 + $0x1e8] sm:$0xff]   ;;  %v8156_v52 = vld [vmem:[#allocation9 + $0x1f0] sm:$0xff]   ;;  %v8158_v61 = vld [vmem:[#allocation9 + $0x1f8] sm:$0xff]  }
 0x2d7   : > { %v10559_v47 = vld [vmem:[#allocation55_spill] sm:$0xff]  ;;  %v10561_v31 = vld [vmem:[#allocation56_spill] sm:$0xff] }
 0x2d8   : > { %v9809_v46 = vpack.c.bf16 %v3216_v35, %v3215_v26  ;;  %v9814_v24 = vsel %vm9432_vm4, %v3456_v4, %v8198_v7  ;;  %v9819_v18 = vsel %vm9441_vm5, %v3576_v2, %v10553_v23  ;;  %v8155_v45 = vld [vmem:[#allocation9 + $0x1a8] sm:$0xff]   ;;  %v8157_v39 = vld [vmem:[#allocation9 + $0x1b0] sm:$0xff]   ;;  %v10562_v26 = vld [vmem:[#allocation61_spill] sm:$0xff] }
 0x2d9   : > { %4069 = vmatmul.mubr.bf16.gmra.mrb[220].mxu0 %v9814_v24  ;;  %7389 = vmatmul.mubr.bf16.gmra.mrb[124].mxu1 %v9819_v18  ;;  %v8159_v59 = vld [vmem:[#allocation9 + $0x1b8] sm:$0xff]   ;;  %v8160_v35 = vld [vmem:[#allocation9 + $0x200] sm:$0xff]   ;;  %v10564_v2 = vld [vmem:[#allocation63_spill] sm:$0xff] }
 0x2da   : > { %4607 = vmatprep.mubr.bf16.mxu0 %v9416_v54  ;;  %7408 = vmatprep.mubr.bf16.mxu1 %v9457_v10  ;;  %v8150_v54 = vld [vmem:[#allocation9 + $0x1d8] sm:$0xff]   ;;  %v10563_v4 = vld [vmem:[#allocation62_spill] sm:$0xff]  ;;  %v3461_v23 = vshll.u32 %v9809_v46, 16 }
 0x2db   : > { %v10557_v10 = vld [vmem:[#allocation57_spill] sm:$0xff]  ;;  %v10565_v7 = vld [vmem:[#allocation58_spill] sm:$0xff] }
 0x2e1   : > { %4608 = vmatmul.mubr.bf16.vlgmr.msra.gmra.mrb[224].mxu0 %v9451_v17  ;;  %7409 = vmatmul.mubr.bf16.vlgmr.msra.gmra.mrb[96].mxu1 %v9488_v60  ;;  %v8151_v17 = vld [vmem:[#allocation9 + $0x198] sm:$0xff]  }
 0x2e2   : > { %4615 = vmatprep.mubr.bf16.mxu0 %v10554_v20  ;;  %7412 = vmatprep.mubr.bf16.mxu1 %v10555_v49 }
 0x2e3   : > { %7065 = vmatpush3.bf16.msra.mxu1 %v8145_v29  ;;  %v3577_v29 = vrot.slane %v3461_v23, 1 }
 0x2e4   : > { %7066 = vmatprep.subr.bf16.mxu1 %v8146_v62  ;;  %v3458_v62 = vshrl.u32 %v9809_v46, 16 }
 0x2e7   : > { %7067 = vmatpush3.bf16.msra.mxu1 %v8147_v1  ;;  %v3578_v1 = vor.u32 %v3577_v29, %v3458_v62 }
 0x2e8   : > { %7068 = vmatprep.subr.bf16.mxu1 %v8148_v3  ;;  %v10566_v3 = vld [vmem:[#allocation49_spill] sm:$0xff] }
 0x2e9   : > { %4616 = vmatmul.mubr.bf16.gmra.mrb[228].mxu0 %v10556_v6  ;;  %7413 = vmatmul.mubr.bf16.gmra.mrb[100].mxu1 %v10557_v10 }
 0x2ea   : > { %4623 = vmatprep.mubr.bf16.mxu0 %v10558_v30  ;;  %7416 = vmatprep.mubr.bf16.mxu1 %v9581_v15 }
 0x2eb   : > { %7069 = vmatpush3.bf16.msra.mxu1 %v8149_v43  ;;  %v9862_v43 = vsel %vm9441_vm5, %v3578_v1, %v10566_v3  ;;  %v3460_v1 = vrot.slane %v3458_v62, 7 }
 0x2ec   : > { %7070 = vmatprep.subr.bf16.mxu1 %v8150_v54  ;;  %v8161_v54 = vld [vmem:[#allocation9 + $0x208] sm:$0xff]  }
 0x2ef   : > { %7071 = vmatpush3.bf16.msra.mxu1 %v8151_v17  ;;  %v8163_v17 = vld [vmem:[#allocation9 + $0x218] sm:$0xff]  }
 0x2f0   : > { %7072 = vmatprep.subr.bf16.mxu1 %v8152_v58  ;;  %v8167_v58 = vld [vmem:[#allocation9 + $0x238] sm:$0xff]  }
 0x2f1   : > { %4624 = vmatmul.mubr.bf16.gmra.mrb[232].mxu0 %v10559_v47  ;;  %7417 = vmatmul.mubr.bf16.gmra.mrb[104].mxu1 %v9612_v42 }
 0x2f2   : > { %4631 = vmatprep.mubr.bf16.mxu0 %v10560_v57  ;;  %7420 = vmatprep.mubr.bf16.mxu1 %v9635_v50 }
 0x2f3   : > { %7073 = vmatpush3.bf16.msra.mxu1 %v8153_v28 }
 0x2f4   : > { %7074 = vmatprep.subr.bf16.mxu1 %v8154_v22 }
 0x2f7   : > { %7075 = vmatpush3.bf16.msra.mxu1 %v8155_v45 }
 0x2f8   : > { %7076 = vmatprep.subr.bf16.mxu1 %v8156_v52 }
 0x2f9   : > { %4632 = vmatmul.mubr.bf16.gmra.mrb[236].mxu0 %v10561_v31  ;;  %7421 = vmatmul.mubr.bf16.gmra.mrb[108].mxu1 %v9658_v55 }
 0x2fa   : > { %4639 = vmatprep.mubr.bf16.mxu0 %v10562_v26  ;;  %7424 = vmatprep.mubr.bf16.mxu1 %v9681_v44 }
 0x2fb   : > { %7077 = vmatpush3.bf16.msra.mxu1 %v8157_v39 }
 0x2fc   : > { %7078 = vmatprep.subr.bf16.mxu1 %v8158_v61 }
 0x2ff   : > { %7079 = vmatpush3.bf16.msra.mxu1 %v8159_v59 }
 0x300   : > { %7440 = vmatprep.subr.bf16.mxu1 %v8160_v35 }
 0x301   : > { %4640 = vmatmul.mubr.bf16.gmra.mrb[240].mxu0 %v9575_v0  ;;  %7425 = vmatmul.mubr.bf16.gmra.mrb[112].mxu1 %v9704_v14 }
 0x302   : > { %4647 = vmatprep.mubr.bf16.mxu0 %v10563_v4  ;;  %7428 = vmatprep.mubr.bf16.mxu1 %v9727_v5 }
 0x309   : > { %4648 = vmatmul.mubr.bf16.gmra.mrb[244].mxu0 %v10564_v2  ;;  %7429 = vmatmul.mubr.bf16.gmra.mrb[116].mxu1 %v9750_v12 }
 0x30a   : > { %4655 = vmatprep.mubr.bf16.mxu0 %v10565_v7  ;;  %7432 = vmatprep.mubr.bf16.mxu1 %v9773_v33 }
 0x311   : > { %4656 = vmatmul.mubr.bf16.gmra.mrb[248].mxu0 %v9629_v25  ;;  %7433 = vmatmul.mubr.bf16.gmra.mrb[120].mxu1 %v9796_v13 }
 0x312   : > { %4663 = vmatprep.mubr.bf16.mxu0 %v9622_v40  ;;  %7436 = vmatprep.mubr.bf16.mxu1 %v9819_v18 }
 0x319   : > { %4664 = vmatmul.mubr.bf16.gmra.mrb[252].mxu0 %v9652_v37  ;;  %7437 = vmatmul.mubr.bf16.gmra.mrb[124].mxu1 %v9862_v43 }
 0x31a   : > { %4671 = vmatprep.mubr.bf16.mxu0 %v9645_v56  ;;  %5266 = vmatprep.mubr.bf16.mxu1 %v10554_v20  ;;  %v8164_v20 = vld [vmem:[#allocation9 + $0x220] sm:$0xff]  }
 0x321   : > { %4672 = vmatmul.mubr.bf16.gmra.mrb[0].mxu0 %v9675_v16  ;;  %5267 = vmatmul.mubr.bf16.vlgmr.msra.gmra.mrb[128].mxu1 %v10556_v6  ;;  %v8165_v6 = vld [vmem:[#allocation9 + $0x228] sm:$0xff]  }
 0x322   : > { %4679 = vmatprep.mubr.bf16.mxu0 %v9668_v19  ;;  %5274 = vmatprep.mubr.bf16.mxu1 %v10558_v30  ;;  %v8166_v30 = vld [vmem:[#allocation9 + $0x230] sm:$0xff]  }
 0x323   : > { %7441 = vmatpush3.bf16.msra.mxu1 %v8160_v35 }
 0x324   : > { %7442 = vmatprep.subr.bf16.mxu1 %v8161_v54 }
 0x327   : > { %7443 = vmatpush3.bf16.msra.mxu1 %v8161_v54 }
 0x328   : > { %7444 = vmatprep.subr.bf16.mxu1 %v8162_v32 }
 0x329   : > { %4680 = vmatmul.mubr.bf16.gmra.mrb[4].mxu0 %v9698_v27  ;;  %5275 = vmatmul.mubr.bf16.gmra.mrb[132].mxu1 %v10559_v47 }
 0x32a   : > { %4687 = vmatprep.mubr.bf16.mxu0 %v9691_v51  ;;  %5282 = vmatprep.mubr.bf16.mxu1 %v10560_v57 }
 0x32b   : > { %7445 = vmatpush3.bf16.msra.mxu1 %v8162_v32 }
 0x32c   : > { %7446 = vmatprep.subr.bf16.mxu1 %v8163_v17 }
 0x32f   : > { %7447 = vmatpush3.bf16.msra.mxu1 %v8163_v17 }
 0x330   : > { %7448 = vmatprep.subr.bf16.mxu1 %v8164_v20 }
 0x331   : > { %4688 = vmatmul.mubr.bf16.gmra.mrb[8].mxu0 %v9721_v9  ;;  %5283 = vmatmul.mubr.bf16.gmra.mrb[136].mxu1 %v10561_v31 }
 0x332   : > { %4695 = vmatprep.mubr.bf16.mxu0 %v9714_v41  ;;  %5290 = vmatprep.mubr.bf16.mxu1 %v10562_v26 }
 0x333   : > { %7449 = vmatpush3.bf16.msra.mxu1 %v8164_v20 }
 0x334   : > { %7450 = vmatprep.subr.bf16.mxu1 %v8165_v6 }
 0x337   : > { %7451 = vmatpush3.bf16.msra.mxu1 %v8165_v6  ;;  %v8199_v6 = vld [vmem:[%s8684_s16 + $0xc0] sm:$0xff]  }
 0x338   : > { %7452 = vmatprep.subr.bf16.mxu1 %v8166_v30 }
 0x339   : > { %4696 = vmatmul.mubr.bf16.gmra.mrb[12].mxu0 %v9744_v63  ;;  %5291 = vmatmul.mubr.bf16.gmra.mrb[140].mxu1 %v9575_v0 }
 0x33a   : > { %4703 = vmatprep.mubr.bf16.mxu0 %v9737_v53  ;;  %5298 = vmatprep.mubr.bf16.mxu1 %v10563_v4 }
 0x33b   : > { %7453 = vmatpush3.bf16.msra.mxu1 %v8166_v30 }
 0x33c   : > { %v6814_v28 = vpop.f32.mrb[164].mxu0  ;;  %7454 = vmatprep.subr.bf16.mxu1 %v8167_v58 }
 0x33d   : > { %v6815_v22 = vpop.f32.mrb[165].mxu0 }
 0x33e   : > { %v9884_v47 = vadd.f32 %v6815_v22, %v6814_v28  ;;  %v6817_v57 = vpop.f32.mrb[166].mxu0 }
 0x33f   : > { %v6818_v45 = vpop.f32.mrb[167].mxu0  ;;  %7455 = vmatpush3.bf16.msra.mxu1 %v8167_v58 }
 0x340   : > { %v9886_v52 = vadd.f32 %v6818_v45, %v6817_v57 }
 0x341   : > { %4704 = vmatmul.mubr.bf16.gmra.mrb[16].mxu0 %v9767_v8  ;;  %5299 = vmatmul.mubr.bf16.gmra.mrb[144].mxu1 %v10564_v2 }
 0x342   : > { %4711 = vmatprep.mubr.bf16.mxu0 %v9760_v48  ;;  %5306 = vmatprep.mubr.bf16.mxu1 %v10565_v7 }
 0x344   : > { %v6820_v0 = vpop.f32.mrb[168].mxu0 }
 0x345   : > { %v6821_v39 = vpop.f32.mrb[169].mxu0 }
 0x346   : > { %v9892_v61 = vadd.f32 %v6821_v39, %v6820_v0  ;;  %v6823_v31 = vpop.f32.mrb[170].mxu0 }
 0x347   : > { %v6824_v26 = vpop.f32.mrb[171].mxu0 }
 0x348   : > { %v9894_v59 = vadd.f32 %v6824_v26, %v6823_v31 }
 0x349   : > { %4712 = vmatmul.mubr.bf16.gmra.mrb[20].mxu0 %v9790_v21  ;;  %5307 = vmatmul.mubr.bf16.gmra.mrb[148].mxu1 %v9629_v25 }
 0x34a   : > { %4719 = vmatprep.mubr.bf16.mxu0 %v9783_v36  ;;  %5314 = vmatprep.mubr.bf16.mxu1 %v9622_v40  ;;  %v3463_v40 = vor.u32 %v3461_v23, %v3460_v1 }
 0x34c   : > { %v6826_v35 = vpop.f32.mrb[172].mxu0  ;;  %v3529_v30 = vsel %vm9432_vm4, %v3463_v40, %v8199_v6 }
 0x34d   : > { %v6827_v4 = vpop.f32.mrb[173].mxu0 }
 0x34e   : > { %v9900_v2 = vadd.f32 %v6827_v4, %v6826_v35  ;;  %v6829_v7 = vpop.f32.mrb[174].mxu0 }
 0x34f   : > { %v6830_v29 = vpop.f32.mrb[175].mxu0 }
 0x350   : > { %v9904_v3 = vadd.f32 %v6830_v29, %v6829_v7 }
 0x351   : > { %4720 = vmatmul.mubr.bf16.gmra.mrb[24].mxu0 %v9814_v24  ;;  %5315 = vmatmul.mubr.bf16.gmra.mrb[152].mxu1 %v9652_v37 }
 0x352   : > { %4727 = vmatprep.mubr.bf16.mxu0 %v9809_v46  ;;  %5322 = vmatprep.mubr.bf16.mxu1 %v9645_v56 }
 0x354   : > { %v6832_v25 = vpop.f32.mrb[176].mxu0 }
 0x355   : > { %v6833_v54 = vpop.f32.mrb[177].mxu0 }
 0x356   : > { %v9912_v32 = vadd.f32 %v6833_v54, %v6832_v25  ;;  %v6835_v17 = vpop.f32.mrb[178].mxu0 }
 0x357   : > { %v6836_v20 = vpop.f32.mrb[179].mxu0 }
 0x358   : > { %v9914_v62 = vadd.f32 %v6836_v20, %v6835_v17 }
 0x359   : > { %4728 = vmatmul.mubr.bf16.gmra.mrb[28].mxu0 %v3529_v30  ;;  %5323 = vmatmul.mubr.bf16.gmra.mrb[156].mxu1 %v9675_v16 }
 0x35a   : > { %5330 = vmatprep.mubr.bf16.mxu1 %v9668_v19 }
 0x35c   : > { %v6838_v56 = vpop.f32.mrb[180].mxu0 }
 0x35d   : > { %v6839_v37 = vpop.f32.mrb[181].mxu0 }
 0x35e   : > { %v9921_v23 = vadd.f32 %v6839_v37, %v6838_v56  ;;  %v6841_v58 = vpop.f32.mrb[182].mxu0 }
 0x35f   : > { %v6842_v28 = vpop.f32.mrb[183].mxu0 }
 0x360   : > { %v9923_v22 = vadd.f32 %v6842_v28, %v6841_v58 }
 0x361   : > { %5331 = vmatmul.mubr.bf16.gmra.mrb[160].mxu1 %v9698_v27 }
 0x362   : > { %5338 = vmatprep.mubr.bf16.mxu1 %v9691_v51 }
 0x364   : > { %v6844_v57 = vpop.f32.mrb[184].mxu0 }
 0x365   : > { %v6845_v34 = vpop.f32.mrb[185].mxu0 }
 0x366   : > { %v9927_v45 = vadd.f32 %v6845_v34, %v6844_v57  ;;  %v6847_v0 = vpop.f32.mrb[186].mxu0 }
 0x367   : > { %v6848_v16 = vpop.f32.mrb[187].mxu0 }
 0x368   : > { %v9929_v39 = vadd.f32 %v6848_v16, %v6847_v0  ;;  %v10567_v0 = vld [vmem:[#allocation53_spill] sm:$0xff] }
 0x369   : > { %5339 = vmatmul.mubr.bf16.gmra.mrb[164].mxu1 %v9721_v9 }
 0x36a   : > { %5346 = vmatprep.mubr.bf16.mxu1 %v9714_v41 }
 0x36c   : > { %v6850_v19 = vpop.f32.mrb[188].mxu0 }
 0x36d   : > { %v6851_v31 = vpop.f32.mrb[189].mxu0 }
 0x36e   : > { %v9933_v26 = vadd.f32 %v6851_v31, %v6850_v19  ;;  %v6853_v35 = vpop.f32.mrb[190].mxu0 }
 0x36f   : > { %v6854_v27 = vpop.f32.mrb[191].mxu0 }
 0x370   : > { %v9935_v4 = vadd.f32 %v6854_v27, %v6853_v35 }
 0x371   : > { %5347 = vmatmul.mubr.bf16.gmra.mrb[168].mxu1 %v9744_v63 }
 0x372   : > { %5354 = vmatprep.mubr.bf16.mxu1 %v9737_v53 }
 0x374   : > { %v6856_v51 = vpop.f32.mrb[192].mxu0 }
 0x375   : > { %v6857_v7 = vpop.f32.mrb[193].mxu0 }
 0x376   : > { %v9939_v29 = vadd.f32 %v6857_v7, %v6856_v51  ;;  %v6859_v1 = vpop.f32.mrb[194].mxu0 }
 0x377   : > { %v6860_v9 = vpop.f32.mrb[195].mxu0 }
 0x378   : > { %v9941_v40 = vadd.f32 %v6860_v9, %v6859_v1 }
 0x379   : > { %5355 = vmatmul.mubr.bf16.gmra.mrb[172].mxu1 %v9767_v8 }
 0x37a   : > { %5362 = vmatprep.mubr.bf16.mxu1 %v9760_v48 }
 0x37c   : > { %v6862_v41 = vpop.f32.mrb[196].mxu0 }
 0x37d   : > { %v6863_v25 = vpop.f32.mrb[197].mxu0 }
 0x37e   : > { %v9945_v54 = vadd.f32 %v6863_v25, %v6862_v41  ;;  %v6865_v17 = vpop.f32.mrb[198].mxu0 }
 0x37f   : > { %v6866_v63 = vpop.f32.mrb[199].mxu0 }
 0x380   : > { %v9947_v20 = vadd.f32 %v6866_v63, %v6865_v17 }
 0x381   : > { %5363 = vmatmul.mubr.bf16.gmra.mrb[176].mxu1 %v9790_v21 }
 0x382   : > { %5370 = vmatprep.mubr.bf16.mxu1 %v9783_v36 }
 0x384   : > { %v6868_v53 = vpop.f32.mrb[200].mxu0 }
 0x385   : > { %v6869_v6 = vpop.f32.mrb[201].mxu0 }
 0x386   : > { %v9951_v56 = vadd.f32 %v6869_v6, %v6868_v53  ;;  %v6871_v37 = vpop.f32.mrb[202].mxu0 }
 0x387   : > { %v6872_v8 = vpop.f32.mrb[203].mxu0 }
 0x388   : > { %v9953_v58 = vadd.f32 %v6872_v8, %v6871_v37 }
 0x389   : > { %5371 = vmatmul.mubr.bf16.gmra.mrb[180].mxu1 %v9814_v24 }
 0x38a   : > { %5378 = vmatprep.mubr.bf16.mxu1 %v9809_v46  ;;  %v8200_v46 = vld [vmem:[%s8684_s16 + $0xcc] sm:$0xff]  }
 0x38c   : > { %v6874_v48 = vpop.f32.mrb[204].mxu0 }
 0x38d   : > { %v6875_v28 = vpop.f32.mrb[205].mxu0 }
 0x38e   : > { %v9957_v57 = vadd.f32 %v6875_v28, %v6874_v48  ;;  %v6877_v21 = vpop.f32.mrb[206].mxu0  ;;  %v10568_v48 = vld [vmem:[#allocation18_spill] sm:$0xff] }
 0x38f   : > { %v6878_v34 = vpop.f32.mrb[207].mxu0  ;;  %v3249_v28 = vunpack.c.l.bf16 %v10568_v48 }
 0x390   : > { %v9959_v36 = vadd.f32 %v6878_v34, %v6877_v21  ;;  %v3250_v34 = vunpack.c.h.bf16 %v10568_v48 }
 0x391   : > { %5379 = vmatmul.mubr.bf16.gmra.mrb[184].mxu1 %v3529_v30 }
 0x392   : > { %5386 = vmatprep.mubr.bf16.mxu1 %v10567_v0 }
 0x394   : > { %v6880_v16 = vpop.f32.mrb[208].mxu0 }
 0x395   : > { %v6881_v19 = vpop.f32.mrb[209].mxu0 }
 0x396   : > { %v9962_v31 = vadd.f32 %v6881_v19, %v6880_v16  ;;  %v6883_v35 = vpop.f32.mrb[210].mxu0  ;;  %v9986_v16 = vld [vmem:[#allocation12] ss:$0 sm:$0xff] }
 0x397   : > { %v6884_v24 = vpop.f32.mrb[211].mxu0 }
 0x398   : > { %v9964_v27 = vadd.f32 %v6884_v24, %v6883_v35 }
 0x399   : > { %5387 = vmatmul.mubr.bf16.gmra.mrb[188].mxu1 %v8200_v46  ;;  %v10569_v46 = vld [vmem:[#allocation19_spill] sm:$0xff] }
 0x39a   : > { %7456 = vmatprep.mubr.bf16.mxu1 %v9488_v60 }
 0x39c   : > { %v6886_v51 = vpop.f32.mrb[212].mxu0 }
 0x39d   : > { %v6887_v7 = vpop.f32.mrb[213].mxu0 }
 0x39e   : > { %v9968_v1 = vadd.f32 %v6887_v7, %v6886_v51  ;;  %v6889_v9 = vpop.f32.mrb[214].mxu0  ;;  %v3251_v51 = vunpack.c.l.bf16 %v10569_v46 }
 0x39f   : > { %v6890_v30 = vpop.f32.mrb[215].mxu0 }
 0x3a0   : > { %v9970_v41 = vadd.f32 %v6890_v30, %v6889_v9 }
 0x3a1   : > { %7457 = vmatmul.mubr.bf16.vlgmr.msra.gmra.mrb[96].mxu1 %v10555_v49 }
 0x3a2   : > { %7460 = vmatprep.mubr.bf16.mxu1 %v10557_v10 }
 0x3a4   : > { %v6892_v25 = vpop.f32.mrb[216].mxu0 }
 0x3a5   : > { %v6893_v17 = vpop.f32.mrb[217].mxu0 }
 0x3a6   : > { %v9974_v63 = vadd.f32 %v6893_v17, %v6892_v25  ;;  %v6895_v53 = vpop.f32.mrb[218].mxu0  ;;  %v3252_v17 = vunpack.c.h.bf16 %v10569_v46 }
 0x3a7   : > { %v6896_v6 = vpop.f32.mrb[219].mxu0 }
 0x3a8   : > { %v9976_v37 = vadd.f32 %v6896_v6, %v6895_v53 }
 0x3a9   : > { %7461 = vmatmul.mubr.bf16.gmra.mrb[100].mxu1 %v9581_v15  ;;  %v3288_v15 = vadd.f32 %v9986_v16, %v3249_v28 }
 0x3aa   : > { %7464 = vmatprep.mubr.bf16.mxu1 %v9612_v42  ;;  %v3289_v42 = vadd.f32 %v9986_v16, %v3250_v34 }
 0x3ab   : > { %v7620_v24 = vadd.f32 %v9805_v11, %v3288_v15  ;;  %v3291_v11 = vadd.f32 %v9986_v16, %v3252_v17 }
 0x3ac   : > { %v6898_v60 = vpop.f32.mrb[220].mxu0  ;;  %v7628_v25 = vadd.f32 %v9807_v38, %v3289_v42  ;;  %v10570_v38 = vld [vmem:[#allocation20_spill] sm:$0xff] }
 0x3ad   : > { %v6899_v8 = vpop.f32.mrb[221].mxu0  ;;  %v3253_v28 = vunpack.c.l.bf16 %v10570_v38  ;;  %v7624_v15 = vadd.f32 %v9886_v52, %v3291_v11  ;;  %v10571_v52 = vld [vmem:[#allocation21_spill] sm:$0xff] }
 0x3ae   : > { %v9981_v21 = vadd.f32 %v6899_v8, %v6898_v60  ;;  %v6901_v49 = vpop.f32.mrb[222].mxu0 }
 0x3af   : > { %v6902_v10 = vpop.f32.mrb[223].mxu0 }
 0x3b0   : > { %v9984_v0 = vadd.f32 %v6902_v10, %v6901_v49 }
 0x3b1   : > { %7465 = vmatmul.mubr.bf16.gmra.mrb[104].mxu1 %v9635_v50 }
 0x3b2   : > { %7468 = vmatprep.mubr.bf16.mxu1 %v9658_v55  ;;  %v3290_v55 = vadd.f32 %v9986_v16, %v3251_v51 }
 0x3b4   : > { %v6944_v19 = vpop.f32.mrb[224].mxu0  ;;  %v7616_v48 = vadd.f32 %v9884_v47, %v3290_v55 }
 0x3b5   : > { %v6945_v35 = vpop.f32.mrb[225].mxu0 }
 0x3b6   : > { %v6946_v7 = vadd.f32 %v6945_v35, %v6944_v19  ;;  %v6947_v9 = vpop.f32.mrb[226].mxu0 }
 0x3b7   : > { %v6948_v30 = vpop.f32.mrb[227].mxu0 }
 0x3b8   : > { %v9996_v50 = vadd.f32 %v7620_v24, %v6946_v7  ;;  %v6949_v53 = vadd.f32 %v6948_v30, %v6947_v9  ;;  %v3255_v7 = vunpack.c.l.bf16 %v10571_v52 }
 0x3b9   : > { %7469 = vmatmul.mubr.bf16.gmra.mrb[108].mxu1 %v9681_v44  ;;  %v3254_v44 = vunpack.c.h.bf16 %v10570_v38 }
 0x3ba   : > { %v10000_v6 = vadd.f32 %v7628_v25, %v6949_v53  ;;  %7472 = vmatprep.mubr.bf16.mxu1 %v9704_v14  ;;  %v3292_v14 = vadd.f32 %v9986_v16, %v3253_v28 }
 0x3bb   : > { %v3293_v47 = vadd.f32 %v9986_v16, %v3254_v44 }
 0x3bc   : > { %v6950_v60 = vpop.f32.mrb[228].mxu0  ;;  %v7636_v51 = vadd.f32 %v9892_v61, %v3292_v14 }
 0x3bd   : > { %v6951_v8 = vpop.f32.mrb[229].mxu0  ;;  %v7644_v17 = vadd.f32 %v9894_v59, %v3293_v47  ;;  %v10572_v59 = vld [vmem:[#allocation22_spill] sm:$0xff] }
 0x3be   : > { %v6952_v49 = vadd.f32 %v6951_v8, %v6950_v60  ;;  %v6953_v10 = vpop.f32.mrb[230].mxu0  ;;  %v3257_v38 = vunpack.c.l.bf16 %v10572_v59 }
 0x3bf   : > { %v6954_v34 = vpop.f32.mrb[231].mxu0 }
 0x3c0   : > { %v10008_v42 = vadd.f32 %v7616_v48, %v6952_v49  ;;  %v6955_v19 = vadd.f32 %v6954_v34, %v6953_v10 }
 0x3c1   : > { %7473 = vmatmul.mubr.bf16.gmra.mrb[112].mxu1 %v9727_v5  ;;  %v3256_v5 = vunpack.c.h.bf16 %v10571_v52 }
 0x3c2   : > { %v10012_v35 = vadd.f32 %v7624_v15, %v6955_v19  ;;  %7476 = vmatprep.mubr.bf16.mxu1 %v9750_v12  ;;  %v3294_v12 = vadd.f32 %v9986_v16, %v3255_v7 }
 0x3c3   : > { %v3295_v61 = vadd.f32 %v9986_v16, %v3256_v5 }
 0x3c4   : > { %v6956_v24 = vpop.f32.mrb[232].mxu0  ;;  %v7632_v48 = vadd.f32 %v9900_v2, %v3294_v12 }
 0x3c5   : > { %v6957_v46 = vpop.f32.mrb[233].mxu0  ;;  %v7640_v34 = vadd.f32 %v9904_v3, %v3295_v61  ;;  %v10573_v3 = vld [vmem:[#allocation23_spill] sm:$0xff] }
 0x3c6   : > { %v6958_v9 = vadd.f32 %v6957_v46, %v6956_v24  ;;  %v6959_v30 = vpop.f32.mrb[234].mxu0  ;;  %v3259_v46 = vunpack.c.l.bf16 %v10573_v3 }
 0x3c7   : > { %v6960_v25 = vpop.f32.mrb[235].mxu0 }
 0x3c8   : > { %v10020_v53 = vadd.f32 %v7636_v51, %v6958_v9  ;;  %v6961_v55 = vadd.f32 %v6960_v25, %v6959_v30 }
 0x3c9   : > { %7477 = vmatmul.mubr.bf16.gmra.mrb[116].mxu1 %v9773_v33  ;;  %v3258_v33 = vunpack.c.h.bf16 %v10572_v59 }
 0x3ca   : > { %v10024_v11 = vadd.f32 %v7644_v17, %v6961_v55  ;;  %7480 = vmatprep.mubr.bf16.mxu1 %v9796_v13  ;;  %v3296_v13 = vadd.f32 %v9986_v16, %v3257_v38  ;;  %v10574_v17 = vld [vmem:[#allocation50_spill] sm:$0xff] }
 0x3cb   : > { %v3297_v2 = vadd.f32 %v9986_v16, %v3258_v33 }
 0x3cc   : > { %v6962_v60 = vpop.f32.mrb[236].mxu0  ;;  %v7652_v24 = vadd.f32 %v9912_v32, %v3296_v13 }
 0x3cd   : > { %v6963_v8 = vpop.f32.mrb[237].mxu0  ;;  %v7660_v9 = vadd.f32 %v9914_v62, %v3297_v2 }
 0x3ce   : > { %v6964_v28 = vadd.f32 %v6963_v8, %v6962_v60  ;;  %v6965_v49 = vpop.f32.mrb[238].mxu0  ;;  %v10575_v60 = vld [vmem:[#allocation24_spill] sm:$0xff] }
 0x3cf   : > { %v6966_v10 = vpop.f32.mrb[239].mxu0  ;;  %v3261_v8 = vunpack.c.l.bf16 %v10575_v60 }
 0x3d0   : > { %v10032_v15 = vadd.f32 %v7632_v48, %v6964_v28  ;;  %v6967_v44 = vadd.f32 %v6966_v10, %v6965_v49  ;;  %v3262_v28 = vunpack.c.h.bf16 %v10575_v60 }
 0x3d1   : > { %7481 = vmatmul.mubr.bf16.gmra.mrb[120].mxu1 %v9819_v18  ;;  %v3260_v18 = vunpack.c.h.bf16 %v10573_v3 }
 0x3d2   : > { %v10036_v19 = vadd.f32 %v7640_v34, %v6967_v44  ;;  %7484 = vmatprep.mubr.bf16.mxu1 %v9862_v43  ;;  %v3298_v43 = vadd.f32 %v9986_v16, %v3259_v46  ;;  %v3300_v34 = vadd.f32 %v9986_v16, %v3261_v8  ;;  %v3301_v44 = vadd.f32 %v9986_v16, %v3262_v28 }
 0x3d3   : > { %v3299_v32 = vadd.f32 %v9986_v16, %v3260_v18 }
 0x3d4   : > { %v6968_v14 = vpop.f32.mrb[240].mxu0  ;;  %v7648_v61 = vadd.f32 %v9921_v23, %v3298_v43  ;;  %v7668_v2 = vadd.f32 %v9927_v45, %v3300_v34  ;;  %v7676_v46 = vadd.f32 %v9929_v39, %v3301_v44 }
 0x3d5   : > { %v6969_v47 = vpop.f32.mrb[241].mxu0  ;;  %v7656_v38 = vadd.f32 %v9923_v22, %v3299_v32  ;;  %v10577_v32 = vld [vmem:[#allocation26_spill] sm:$0xff] }
 0x3d6   : > { %v6970_v51 = vadd.f32 %v6969_v47, %v6968_v14  ;;  %v6971_v52 = vpop.f32.mrb[242].mxu0  ;;  %v10576_v14 = vld [vmem:[#allocation25_spill] sm:$0xff]  ;;  %v3266_v39 = vunpack.c.h.bf16 %v10577_v32 }
 0x3d7   : > { %v6972_v7 = vpop.f32.mrb[243].mxu0  ;;  %v3263_v47 = vunpack.c.l.bf16 %v10576_v14 }
 0x3d8   : > { %v10044_v30 = vadd.f32 %v7652_v24, %v6970_v51  ;;  %v6973_v25 = vadd.f32 %v6972_v7, %v6971_v52  ;;  %v3264_v51 = vunpack.c.h.bf16 %v10576_v14  ;;  %v3305_v28 = vadd.f32 %v9986_v16, %v3266_v39 }
 0x3d9   : > { %7485 = vmatmul.mubr.bf16.gmra.mrb[124].mxu1 %v10574_v17 }
 0x3da   : > { %v10048_v5 = vadd.f32 %v7660_v9, %v6973_v25  ;;  %v3302_v9 = vadd.f32 %v9986_v16, %v3263_v47  ;;  %v3303_v25 = vadd.f32 %v9986_v16, %v3264_v51 }
 0x3dc   : > { %v6974_v55 = vpop.f32.mrb[244].mxu0  ;;  %v7664_v43 = vadd.f32 %v9933_v26, %v3302_v9  ;;  %v7672_v8 = vadd.f32 %v9935_v4, %v3303_v25 }
 0x3dd   : > { %v6975_v12 = vpop.f32.mrb[245].mxu0 }
 0x3de   : > { %v6976_v62 = vadd.f32 %v6975_v12, %v6974_v55  ;;  %v6977_v48 = vpop.f32.mrb[246].mxu0  ;;  %v3265_v55 = vunpack.c.l.bf16 %v10577_v32 }
 0x3df   : > { %v6978_v59 = vpop.f32.mrb[247].mxu0 }
 0x3e0   : > { %v10055_v49 = vadd.f32 %v7648_v61, %v6976_v62  ;;  %v6979_v10 = vadd.f32 %v6978_v59, %v6977_v48  ;;  %v3304_v59 = vadd.f32 %v9986_v16, %v3265_v55 }
 0x3e2   : > { %v10058_v33 = vadd.f32 %v7656_v38, %v6979_v10 }
 0x3e4   : > { %v6980_v13 = vpop.f32.mrb[248].mxu0 }
 0x3e5   : > { %v6981_v23 = vpop.f32.mrb[249].mxu0 }
 0x3e6   : > { %v6982_v24 = vadd.f32 %v6981_v23, %v6980_v13  ;;  %v6983_v3 = vpop.f32.mrb[250].mxu0  ;;  %v7684_v13 = vadd.f32 %v9939_v29, %v3304_v59  ;;  %v10578_v23 = vld [vmem:[#allocation27_spill] sm:$0xff] }
 0x3e7   : > { %v6984_v22 = vpop.f32.mrb[251].mxu0 }
 0x3e8   : > { %v10065_v52 = vadd.f32 %v7668_v2, %v6982_v24  ;;  %v6985_v7 = vadd.f32 %v6984_v22, %v6983_v3  ;;  %v3267_v2 = vunpack.c.l.bf16 %v10578_v23  ;;  %v7692_v3 = vadd.f32 %v9941_v40, %v3305_v28 }
 0x3e9   : > { %v3268_v22 = vunpack.c.h.bf16 %v10578_v23 }
 0x3ea   : > { %v10068_v18 = vadd.f32 %v7676_v46, %v6985_v7  ;;  %v3306_v29 = vadd.f32 %v9986_v16, %v3267_v2 }
 0x3eb   : > { %v3307_v40 = vadd.f32 %v9986_v16, %v3268_v22 }
 0x3ec   : > { %v6986_v17 = vpop.f32.mrb[252].mxu0  ;;  %v7680_v39 = vadd.f32 %v9945_v54, %v3306_v29 }
 0x3ed   : > { %v6987_v45 = vpop.f32.mrb[253].mxu0 }
 0x3ee   : > { %v6988_v12 = vadd.f32 %v6987_v45, %v6986_v17  ;;  %v6989_v61 = vpop.f32.mrb[254].mxu0 }
 0x3ef   : > { %v6990_v60 = vpop.f32.mrb[255].mxu0 }
 0x3f0   : > { %v10075_v62 = vadd.f32 %v7664_v43, %v6988_v12  ;;  %v6991_v48 = vadd.f32 %v6990_v60, %v6989_v61  ;;  %v10579_v60 = vld [vmem:[#allocation28_spill] sm:$0xff] }
 0x3f2   : > { %v10078_v38 = vadd.f32 %v7672_v8, %v6991_v48  ;;  %v3269_v8 = vunpack.c.l.bf16 %v10579_v60 }
 0x3f4   : > { %v6992_v10 = vpop.f32.mrb[0].mxu0  ;;  %v7080_v26 = vpop.f32.mrb[128].mxu1  ;;  %v3308_v54 = vadd.f32 %v9986_v16, %v3269_v8 }
 0x3f5   : > { %v6993_v34 = vpop.f32.mrb[1].mxu0  ;;  %v7081_v44 = vpop.f32.mrb[129].mxu1 }
 0x3f6   : > { %v6994_v14 = vadd.f32 %v6993_v34, %v6992_v10  ;;  %v7082_v47 = vadd.f32 %v7081_v44, %v7080_v26  ;;  %v6995_v4 = vpop.f32.mrb[2].mxu0  ;;  %v7083_v24 = vpop.f32.mrb[130].mxu1  ;;  %v7688_v10 = vadd.f32 %v9947_v20, %v3307_v40  ;;  %v3270_v26 = vunpack.c.h.bf16 %v10579_v60 }
 0x3f7   : > { %v6996_v46 = vpop.f32.mrb[3].mxu0  ;;  %v7084_v51 = vpop.f32.mrb[131].mxu1 }
 0x3f8   : > { %v10085_v7 = vadd.f32 %v7684_v13, %v6994_v14  ;;  %v6997_v9 = vadd.f32 %v6996_v46, %v6995_v4  ;;  %v7085_v25 = vadd.f32 %v7084_v51, %v7083_v24  ;;  %v10088_v17 = vadd.f32 %v9996_v50, %v7082_v47  ;;  %v10580_v51 = vld [vmem:[#allocation29_spill] sm:$0xff] }
 0x3f9   : > { %v3309_v20 = vadd.f32 %v9986_v16, %v3270_v26  ;;  %v7700_v46 = vadd.f32 %v9951_v56, %v3308_v54 }
 0x3fa   : > { %v10091_v45 = vadd.f32 %v7692_v3, %v6997_v9  ;;  %v10094_v43 = vadd.f32 %v10000_v6, %v7085_v25  ;;  %v3271_v9 = vunpack.c.l.bf16 %v10580_v51 }
 0x3fc   : > { %v6998_v32 = vpop.f32.mrb[4].mxu0  ;;  %v7086_v55 = vpop.f32.mrb[132].mxu1  ;;  %v3310_v56 = vadd.f32 %v9986_v16, %v3271_v9 }
 0x3fd   : > { %v6999_v12 = vpop.f32.mrb[5].mxu0  ;;  %v7087_v61 = vpop.f32.mrb[133].mxu1 }
 0x3fe   : > { %v7000_v48 = vadd.f32 %v6999_v12, %v6998_v32  ;;  %v7088_v50 = vadd.f32 %v7087_v61, %v7086_v55  ;;  %v7001_v59 = vpop.f32.mrb[6].mxu0  ;;  %v7089_v28 = vpop.f32.mrb[134].mxu1  ;;  %v7708_v32 = vadd.f32 %v9953_v58, %v3309_v20  ;;  %v3272_v55 = vunpack.c.h.bf16 %v10580_v51 }
 0x3ff   : > { %v7002_v6 = vpop.f32.mrb[7].mxu0  ;;  %v7090_v34 = vpop.f32.mrb[135].mxu1 }
 0x400   : > { %v10101_v44 = vadd.f32 %v7680_v39, %v7000_v48  ;;  %v7003_v13 = vadd.f32 %v7002_v6, %v7001_v59  ;;  %v7091_v23 = vadd.f32 %v7090_v34, %v7089_v28  ;;  %v10104_v2 = vadd.f32 %v10008_v42, %v7088_v50  ;;  %v10581_v34 = vld [vmem:[#allocation30_spill] sm:$0xff] }
 0x401   : > { %v3311_v58 = vadd.f32 %v9986_v16, %v3272_v55  ;;  %v7696_v6 = vadd.f32 %v9957_v57, %v3310_v56 }
 0x402   : > { %v10107_v14 = vadd.f32 %v7688_v10, %v7003_v13  ;;  %v10110_v47 = vadd.f32 %v10012_v35, %v7091_v23  ;;  %v3273_v13 = vunpack.c.l.bf16 %v10581_v34 }
 0x404   : > { %v7004_v4 = vpop.f32.mrb[8].mxu0  ;;  %v7092_v24 = vpop.f32.mrb[136].mxu1  ;;  %v3312_v57 = vadd.f32 %v9986_v16, %v3273_v13 }
 0x405   : > { %v7005_v3 = vpop.f32.mrb[9].mxu0  ;;  %v7093_v22 = vpop.f32.mrb[137].mxu1 }
 0x406   : > { %v7006_v25 = vadd.f32 %v7005_v3, %v7004_v4  ;;  %v7094_v42 = vadd.f32 %v7093_v22, %v7092_v24  ;;  %v7007_v29 = vpop.f32.mrb[10].mxu0  ;;  %v7095_v40 = vpop.f32.mrb[138].mxu1  ;;  %v7704_v4 = vadd.f32 %v9959_v36, %v3311_v58  ;;  %v3274_v24 = vunpack.c.h.bf16 %v10581_v34 }
 0x407   : > { %v7008_v35 = vpop.f32.mrb[11].mxu0  ;;  %v7096_v12 = vpop.f32.mrb[139].mxu1 }
 0x408   : > { %v10117_v61 = vadd.f32 %v7700_v46, %v7006_v25  ;;  %v7009_v39 = vadd.f32 %v7008_v35, %v7007_v29  ;;  %v7097_v60 = vadd.f32 %v7096_v12, %v7095_v40  ;;  %v10120_v8 = vadd.f32 %v10020_v53, %v7094_v42  ;;  %v10582_v12 = vld [vmem:[#allocation31_spill] sm:$0xff] }
 0x409   : > { %v3313_v36 = vadd.f32 %v9986_v16, %v3274_v24  ;;  %v7716_v35 = vadd.f32 %v9962_v31, %v3312_v57 }
 0x40a   : > { %v10123_v48 = vadd.f32 %v7708_v32, %v7009_v39  ;;  %v10126_v50 = vadd.f32 %v10024_v11, %v7097_v60  ;;  %v3275_v39 = vunpack.c.l.bf16 %v10582_v12 }
 0x40c   : > { %v7010_v59 = vpop.f32.mrb[12].mxu0  ;;  %v7098_v28 = vpop.f32.mrb[140].mxu1  ;;  %v3314_v31 = vadd.f32 %v9986_v16, %v3275_v39 }
 0x40d   : > { %v7011_v10 = vpop.f32.mrb[13].mxu0  ;;  %v7099_v26 = vpop.f32.mrb[141].mxu1 }
 0x40e   : > { %v7012_v23 = vadd.f32 %v7011_v10, %v7010_v59  ;;  %v7100_v53 = vadd.f32 %v7099_v26, %v7098_v28  ;;  %v7013_v54 = vpop.f32.mrb[14].mxu0  ;;  %v7101_v20 = vpop.f32.mrb[142].mxu1  ;;  %v7724_v59 = vadd.f32 %v9964_v27, %v3313_v36  ;;  %v3276_v28 = vunpack.c.h.bf16 %v10582_v12 }
 0x40f   : > { %v7014_v11 = vpop.f32.mrb[15].mxu0  ;;  %v7102_v3 = vpop.f32.mrb[143].mxu1 }
 0x410   : > { %v10133_v22 = vadd.f32 %v7696_v6, %v7012_v23  ;;  %v7015_v46 = vadd.f32 %v7014_v11, %v7013_v54  ;;  %v7103_v51 = vadd.f32 %v7102_v3, %v7101_v20  ;;  %v10136_v9 = vadd.f32 %v10032_v15, %v7100_v53  ;;  %v10583_v3 = vld [vmem:[#allocation32_spill] sm:$0xff] }
 0x411   : > { %v3315_v27 = vadd.f32 %v9986_v16, %v3276_v28  ;;  %v7712_v11 = vadd.f32 %v9968_v1, %v3314_v31 }
 0x412   : > { %v10139_v25 = vadd.f32 %v7704_v4, %v7015_v46  ;;  %v10142_v42 = vadd.f32 %v10036_v19, %v7103_v51  ;;  %v3277_v46 = vunpack.c.l.bf16 %v10583_v3 }
 0x414   : > { %v7016_v29 = vpop.f32.mrb[16].mxu0  ;;  %v7104_v40 = vpop.f32.mrb[144].mxu1  ;;  %v3316_v1 = vadd.f32 %v9986_v16, %v3277_v46 }
 0x415   : > { %v7017_v32 = vpop.f32.mrb[17].mxu0  ;;  %v7105_v55 = vpop.f32.mrb[145].mxu1 }
 0x416   : > { %v7018_v60 = vadd.f32 %v7017_v32, %v7016_v29  ;;  %v7106_v15 = vadd.f32 %v7105_v55, %v7104_v40  ;;  %v7019_v56 = vpop.f32.mrb[18].mxu0  ;;  %v7107_v58 = vpop.f32.mrb[146].mxu1  ;;  %v7720_v29 = vadd.f32 %v9970_v41, %v3315_v27  ;;  %v3278_v40 = vunpack.c.h.bf16 %v10583_v3 }
 0x417   : > { %v7020_v19 = vpop.f32.mrb[19].mxu0  ;;  %v7108_v10 = vpop.f32.mrb[147].mxu1 }
 0x418   : > { %v10149_v26 = vadd.f32 %v7716_v35, %v7018_v60  ;;  %v7021_v6 = vadd.f32 %v7020_v19, %v7019_v56  ;;  %v7109_v34 = vadd.f32 %v7108_v10, %v7107_v58  ;;  %v10152_v13 = vadd.f32 %v10044_v30, %v7106_v15  ;;  %v10584_v10 = vld [vmem:[#allocation33_spill] sm:$0xff] }
 0x419   : > { %v3317_v41 = vadd.f32 %v9986_v16, %v3278_v40  ;;  %v7732_v19 = vadd.f32 %v9974_v63, %v3316_v1 }
 0x41a   : > { %v10155_v23 = vadd.f32 %v7724_v59, %v7021_v6  ;;  %v10158_v53 = vadd.f32 %v10048_v5, %v7109_v34  ;;  %v3279_v6 = vunpack.c.l.bf16 %v10584_v10 }
 0x41c   : > { %v7022_v54 = vpop.f32.mrb[20].mxu0  ;;  %v7110_v20 = vpop.f32.mrb[148].mxu1  ;;  %v3318_v63 = vadd.f32 %v9986_v16, %v3279_v6 }
 0x41d   : > { %v7023_v4 = vpop.f32.mrb[21].mxu0  ;;  %v7111_v24 = vpop.f32.mrb[149].mxu1 }
 0x41e   : > { %v7024_v51 = vadd.f32 %v7023_v4, %v7022_v54  ;;  %v7112_v30 = vadd.f32 %v7111_v24, %v7110_v20  ;;  %v7025_v57 = vpop.f32.mrb[22].mxu0  ;;  %v7113_v36 = vpop.f32.mrb[150].mxu1  ;;  %v7740_v54 = vadd.f32 %v9976_v37, %v3317_v41  ;;  %v3280_v20 = vunpack.c.h.bf16 %v10584_v10 }
 0x41f   : > { %v7026_v5 = vpop.f32.mrb[23].mxu0  ;;  %v7114_v32 = vpop.f32.mrb[151].mxu1 }
 0x420   : > { %v10165_v55 = vadd.f32 %v7712_v11, %v7024_v51  ;;  %v7027_v35 = vadd.f32 %v7026_v5, %v7025_v57  ;;  %v7115_v12 = vadd.f32 %v7114_v32, %v7113_v36  ;;  %v10168_v39 = vadd.f32 %v10055_v49, %v7112_v30 }
 0x421   : > { %v3319_v37 = vadd.f32 %v9986_v16, %v3280_v20  ;;  %v7728_v5 = vadd.f32 %v9981_v21, %v3318_v63 }
 0x422   : > { %v10171_v60 = vadd.f32 %v7720_v29, %v7027_v35  ;;  %v10174_v15 = vadd.f32 %v10058_v33, %v7115_v12 }
 0x423   : > { %v7736_v1 = vadd.f32 %v9984_v0, %v3319_v37 }
 0x424   : > { %v7028_v56 = vpop.f32.mrb[24].mxu0  ;;  %v7116_v58 = vpop.f32.mrb[152].mxu1 }
 0x425   : > { %v7029_v59 = vpop.f32.mrb[25].mxu0  ;;  %v7117_v28 = vpop.f32.mrb[153].mxu1 }
 0x426   : > { %v7030_v34 = vadd.f32 %v7029_v59, %v7028_v56  ;;  %v7118_v49 = vadd.f32 %v7117_v28, %v7116_v58  ;;  %v7031_v31 = vpop.f32.mrb[26].mxu0  ;;  %v7119_v27 = vpop.f32.mrb[154].mxu1 }
 0x427   : > { %v7032_v33 = vpop.f32.mrb[27].mxu0  ;;  %v7120_v4 = vpop.f32.mrb[155].mxu1 }
 0x428   : > { %v10181_v24 = vadd.f32 %v7732_v19, %v7030_v34  ;;  %v7033_v11 = vadd.f32 %v7032_v33, %v7031_v31  ;;  %v7121_v3 = vadd.f32 %v7120_v4, %v7119_v27  ;;  %v10184_v46 = vadd.f32 %v10065_v52, %v7118_v49 }
 0x42a   : > { %v10187_v51 = vadd.f32 %v7740_v54, %v7033_v11  ;;  %v10190_v30 = vadd.f32 %v10068_v18, %v7121_v3 }
 0x42c   : > { %v7034_v57 = vpop.f32.mrb[28].mxu0  ;;  %v7122_v36 = vpop.f32.mrb[156].mxu1 }
 0x42d   : > { %v7035_v29 = vpop.f32.mrb[29].mxu0  ;;  %v7123_v40 = vpop.f32.mrb[157].mxu1 }
 0x42e   : > { %v7036_v32 = vadd.f32 %v7035_v29, %v7034_v57  ;;  %v7124_v35 = vadd.f32 %v7123_v40, %v7122_v36  ;;  %v7037_v12 = vpop.f32.mrb[30].mxu0  ;;  %v7125_v52 = vpop.f32.mrb[158].mxu1 }
 0x42f   : > { %v7038_v41 = vpop.f32.mrb[31].mxu0  ;;  %v7126_v56 = vpop.f32.mrb[159].mxu1 }
 0x430   : > { %v10195_v58 = vadd.f32 %v7728_v5, %v7036_v32  ;;  %v7039_v18 = vadd.f32 %v7038_v41, %v7037_v12  ;;  %v7127_v59 = vadd.f32 %v7126_v56, %v7125_v52  ;;  %v10198_v16 = vadd.f32 %v10075_v62, %v7124_v35 }
 0x432   : > { %v10200_v28 = vadd.f32 %v7736_v1, %v7039_v18  ;;  %v10203_v19 = vadd.f32 %v10078_v38, %v7127_v59 }
 0x434   : > { %v7128_v21 = vpop.f32.mrb[160].mxu1 }
 0x435   : > { %v7129_v10 = vpop.f32.mrb[161].mxu1 }
 0x436   : > { %v7130_v6 = vadd.f32 %v7129_v10, %v7128_v21  ;;  %v7131_v34 = vpop.f32.mrb[162].mxu1 }
 0x437   : > { %v7132_v49 = vpop.f32.mrb[163].mxu1 }
 0x438   : > { %v7133_v0 = vadd.f32 %v7132_v49, %v7131_v34  ;;  %v10206_v31 = vadd.f32 %v10085_v7, %v7130_v6 }
 0x43a   : > { %v10209_v27 = vadd.f32 %v10091_v45, %v7133_v0 }
 0x43c   : > { %v7134_v54 = vpop.f32.mrb[164].mxu1 }
 0x43d   : > { %v7135_v62 = vpop.f32.mrb[165].mxu1 }
 0x43e   : > { %v7136_v20 = vadd.f32 %v7135_v62, %v7134_v54  ;;  %v7137_v33 = vpop.f32.mrb[166].mxu1 }
 0x43f   : > { %v7138_v4 = vpop.f32.mrb[167].mxu1 }
 0x440   : > { %v7139_v11 = vadd.f32 %v7138_v4, %v7137_v33  ;;  %v10212_v38 = vadd.f32 %v10101_v44, %v7136_v20 }
 0x442   : > { %v10215_v3 = vadd.f32 %v10107_v14, %v7139_v11 }
 0x444   : > { %v7140_v63 = vpop.f32.mrb[168].mxu1 }
 0x445   : > { %v7141_v37 = vpop.f32.mrb[169].mxu1 }
 0x446   : > { %v7142_v57 = vadd.f32 %v7141_v37, %v7140_v63  ;;  %v7143_v7 = vpop.f32.mrb[170].mxu1 }
 0x447   : > { %v7144_v36 = vpop.f32.mrb[171].mxu1 }
 0x448   : > { %v7145_v29 = vadd.f32 %v7144_v36, %v7143_v7  ;;  %v10218_v45 = vadd.f32 %v10117_v61, %v7142_v57 }
 0x44a   : > { %v10221_v40 = vadd.f32 %v10123_v48, %v7145_v29 }
 0x44c   : > { %v7146_v5 = vpop.f32.mrb[172].mxu1 }
 0x44d   : > { %v7147_v32 = vpop.f32.mrb[173].mxu1 }
 0x44e   : > { %v7148_v35 = vadd.f32 %v7147_v32, %v7146_v5  ;;  %v7149_v44 = vpop.f32.mrb[174].mxu1 }
 0x44f   : > { %v7150_v12 = vpop.f32.mrb[175].mxu1 }
 0x450   : > { %v7151_v52 = vadd.f32 %v7150_v12, %v7149_v44  ;;  %v10224_v14 = vadd.f32 %v10133_v22, %v7148_v35 }
 0x452   : > { %v10227_v1 = vadd.f32 %v10139_v25, %v7151_v52 }
 0x454   : > { %v7152_v41 = vpop.f32.mrb[176].mxu1 }
 0x455   : > { %v7153_v56 = vpop.f32.mrb[177].mxu1 }
 0x456   : > { %v7154_v18 = vadd.f32 %v7153_v56, %v7152_v41  ;;  %v7155_v61 = vpop.f32.mrb[178].mxu1 }
 0x457   : > { %v7156_v59 = vpop.f32.mrb[179].mxu1 }
 0x458   : > { %v7157_v21 = vadd.f32 %v7156_v59, %v7155_v61  ;;  %v10230_v48 = vadd.f32 %v10149_v26, %v7154_v18 }
 0x45a   : > { %v10233_v10 = vadd.f32 %v10155_v23, %v7157_v21 }
 0x45c   : > { %v7158_v6 = vpop.f32.mrb[180].mxu1 }
 0x45d   : > { %v7159_v34 = vpop.f32.mrb[181].mxu1 }
 0x45e   : > { %v7160_v49 = vadd.f32 %v7159_v34, %v7158_v6  ;;  %v7161_v22 = vpop.f32.mrb[182].mxu1 }
 0x45f   : > { %v7162_v0 = vpop.f32.mrb[183].mxu1 }
 0x460   : > { %v7163_v54 = vadd.f32 %v7162_v0, %v7161_v22  ;;  %v10236_v25 = vadd.f32 %v10165_v55, %v7160_v49 }
 0x462   : > { %v10239_v62 = vadd.f32 %v10171_v60, %v7163_v54 }
 0x464   : > { %v7164_v20 = vpop.f32.mrb[184].mxu1 }
 0x465   : > { %v7165_v33 = vpop.f32.mrb[185].mxu1 }
 0x466   : > { %v7166_v4 = vadd.f32 %v7165_v33, %v7164_v20  ;;  %v7167_v26 = vpop.f32.mrb[186].mxu1 }
 0x467   : > { %v7168_v11 = vpop.f32.mrb[187].mxu1 }
 0x468   : > { %v7169_v63 = vadd.f32 %v7168_v11, %v7167_v26  ;;  %v10242_v23 = vadd.f32 %v10181_v24, %v7166_v4 }
 0x46a   : > { %v10245_v37 = vadd.f32 %v10187_v51, %v7169_v63 }
 0x46c   : > { %v7170_v57 = vpop.f32.mrb[188].mxu1 }
 0x46d   : > { %v7171_v7 = vpop.f32.mrb[189].mxu1 }
 0x46e   : > { %v7172_v55 = vadd.f32 %v7171_v7, %v7170_v57  ;;  %v7173_v36 = vpop.f32.mrb[190].mxu1 }
 0x46f   : > { %v7174_v29 = vpop.f32.mrb[191].mxu1 }
 0x470   : > { %v7175_v60 = vadd.f32 %v7174_v29, %v7173_v36  ;;  %v10248_v5 = vadd.f32 %v10195_v58, %v7172_v55 }
 0x472   : > { %v10251_v32 = vadd.f32 %v10200_v28, %v7175_v60 }
 0x474   : > { %v7458_v35 = vpop.f32.mrb[96].mxu1 }
 0x475   : > { %v7619_v44 = vadd.f32 %v10104_v2, %v7458_v35  ;;  %v5429_v24 = vpop.f32.mrb[97].mxu1 }
 0x476   : > { %v7623_v12 = vadd.f32 %v10088_v17, %v5429_v24  ;;  %v7459_v51 = vpop.f32.mrb[98].mxu1 }
 0x477   : > { %v7627_v52 = vadd.f32 %v10110_v47, %v7459_v51  ;;  %v5432_v41 = vpop.f32.mrb[99].mxu1  ;;  %v5654_v18 = vmax.f32 %v7619_v44, 0.0 }
 0x478   : > { %v7631_v56 = vadd.f32 %v10094_v43, %v5432_v41  ;;  %v5652_v58 = vmax.f32 %v7623_v12, 0.0 }
 0x479   : > { %v5655_v61 = vmax.f32 %v7627_v52, 0.0 }
 0x47a   : > { %v5653_v59 = vmax.f32 %v7631_v56, 0.0 }
 0x47b   : > { %v6297_v21 = vpack.c.bf16 %v5655_v61, %v5654_v18 }
 0x47c   : > { %v6292_v28 = vpack.c.bf16 %v5653_v59, %v5652_v58  ;;  %v7462_v6 = vpop.f32.mrb[100].mxu1 }
 0x47d   : > { %6369 = vst [vmem:[%s10258_s26 + $0x8] sm:$0xff] %v6297_v21   ;;  %v7635_v17 = vadd.f32 %v10136_v9, %v7462_v6  ;;  %v5445_v2 = vpop.f32.mrb[101].mxu1 }
 0x47e   : > { %6293 = vst [vmem:[%s10258_s26] sm:$0xff] %v6292_v28   ;;  %v7639_v43 = vadd.f32 %v10120_v8, %v5445_v2  ;;  %v7463_v47 = vpop.f32.mrb[102].mxu1 }
 0x47f   : > { %v7643_v34 = vadd.f32 %v10142_v42, %v7463_v47  ;;  %v5448_v49 = vpop.f32.mrb[103].mxu1  ;;  %v5658_v0 = vmax.f32 %v7635_v17, 0.0 }
 0x480   : > { %v7647_v22 = vadd.f32 %v10126_v50, %v5448_v49  ;;  %v5656_v20 = vmax.f32 %v7639_v43, 0.0 }
 0x481   : > { %v5659_v54 = vmax.f32 %v7643_v34, 0.0 }
 0x482   : > { %v5657_v33 = vmax.f32 %v7647_v22, 0.0 }
 0x483   : > { %v6307_v4 = vpack.c.bf16 %v5659_v54, %v5658_v0 }
 0x484   : > { %v6302_v26 = vpack.c.bf16 %v5657_v33, %v5656_v20  ;;  %v7466_v11 = vpop.f32.mrb[104].mxu1 }
 0x485   : > { %6371 = vst [vmem:[%s10258_s26 + $0x18] sm:$0xff] %v6307_v4   ;;  %v7651_v9 = vadd.f32 %v10168_v39, %v7466_v11  ;;  %v5461_v63 = vpop.f32.mrb[105].mxu1 }
 0x486   : > { %6370 = vst [vmem:[%s10258_s26 + $0x10] sm:$0xff] %v6302_v26   ;;  %v7655_v8 = vadd.f32 %v10152_v13, %v5461_v63  ;;  %v7467_v42 = vpop.f32.mrb[106].mxu1 }
 0x487   : > { %v7659_v57 = vadd.f32 %v10174_v15, %v7467_v42  ;;  %v5464_v50 = vpop.f32.mrb[107].mxu1  ;;  %v5662_v55 = vmax.f32 %v7651_v9, 0.0 }
 0x488   : > { %v7663_v7 = vadd.f32 %v10158_v53, %v5464_v50  ;;  %v5660_v29 = vmax.f32 %v7655_v8, 0.0 }
 0x489   : > { %v5663_v36 = vmax.f32 %v7659_v57, 0.0 }
 0x48a   : > { %v5661_v60 = vmax.f32 %v7663_v7, 0.0 }
 0x48b   : > { %v6317_v35 = vpack.c.bf16 %v5663_v36, %v5662_v55 }
 0x48c   : > { %v6312_v44 = vpack.c.bf16 %v5661_v60, %v5660_v29  ;;  %v7470_v24 = vpop.f32.mrb[108].mxu1 }
 0x48d   : > { %6373 = vst [vmem:[%s10258_s26 + $0x28] sm:$0xff] %v6317_v35   ;;  %v7667_v39 = vadd.f32 %v10198_v16, %v7470_v24  ;;  %v5477_v12 = vpop.f32.mrb[109].mxu1 }
 0x48e   : > { %6372 = vst [vmem:[%s10258_s26 + $0x20] sm:$0xff] %v6312_v44   ;;  %v7671_v13 = vadd.f32 %v10184_v46, %v5477_v12  ;;  %v7471_v15 = vpop.f32.mrb[110].mxu1 }
 0x48f   : > { %v7675_v51 = vadd.f32 %v10203_v19, %v7471_v15  ;;  %v5480_v53 = vpop.f32.mrb[111].mxu1  ;;  %v5666_v41 = vmax.f32 %v7667_v39, 0.0 }
 0x490   : > { %v7679_v52 = vadd.f32 %v10190_v30, %v5480_v53  ;;  %v5664_v18 = vmax.f32 %v7671_v13, 0.0 }
 0x491   : > { %v5667_v56 = vmax.f32 %v7675_v51, 0.0 }
 0x492   : > { %v5665_v61 = vmax.f32 %v7679_v52, 0.0 }
 0x493   : > { %v6327_v58 = vpack.c.bf16 %v5667_v56, %v5666_v41 }
 0x494   : > { %v6322_v59 = vpack.c.bf16 %v5665_v61, %v5664_v18  ;;  %v7474_v21 = vpop.f32.mrb[112].mxu1 }
 0x495   : > { %6375 = vst [vmem:[%s10258_s26 + $0x38] sm:$0xff] %v6327_v58   ;;  %v7683_v16 = vadd.f32 %v10212_v38, %v7474_v21  ;;  %v5493_v28 = vpop.f32.mrb[113].mxu1 }
 0x496   : > { %6374 = vst [vmem:[%s10258_s26 + $0x30] sm:$0xff] %v6322_v59   ;;  %v7687_v46 = vadd.f32 %v10206_v31, %v5493_v28  ;;  %v7475_v19 = vpop.f32.mrb[114].mxu1 }
 0x497   : > { %v7691_v6 = vadd.f32 %v10215_v3, %v7475_v19  ;;  %v5496_v30 = vpop.f32.mrb[115].mxu1  ;;  %v5670_v2 = vmax.f32 %v7683_v16, 0.0 }
 0x498   : > { %v7695_v17 = vadd.f32 %v10209_v27, %v5496_v30  ;;  %v5668_v47 = vmax.f32 %v7687_v46, 0.0 }
 0x499   : > { %v5671_v43 = vmax.f32 %v7691_v6, 0.0 }
 0x49a   : > { %v5669_v34 = vmax.f32 %v7695_v17, 0.0 }
 0x49b   : > { %v6337_v49 = vpack.c.bf16 %v5671_v43, %v5670_v2 }
 0x49c   : > { %v6332_v22 = vpack.c.bf16 %v5669_v34, %v5668_v47  ;;  %v7478_v0 = vpop.f32.mrb[116].mxu1 }
 0x49d   : > { %6377 = vst [vmem:[%s10258_s26 + $0x48] sm:$0xff] %v6337_v49   ;;  %v7699_v38 = vadd.f32 %v10224_v14, %v7478_v0  ;;  %v5509_v54 = vpop.f32.mrb[117].mxu1 }
 0x49e   : > { %6376 = vst [vmem:[%s10258_s26 + $0x40] sm:$0xff] %v6332_v22   ;;  %v7703_v31 = vadd.f32 %v10218_v45, %v5509_v54  ;;  %v7479_v3 = vpop.f32.mrb[118].mxu1 }
 0x49f   : > { %v7707_v20 = vadd.f32 %v10227_v1, %v7479_v3  ;;  %v5512_v27 = vpop.f32.mrb[119].mxu1  ;;  %v5674_v4 = vmax.f32 %v7699_v38, 0.0 }
 0x4a0   : > { %v7711_v33 = vadd.f32 %v10221_v40, %v5512_v27  ;;  %v5672_v11 = vmax.f32 %v7703_v31, 0.0 }
 0x4a1   : > { %v5675_v26 = vmax.f32 %v7707_v20, 0.0 }
 0x4a2   : > { %v5673_v9 = vmax.f32 %v7711_v33, 0.0 }
 0x4a3   : > { %v6347_v63 = vpack.c.bf16 %v5675_v26, %v5674_v4 }
 0x4a4   : > { %v6342_v8 = vpack.c.bf16 %v5673_v9, %v5672_v11  ;;  %v7482_v42 = vpop.f32.mrb[120].mxu1 }
 0x4a5   : > { %6379 = vst [vmem:[%s10258_s26 + $0x58] sm:$0xff] %v6347_v63   ;;  %v7715_v14 = vadd.f32 %v10236_v25, %v7482_v42  ;;  %v5525_v57 = vpop.f32.mrb[121].mxu1 }
 0x4a6   : > { %6378 = vst [vmem:[%s10258_s26 + $0x50] sm:$0xff] %v6342_v8   ;;  %v7719_v45 = vadd.f32 %v10230_v48, %v5525_v57  ;;  %v7483_v1 = vpop.f32.mrb[122].mxu1 }
 0x4a7   : > { %v7723_v50 = vadd.f32 %v10239_v62, %v7483_v1  ;;  %v5528_v40 = vpop.f32.mrb[123].mxu1  ;;  %v5678_v55 = vmax.f32 %v7715_v14, 0.0 }
 0x4a8   : > { %v7727_v7 = vadd.f32 %v10233_v10, %v5528_v40  ;;  %v5676_v29 = vmax.f32 %v7719_v45, 0.0 }
 0x4a9   : > { %v5679_v36 = vmax.f32 %v7723_v50, 0.0 }
 0x4aa   : > { %v5677_v60 = vmax.f32 %v7727_v7, 0.0 }
 0x4ab   : > { %v6357_v35 = vpack.c.bf16 %v5679_v36, %v5678_v55 }
 0x4ac   : > { %v6352_v44 = vpack.c.bf16 %v5677_v60, %v5676_v29  ;;  %v7486_v25 = vpop.f32.mrb[124].mxu1 }
 0x4ad   : > { %6381 = vst [vmem:[%s10258_s26 + $0x68] sm:$0xff] %v6357_v35   ;;  %v7731_v24 = vadd.f32 %v10248_v5, %v7486_v25  ;;  %v5541_v39 = vpop.f32.mrb[125].mxu1 }
 0x4ae   : > { %6380 = vst [vmem:[%s10258_s26 + $0x60] sm:$0xff] %v6352_v44   ;;  %v7735_v48 = vadd.f32 %v10242_v23, %v5541_v39  ;;  %v7487_v62 = vpop.f32.mrb[126].mxu1 }
 0x4af   : > { %v7739_v10 = vadd.f32 %v10251_v32, %v7487_v62  ;;  %v5544_v12 = vpop.f32.mrb[127].mxu1  ;;  %v5682_v15 = vmax.f32 %v7731_v24, 0.0 }
 0x4b0   : > { %v7743_v13 = vadd.f32 %v10245_v37, %v5544_v12  ;;  %v5680_v53 = vmax.f32 %v7735_v48, 0.0 }
 0x4b1   : > { %v5683_v51 = vmax.f32 %v7739_v10, 0.0 }
 0x4b2   : > { %v5681_v5 = vmax.f32 %v7743_v13, 0.0 }
 0x4b3   : > { %v6367_v52 = vpack.c.bf16 %v5683_v51, %v5682_v15 }
 0x4b4   : > { %v6362_v23 = vpack.c.bf16 %v5681_v5, %v5680_v53 }
 0x4b5   : > { %6383 = vst [vmem:[%s10258_s26 + $0x78] sm:$0xff] %v6367_v52  }
 0x4b6   : > { %6382 = vst [vmem:[%s10258_s26 + $0x70] sm:$0xff] %v6362_v23  }
 0x4b7   : > { %8356 = shalt.err (!%p8353_p13)
}
 0x4b8   : > { %s8357_s30 = scalar_lea.hbm %s10307_s17, 2048  ;;  %s8361_s16 = scalar_lea.hbm %s10360_s5, 4096 }
 0x4b9   : > { %p8358_p9 = scmp.ne.s32.totalorder %s10307_s17, %s8357_s30  ;;  %p8362_p4 = scmp.lt.u32.totalorder %s10307_s17, %s10360_s5 }
 0x4ba   : > { %p8363_p8 = scmp.lt.u32.totalorder %s8361_s16, %s8357_s30  ;;  %p8365_p3 = scmp.lt.u32.totalorder %s8357_s30, %s10307_s17 }
 0x4bb   : > { %p8359_p0 = pnand %p8358_p9, %p8625_p10 }
 0x4bc   : > { %p8364_p6 = por %p8363_p8, %p8362_p4 }
 0x4bd   : > { %p8360_p11 = pneg %p8359_p0 }
 0x4be   : > { %p8366_p5 = por %p8365_p3, %p8364_p6 }
 0x4c0   : > { %p8367_p7 = pnand %p8366_p5, %p8360_p11 }
 0x4c2   : > { %8370 = shalt.err (!%p8367_p7)
}
 0x4c3   : > { %s8427_s27 = smov 64   ;;  %s8428_s8 = smov 4  }
 0x4c4   : > { %7861 = dma.vmem_to_hbm [thread:$0]  (%p8625_p10), %s10309_s13, 2048, %s10307_s17, %s5845_s22, %s8427_s27, %s8427_s27, %s8428_s8  }
 0x4c5 PF: > { %s5873_s6 = sand.u32 1, %s8405_s18   ;;  %p10585_p12 = scmp.ne.s32.totalorder %s10440_s25, 0 }
 0x4c6   : > { %p10586_p1 = scmp.ge.s32.totalorder %s8417_s21, 2  ;;  %s5874_s11 = scalar_lea.sflag [#allocation6], %s5873_s6 }
 0x4c8   : > { %p7881_p2 = pnand %p10586_p1, %p10585_p12 }
 0x4ca   : > { %8400 = dma.done.wait (!%p7881_p2), %s5874_s11, 2048  }
 0x4cb   : > { %8402 = vsyncadd (!%p7881_p2), %s5874_s11, 4294965248  ;;  %p20_p13 = scmp.ge.s32.totalorder %s8615_s14, 4   ;;  %s10587_s18 = smov %s8409_s19 }
 0x4cc   : > { %s10588_s19 = smov %s8413_s20  ;;  %s10589_s20 = smov %s8631_s10 }
 0x4cd   : > { %s10590_s21 = smov %s8615_s14  ;;  %22 = sbr.rel (!%p20_p13) target bundleno = 7 (0x7), region = 107 }
 0x4d4   :  { %5879 = vsyncpa [#allocation5], 1 }
 0x4d5   :  { %5881 = vsyncpa [#allocation5 + $0x1], 1 }
 0x4d6   :  { %5882 = vsyncpa [#allocation8], 1 }
 0x4d7   :  { %5883 = vsyncpa [#allocation11], 1 }
 0x4d8   :  { %5884 = vsyncpa [#allocation6], 1 }
 0x4d9   :  { %5886 = vsyncpa [#allocation6 + $0x1], 1 }

</bundles_post_ra>
